<compile_context>
chip_gen: v7x
topology: tpu7x:2x2x1
jax: 0.10.0
libtpu: 0.0.40
codegen_flags: <defaults>
</compile_context>

<pallas_src>
import functools

import jax
import jax.numpy as jnp
from jax.experimental import pallas as pl
from jax.experimental.pallas import tpu as pltpu

EPS = 1e-5
LANE = 128


def _hardswish(x):
    # nn.Hardswish: x * relu6(x + 3) / 6
    return x * jnp.clip(x + 3.0, 0.0, 6.0) * (1.0 / 6.0)


def _round_up(v, m):
    return (v + m - 1) // m * m


def _pick_row_tile(N, H, W, C1p, Cmid, Cout, budget_bytes):
    """Largest divisor of H whose per-step VMEM footprint fits the budget,
    preferring an even total grid count >= 2 (megacore balance on v7x)."""
    per_row = W * (4 * C1p * 2        # x row block, f32, double-buffered
                   + 4 * Cout * 2     # output row block, f32, double-buffered
                   + 2 * 3 * Cmid     # bf16 [left|center|right] slab scratch
                   + 4 * (Cmid + Cout))  # f32 in-flight temporaries (approx.)
    divs = [d for d in range(1, H + 1) if H % d == 0]
    fits = [d for d in divs if d * per_row <= budget_bytes] or [1]
    good = [d for d in fits if N * (H // d) >= 2 and (N * (H // d)) % 2 == 0]
    pool = good or [d for d in fits if N * (H // d) >= 2] or fits
    return max(pool)


def _pick_chunk_rows(TR, W, max_rows=512):
    """Largest divisor of TR keeping the matmul M dimension (rows*W) <= max_rows."""
    divs = [d for d in range(1, TR + 1) if TR % d == 0 and d * W <= max_rows]
    return max(divs) if divs else 1


# ---------------------------------------------------------------------------
# Fused Bottleneck kernel: cv1 (1x1) -> cv2 (3x3) -> (+x), row-tiled with halo
# ---------------------------------------------------------------------------
def _bottleneck_kernel(xm_ref, xt_ref, xb_ref, w1_ref, b1_ref, w2_ref, b2_ref,
                       o_ref, slab_ref, *, TR, TRC, W, Cmid, Cout, add):
    r = pl.program_id(1)
    last = pl.num_programs(1) - 1
    NC = TR // TRC
    K3 = 3 * Cmid

    def cv1(rows_f32):
        # 1x1 conv (BN scale pre-folded into w1) + bias + Hardswish.
        # bf16 operands feed the MXU, f32 accumulation / epilogue.
        y = jnp.dot(rows_f32.astype(jnp.bfloat16), w1_ref[...],
                    preferred_element_type=jnp.float32)
        return _hardswish(y + b1_ref[...])

    def store_lcr(rows, a):
        # Write the dx-expanded [x[c-1] | x[c] | x[c+1]] bands of a cv1 output
        # block a: (R, W, Cmid) f32 into slab rows `rows` (bf16).  The zero
        # columns at the W edges supply the 3x3 conv's horizontal zero pad.
        ab = a.astype(slab_ref.dtype)
        zcol = jnp.zeros_like(ab[:, 0:1, :])
        slab_ref[rows, :, Cmid:2 * Cmid] = ab                        # center
        slab_ref[rows, 1:W, 0:Cmid] = ab[:, :W - 1, :]               # left
        slab_ref[rows, 0:1, 0:Cmid] = zcol
        slab_ref[rows, 0:W - 1, 2 * Cmid:3 * Cmid] = ab[:, 1:, :]    # right
        slab_ref[rows, W - 1:W, 2 * Cmid:3 * Cmid] = zcol

    def each_chunk(body):
        # Short static trip counts are unrolled (LLO visibility); long ones
        # fall back to a real loop so live ranges stay bounded.
        if NC <= 8:
            for t in range(NC):
                body(t * TRC)
        else:
            def wrapped(t, carry):
                body(pl.multiple_of(t * TRC, TRC))
                return carry
            jax.lax.fori_loop(0, NC, wrapped, 0)

    # ---- Phase 1: cv1 + dx-expansion, streamed into the bf16 slab, per chunk.
    def cv1_chunk(row0):
        xr = xm_ref[0, pl.ds(row0, TRC)]                     # (TRC, W, C1p) f32
        a = cv1(xr.reshape(TRC * W, xr.shape[-1])).reshape(TRC, W, Cmid)
        store_lcr(pl.ds(row0 + 1, TRC), a)
    each_chunk(cv1_chunk)

    # Halo rows: only what is actually read as zero padding is written (no
    # full-scratch memset); every slab row is rewritten on every grid step.
    @pl.when(r > 0)
    def _():                                                 # top halo row
        store_lcr(pl.ds(0, 1), cv1(xt_ref[0, 0])[jnp.newaxis])

    @pl.when(r == 0)
    def _():                                                 # image top edge
        slab_ref[0] = jnp.zeros((W, K3), slab_ref.dtype)

    @pl.when(r < last)
    def _():                                                 # bottom halo row
        store_lcr(pl.ds(TR + 1, 1), cv1(xb_ref[0, 0])[jnp.newaxis])

    @pl.when(r == last)
    def _():                                                 # image bottom edge
        slab_ref[TR + 1] = jnp.zeros((W, K3), slab_ref.dtype)

    # ---- Phase 2: cv2 as 3 K=3*Cmid MXU matmuls (one per dy tap row) + bias
    # + Hardswish + optional exact-f32 residual, stored per chunk.
    def cv2_chunk(row0):
        acc = jnp.dot(slab_ref[pl.ds(row0, TRC)].reshape(TRC * W, K3),
                      w2_ref[0], preferred_element_type=jnp.float32)
        for dy in (1, 2):
            patch = slab_ref[pl.ds(row0 + dy, TRC)].reshape(TRC * W, K3)
            acc = acc + jnp.dot(patch, w2_ref[dy],
                                preferred_element_type=jnp.float32)
        y = _hardswish(acc + b2_ref[...])
        if add:
            xr = xm_ref[0, pl.ds(row0, TRC)]                 # (TRC, W, Cout)
            y = y + xr.reshape(TRC * W, xr.shape[-1])        # exact f32 residual
        o_ref[0, pl.ds(row0, TRC)] = y.reshape(TRC, W, Cout).astype(o_ref.dtype)
    each_chunk(cv2_chunk)


def bottleneck_forward(params, x_nchw, shortcut=True):
    N, c1, H, W = x_nchw.shape
    c_ = params["w1"].shape[1]
    c2 = params["w2"].shape[-1]
    add = bool(shortcut) and (c1 == c2)

    C1p = _round_up(c1, LANE)
    Cmp = _round_up(c_, LANE)
    C2p = _round_up(c2, LANE)
    K3 = 3 * Cmp

    # NCHW -> NHWC, zero-pad channels to lane-dense multiples of 128.
    x = jnp.transpose(x_nchw, (0, 2, 3, 1)).astype(jnp.float32)
    if C1p != c1:
        x = jnp.pad(x, ((0, 0), (0, 0), (0, 0), (0, C1p - c1)))

    # Fold BN scales into the conv weights in f32 then cast to bf16 (MXU feed);
    # only bias + Hardswish epilogues remain in-kernel. Zero-pad channels.
    w1f = (params["w1"] * params["s1"][None, :]).astype(jnp.bfloat16)
    w1 = jnp.zeros((C1p, Cmp), jnp.bfloat16).at[:c1, :c_].set(w1f)
    b1 = jnp.zeros((1, Cmp), jnp.float32).at[0, :c_].set(params["b1"])

    w2f = params["w2"] * params["s2"][None, None, None, :]          # (3,3,c_,c2)
    w2p = jnp.zeros((3, 3, Cmp, C2p), jnp.float32).at[:, :, :c_, :c2].set(w2f)
    # Fuse the three dx taps along K: w2cat[dy] = [w2[dy,0]; w2[dy,1]; w2[dy,2]]
    w2cat = w2p.reshape(3, K3, C2p).astype(jnp.bfloat16)
    b2 = jnp.zeros((1, C2p), jnp.float32).at[0, :c2].set(params["b2"])

    # Per-generation VMEM budgeting (v7x: 64 MiB, v5e/v6e: 128 MiB physical).
    try:
        cap = int(pltpu.get_tpu_info().vmem_capacity_bytes)
    except Exception:            # fall back to conservative cross-gen defaults
        cap = None
    if cap:
        budget = cap // 5
        vmem_limit = min(cap * 3 // 4, 100 << 20)
    else:
        budget = 8 << 20
        vmem_limit = 48 << 20

    # Weight blocks are grid-invariant but still double-buffered by the
    # pipeliner; subtract them from the row-tile budget.
    fixed = 2 * (C1p * Cmp * 2 + 3 * K3 * C2p * 2 + (Cmp + C2p) * 4)
    TR = _pick_row_tile(N, H, W, C1p, Cmp, C2p, max(budget - fixed, 1 << 20))
    TRC = _pick_chunk_rows(TR, W)
    grid = (N, H // TR)

    kernel = functools.partial(_bottleneck_kernel, TR=TR, TRC=TRC, W=W,
                               Cmid=Cmp, Cout=C2p, add=add)

    out = pl.pallas_call(
        kernel,
        out_shape=jax.ShapeDtypeStruct((N, H, W, C2p), jnp.float32),
        grid_spec=pltpu.PrefetchScalarGridSpec(
            num_scalar_prefetch=0,
            grid=grid,
            in_specs=[
                # current row tile
                pl.BlockSpec((1, TR, W, C1p), lambda n, r: (n, r, 0, 0)),
                # 1-row top halo (clamped; zero-masked in-kernel at r == 0)
                pl.BlockSpec((1, 1, W, C1p),
                             lambda n, r: (n, jnp.maximum(r * TR - 1, 0), 0, 0)),
                # 1-row bottom halo (clamped; zero-masked at the last tile)
                pl.BlockSpec((1, 1, W, C1p),
                             lambda n, r: (n, jnp.minimum(r * TR + TR, H - 1), 0, 0)),
                pl.BlockSpec((C1p, Cmp), lambda n, r: (0, 0)),        # w1 (scaled)
                pl.BlockSpec((1, Cmp), lambda n, r: (0, 0)),          # b1
                pl.BlockSpec((3, K3, C2p), lambda n, r: (0, 0, 0)),   # w2 (K-fused)
                pl.BlockSpec((1, C2p), lambda n, r: (0, 0)),          # b2
            ],
            out_specs=pl.BlockSpec((1, TR, W, C2p), lambda n, r: (n, r, 0, 0)),
            # [left|center|right] dx-expanded bf16 cv1 activation slab (+2 halo rows)
            scratch_shapes=[pltpu.VMEM((TR + 2, W, K3), jnp.bfloat16)],
        ),
        compiler_params=pltpu.CompilerParams(
            dimension_semantics=("parallel", "parallel"),
            vmem_limit_bytes=int(vmem_limit)),
    )(x, x, x, w1, b1, w2cat, b2)

    out = out[..., :c2]
    return jnp.transpose(out, (0, 3, 1, 2))                  # NHWC -> NCHW


# ---------------------------------------------------------------------------
# Deterministic synthetic parameters (BN folded to scale/bias, eval mode)
# ---------------------------------------------------------------------------
def _bn_fold(key, c):
    kg, kb, km, kv = jax.random.split(key, 4)
    gamma = 1.0 + 0.1 * jax.random.normal(kg, (c,), jnp.float32)
    beta = 0.1 * jax.random.normal(kb, (c,), jnp.float32)
    mean = 0.1 * jax.random.normal(km, (c,), jnp.float32)
    var = 0.5 + jax.random.uniform(kv, (c,), jnp.float32)
    scale = gamma / jnp.sqrt(var + EPS)
    bias = beta - mean * scale
    return scale, bias


def init_bottleneck_params(key, c1, c2, e=0.5):
    c_ = max(1, int(c2 * e))
    keys = jax.random.split(key, 4)

    def wconv(k, shape, fan_in):
        return jax.random.normal(k, shape, jnp.float32) / jnp.sqrt(
            jnp.float32(fan_in))

    p = {}
    p["w1"] = wconv(keys[0], (c1, c_), c1)            # cv1 1x1 (HWIO w/o HW)
    p["s1"], p["b1"] = _bn_fold(keys[1], c_)
    p["w2"] = wconv(keys[2], (3, 3, c_, c2), 9 * c_)  # cv2 3x3 (HWIO)
    p["s2"], p["b2"] = _bn_fold(keys[3], c2)
    return p


# ---------------------------------------------------------------------------
# Pure-JAX reference (for correctness validation)
# ---------------------------------------------------------------------------
def bottleneck_reference(params, x_nchw, shortcut=True):
    x = jnp.transpose(x_nchw, (0, 2, 3, 1)).astype(jnp.float32)
    c1 = x.shape[-1]
    c2 = params["w2"].shape[-1]
    w1 = params["w1"].reshape(1, 1, *params["w1"].shape)
    y = jax.lax.conv_general_dilated(
        x, w1, (1, 1), "SAME",
        dimension_numbers=("NHWC", "HWIO", "NHWC"),
        precision=jax.lax.Precision.HIGHEST)
    y = _hardswish(y * params["s1"] + params["b1"])
    y = jax.lax.conv_general_dilated(
        y, params["w2"], (1, 1), "SAME",
        dimension_numbers=("NHWC", "HWIO", "NHWC"),
        precision=jax.lax.Precision.HIGHEST)
    y = _hardswish(y * params["s2"] + params["b2"])
    if shortcut and c1 == c2:
        y = y + x
    return jnp.transpose(y, (0, 3, 1, 2))


if __name__ == "__main__":
    key = jax.random.PRNGKey(0)
    kx, kp1, kp2 = jax.random.split(key, 3)
    N, H, W = 2, 16, 16

    # Case 1: shortcut active (c1 == c2)
    c1 = c2 = 4
    x = jax.random.normal(kx, (N, c1, H, W), jnp.float32)
    params = init_bottleneck_params(kp1, c1, c2)
    out = jax.jit(bottleneck_forward)(params, x)
    out = jax.block_until_ready(out)
    assert out.shape == (N, c2, H, W), out.shape
    assert bool(jnp.all(jnp.isfinite(out)))
    ref = bottleneck_reference(params, x)
    err = float(jnp.max(jnp.abs(out - ref)))
    assert err < 1e-1, f"shortcut case mismatch, max abs err = {err}"

    # Case 2: no shortcut (c1 != c2)
    c1b, c2b = 4, 8
    xb = jax.random.normal(kx, (N, c1b, H, W), jnp.float32)
    params_b = init_bottleneck_params(kp2, c1b, c2b)
    out_b = jax.jit(bottleneck_forward)(params_b, xb)
    out_b = jax.block_until_ready(out_b)
    assert out_b.shape == (N, c2b, H, W), out_b.shape
    assert bool(jnp.all(jnp.isfinite(out_b)))
    ref_b = bottleneck_reference(params_b, xb)
    err_b = float(jnp.max(jnp.abs(out_b - ref_b)))
    assert err_b < 1e-1, f"no-shortcut case mismatch, max abs err = {err_b}"

    print("KERNEL_OK")
</pallas_src>

<mosaic_0001>
module attributes {stable_mosaic.version = 11 : i64} {
  func.func @_bottleneck_kernel(%arg0: i32, %arg1: i32, %arg2: memref<1x16x16x128xf32, #tpu.memory_space<vmem>>, %arg3: memref<1x1x16x128xf32, #tpu.memory_space<vmem>>, %arg4: memref<1x1x16x128xf32, #tpu.memory_space<vmem>>, %arg5: memref<128x128xbf16, #tpu.memory_space<vmem>>, %arg6: memref<1x128xf32, #tpu.memory_space<vmem>>, %arg7: memref<3x384x128xbf16, #tpu.memory_space<vmem>>, %arg8: memref<1x128xf32, #tpu.memory_space<vmem>>, %arg9: memref<1x16x16x128xf32, #tpu.memory_space<vmem>>, %arg10: memref<18x16x384xbf16, #tpu.memory_space<vmem>>) attributes {dimension_semantics = [#tpu.dimension_semantics<parallel>, #tpu.dimension_semantics<parallel>], iteration_bounds = array<i64: 2, 1>, scalar_prefetch = 0 : i64, scratch_operands = 1 : i64, tpu.core_type = #tpu.core_type<tc>, window_params = [{transform_indices = @transform_0, window_bounds = array<i64: 1, 16, 16, 128>}, {transform_indices = @transform_1, window_bounds = array<i64: 1, 1, 16, 128>}, {transform_indices = @transform_2, window_bounds = array<i64: 1, 1, 16, 128>}, {pipeline_mode = #tpu.pipeline_mode<synchronous>, transform_indices = @transform_3, window_bounds = array<i64: 128, 128>}, {pipeline_mode = #tpu.pipeline_mode<synchronous>, transform_indices = @transform_4, window_bounds = array<i64: 1, 128>}, {pipeline_mode = #tpu.pipeline_mode<synchronous>, transform_indices = @transform_5, window_bounds = array<i64: 3, 384, 128>}, {pipeline_mode = #tpu.pipeline_mode<synchronous>, transform_indices = @transform_6, window_bounds = array<i64: 1, 128>}, {transform_indices = @transform_7, window_bounds = array<i64: 1, 16, 16, 128>}]} {
    %c0 = arith.constant 0 : index
    %c0_0 = arith.constant 0 : index
    %c0_1 = arith.constant 0 : index
    %c0_2 = arith.constant 0 : index
    %0 = vector.load %arg2[%c0, %c0_0, %c0_1, %c0_2] : memref<1x16x16x128xf32, #tpu.memory_space<vmem>>, vector<1x16x16x128xf32>
    %1 = vector.shape_cast %0 : vector<1x16x16x128xf32> to vector<16x16x128xf32>
    %2 = vector.shape_cast %1 : vector<16x16x128xf32> to vector<256x128xf32>
    %3 = arith.truncf %2 : vector<256x128xf32> to vector<256x128xbf16>
    %c0_3 = arith.constant 0 : index
    %c0_4 = arith.constant 0 : index
    %4 = vector.load %arg5[%c0_3, %c0_4] : memref<128x128xbf16, #tpu.memory_space<vmem>>, vector<128x128xbf16>
    %cst = arith.constant dense<0.000000e+00> : vector<256x128xf32>
    %5 = tpu.matmul %3, %4, %cst {dimension_numbers = #tpu.dot_dimension_numbers<[1], [0], [0], [1], [0, 0, 1, 1], [], []>} : vector<256x128xbf16>, vector<128x128xbf16>, vector<256x128xf32> -> vector<256x128xf32>
    %c0_5 = arith.constant 0 : index
    %c0_6 = arith.constant 0 : index
    %6 = vector.load %arg6[%c0_5, %c0_6] : memref<1x128xf32, #tpu.memory_space<vmem>>, vector<1x128xf32>
    %7 = vector.broadcast %6 : vector<1x128xf32> to vector<256x128xf32>
    %8 = arith.addf %5, %7 : vector<256x128xf32>
    %cst_7 = arith.constant 3.000000e+00 : f32
    %9 = vector.broadcast %cst_7 : f32 to vector<256x128xf32>
    %10 = arith.addf %8, %9 : vector<256x128xf32>
    %cst_8 = arith.constant 0.000000e+00 : f32
    %cst_9 = arith.constant 6.000000e+00 : f32
    %11 = vector.broadcast %cst_8 : f32 to vector<256x128xf32>
    %12 = arith.maximumf %11, %10 : vector<256x128xf32>
    %13 = vector.broadcast %cst_9 : f32 to vector<256x128xf32>
    %14 = arith.minimumf %13, %12 : vector<256x128xf32>
    %15 = arith.mulf %8, %14 : vector<256x128xf32>
    %cst_10 = arith.constant 0.166666672 : f32
    %16 = vector.broadcast %cst_10 : f32 to vector<256x128xf32>
    %17 = arith.mulf %15, %16 : vector<256x128xf32>
    %18 = vector.shape_cast %17 : vector<256x128xf32> to vector<16x16x128xf32>
    %19 = arith.truncf %18 : vector<16x16x128xf32> to vector<16x16x128xbf16>
    %cst_11 = arith.constant 0.000000e+00 : bf16
    %20 = vector.broadcast %cst_11 : bf16 to vector<16x1x128xbf16>
    %c1 = arith.constant 1 : index
    %c0_12 = arith.constant 0 : index
    %c128 = arith.constant 128 : index
    %21 = vector.load %arg10[%c1, %c0_12, %c128] : memref<18x16x384xbf16, #tpu.memory_space<vmem>>, vector<16x16x128xbf16>
    tpu.vector_store %arg10[%c1, %c0_12, %c128], %19 {strides = array<i32>} : memref<18x16x384xbf16, #tpu.memory_space<vmem>>, vector<16x16x128xbf16>,
    %22 = vector.extract_strided_slice %19 {offsets = [0, 0, 0], sizes = [16, 15, 128], strides = [1, 1, 1]} : vector<16x16x128xbf16> to vector<16x15x128xbf16>
    %c1_13 = arith.constant 1 : index
    %c1_14 = arith.constant 1 : index
    %c0_15 = arith.constant 0 : index
    %23 = vector.load %arg10[%c1_13, %c1_14, %c0_15] : memref<18x16x384xbf16, #tpu.memory_space<vmem>>, vector<16x15x128xbf16>
    tpu.vector_store %arg10[%c1_13, %c1_14, %c0_15], %22 {strides = array<i32>} : memref<18x16x384xbf16, #tpu.memory_space<vmem>>, vector<16x15x128xbf16>,
    %c1_16 = arith.constant 1 : index
    %c0_17 = arith.constant 0 : index
    %c0_18 = arith.constant 0 : index
    %24 = vector.load %arg10[%c1_16, %c0_17, %c0_18] : memref<18x16x384xbf16, #tpu.memory_space<vmem>>, vector<16x1x128xbf16>
    tpu.vector_store %arg10[%c1_16, %c0_17, %c0_18], %20 {strides = array<i32>} : memref<18x16x384xbf16, #tpu.memory_space<vmem>>, vector<16x1x128xbf16>,
    %25 = vector.extract_strided_slice %19 {offsets = [0, 1, 0], sizes = [16, 15, 128], strides = [1, 1, 1]} : vector<16x16x128xbf16> to vector<16x15x128xbf16>
    %c1_19 = arith.constant 1 : index
    %c0_20 = arith.constant 0 : index
    %c256 = arith.constant 256 : index
    %26 = vector.load %arg10[%c1_19, %c0_20, %c256] : memref<18x16x384xbf16, #tpu.memory_space<vmem>>, vector<16x15x128xbf16>
    tpu.vector_store %arg10[%c1_19, %c0_20, %c256], %25 {strides = array<i32>} : memref<18x16x384xbf16, #tpu.memory_space<vmem>>, vector<16x15x128xbf16>,
    %c1_21 = arith.constant 1 : index
    %c15 = arith.constant 15 : index
    %c256_22 = arith.constant 256 : index
    %27 = vector.load %arg10[%c1_21, %c15, %c256_22] : memref<18x16x384xbf16, #tpu.memory_space<vmem>>, vector<16x1x128xbf16>
    tpu.vector_store %arg10[%c1_21, %c15, %c256_22], %20 {strides = array<i32>} : memref<18x16x384xbf16, #tpu.memory_space<vmem>>, vector<16x1x128xbf16>,
    %c0_i32 = arith.constant 0 : i32
    %28 = arith.cmpi sgt, %arg1, %c0_i32 : i32
    %29 = arith.extui %28 : i1 to i32
    %c0_i32_23 = arith.constant 0 : i32
    %30 = arith.cmpi ne, %29, %c0_i32_23 : i32
    scf.if %30 {
      %c0_64 = arith.constant 0 : index
      %c0_65 = arith.constant 0 : index
      %c0_66 = arith.constant 0 : index
      %c0_67 = arith.constant 0 : index
      %77 = vector.load %arg3[%c0_64, %c0_65, %c0_66, %c0_67] : memref<1x1x16x128xf32, #tpu.memory_space<vmem>>, vector<1x1x16x128xf32>
      %78 = vector.shape_cast %77 : vector<1x1x16x128xf32> to vector<16x128xf32>
      %79 = arith.truncf %78 : vector<16x128xf32> to vector<16x128xbf16>
      %c0_68 = arith.constant 0 : index
      %c0_69 = arith.constant 0 : index
      %80 = vector.load %arg5[%c0_68, %c0_69] : memref<128x128xbf16, #tpu.memory_space<vmem>>, vector<128x128xbf16>
      %cst_70 = arith.constant dense<0.000000e+00> : vector<16x128xf32>
      %81 = tpu.matmul %79, %80, %cst_70 {dimension_numbers = #tpu.dot_dimension_numbers<[1], [0], [0], [1], [0, 0, 1, 1], [], []>} : vector<16x128xbf16>, vector<128x128xbf16>, vector<16x128xf32> -> vector<16x128xf32>
      %c0_71 = arith.constant 0 : index
      %c0_72 = arith.constant 0 : index
      %82 = vector.load %arg6[%c0_71, %c0_72] : memref<1x128xf32, #tpu.memory_space<vmem>>, vector<1x128xf32>
      %83 = vector.broadcast %82 : vector<1x128xf32> to vector<16x128xf32>
      %84 = arith.addf %81, %83 : vector<16x128xf32>
      %cst_73 = arith.constant 3.000000e+00 : f32
      %85 = vector.broadcast %cst_73 : f32 to vector<16x128xf32>
      %86 = arith.addf %84, %85 : vector<16x128xf32>
      %cst_74 = arith.constant 0.000000e+00 : f32
      %cst_75 = arith.constant 6.000000e+00 : f32
      %87 = vector.broadcast %cst_74 : f32 to vector<16x128xf32>
      %88 = arith.maximumf %87, %86 : vector<16x128xf32>
      %89 = vector.broadcast %cst_75 : f32 to vector<16x128xf32>
      %90 = arith.minimumf %89, %88 : vector<16x128xf32>
      %91 = arith.mulf %84, %90 : vector<16x128xf32>
      %cst_76 = arith.constant 0.166666672 : f32
      %92 = vector.broadcast %cst_76 : f32 to vector<16x128xf32>
      %93 = arith.mulf %91, %92 : vector<16x128xf32>
      %94 = vector.shape_cast %93 : vector<16x128xf32> to vector<1x16x128xf32>
      %95 = arith.truncf %94 : vector<1x16x128xf32> to vector<1x16x128xbf16>
      %cst_77 = arith.constant 0.000000e+00 : bf16
      %96 = vector.broadcast %cst_77 : bf16 to vector<1x1x128xbf16>
      %c0_78 = arith.constant 0 : index
      %c0_79 = arith.constant 0 : index
      %c128_80 = arith.constant 128 : index
      %97 = vector.load %arg10[%c0_78, %c0_79, %c128_80] : memref<18x16x384xbf16, #tpu.memory_space<vmem>>, vector<1x16x128xbf16>
      tpu.vector_store %arg10[%c0_78, %c0_79, %c128_80], %95 {strides = array<i32>} : memref<18x16x384xbf16, #tpu.memory_space<vmem>>, vector<1x16x128xbf16>,
      %98 = vector.extract_strided_slice %95 {offsets = [0, 0, 0], sizes = [1, 15, 128], strides = [1, 1, 1]} : vector<1x16x128xbf16> to vector<1x15x128xbf16>
      %c0_81 = arith.constant 0 : index
      %c1_82 = arith.constant 1 : index
      %c0_83 = arith.constant 0 : index
      %99 = vector.load %arg10[%c0_81, %c1_82, %c0_83] : memref<18x16x384xbf16, #tpu.memory_space<vmem>>, vector<1x15x128xbf16>
      tpu.vector_store %arg10[%c0_81, %c1_82, %c0_83], %98 {strides = array<i32>} : memref<18x16x384xbf16, #tpu.memory_space<vmem>>, vector<1x15x128xbf16>,
      %c0_84 = arith.constant 0 : index
      %c0_85 = arith.constant 0 : index
      %c0_86 = arith.constant 0 : index
      %100 = vector.load %arg10[%c0_84, %c0_85, %c0_86] : memref<18x16x384xbf16, #tpu.memory_space<vmem>>, vector<1x1x128xbf16>
      tpu.vector_store %arg10[%c0_84, %c0_85, %c0_86], %96 {strides = array<i32>} : memref<18x16x384xbf16, #tpu.memory_space<vmem>>, vector<1x1x128xbf16>,
      %101 = vector.extract_strided_slice %95 {offsets = [0, 1, 0], sizes = [1, 15, 128], strides = [1, 1, 1]} : vector<1x16x128xbf16> to vector<1x15x128xbf16>
      %c0_87 = arith.constant 0 : index
      %c0_88 = arith.constant 0 : index
      %c256_89 = arith.constant 256 : index
      %102 = vector.load %arg10[%c0_87, %c0_88, %c256_89] : memref<18x16x384xbf16, #tpu.memory_space<vmem>>, vector<1x15x128xbf16>
      tpu.vector_store %arg10[%c0_87, %c0_88, %c256_89], %101 {strides = array<i32>} : memref<18x16x384xbf16, #tpu.memory_space<vmem>>, vector<1x15x128xbf16>,
      %c0_90 = arith.constant 0 : index
      %c15_91 = arith.constant 15 : index
      %c256_92 = arith.constant 256 : index
      %103 = vector.load %arg10[%c0_90, %c15_91, %c256_92] : memref<18x16x384xbf16, #tpu.memory_space<vmem>>, vector<1x1x128xbf16>
      tpu.vector_store %arg10[%c0_90, %c15_91, %c256_92], %96 {strides = array<i32>} : memref<18x16x384xbf16, #tpu.memory_space<vmem>>, vector<1x1x128xbf16>,
    } else {
    }
    %c0_i32_24 = arith.constant 0 : i32
    %31 = arith.cmpi eq, %arg1, %c0_i32_24 : i32
    %32 = arith.extui %31 : i1 to i32
    %c0_i32_25 = arith.constant 0 : i32
    %33 = arith.cmpi ne, %32, %c0_i32_25 : i32
    scf.if %33 {
      %cst_64 = arith.constant 0.000000e+00 : bf16
      %77 = vector.broadcast %cst_64 : bf16 to vector<16x384xbf16>
      %c0_65 = arith.constant 0 : index
      %c0_66 = arith.constant 0 : index
      %c0_67 = arith.constant 0 : index
      %78 = vector.load %arg10[%c0_65, %c0_66, %c0_67] : memref<18x16x384xbf16, #tpu.memory_space<vmem>>, vector<1x16x384xbf16>
      %79 = vector.shape_cast %78 : vector<1x16x384xbf16> to vector<16x384xbf16>
      %80 = vector.shape_cast %77 : vector<16x384xbf16> to vector<1x16x384xbf16>
      tpu.vector_store %arg10[%c0_65, %c0_66, %c0_67], %80 {strides = array<i32>} : memref<18x16x384xbf16, #tpu.memory_space<vmem>>, vector<1x16x384xbf16>,
    } else {
    }
    %c0_i32_26 = arith.constant 0 : i32
    %34 = arith.cmpi slt, %arg1, %c0_i32_26 : i32
    %35 = arith.extui %34 : i1 to i32
    %c0_i32_27 = arith.constant 0 : i32
    %36 = arith.cmpi ne, %35, %c0_i32_27 : i32
    scf.if %36 {
      %c0_64 = arith.constant 0 : index
      %c0_65 = arith.constant 0 : index
      %c0_66 = arith.constant 0 : index
      %c0_67 = arith.constant 0 : index
      %77 = vector.load %arg4[%c0_64, %c0_65, %c0_66, %c0_67] : memref<1x1x16x128xf32, #tpu.memory_space<vmem>>, vector<1x1x16x128xf32>
      %78 = vector.shape_cast %77 : vector<1x1x16x128xf32> to vector<16x128xf32>
      %79 = arith.truncf %78 : vector<16x128xf32> to vector<16x128xbf16>
      %c0_68 = arith.constant 0 : index
      %c0_69 = arith.constant 0 : index
      %80 = vector.load %arg5[%c0_68, %c0_69] : memref<128x128xbf16, #tpu.memory_space<vmem>>, vector<128x128xbf16>
      %cst_70 = arith.constant dense<0.000000e+00> : vector<16x128xf32>
      %81 = tpu.matmul %79, %80, %cst_70 {dimension_numbers = #tpu.dot_dimension_numbers<[1], [0], [0], [1], [0, 0, 1, 1], [], []>} : vector<16x128xbf16>, vector<128x128xbf16>, vector<16x128xf32> -> vector<16x128xf32>
      %c0_71 = arith.constant 0 : index
      %c0_72 = arith.constant 0 : index
      %82 = vector.load %arg6[%c0_71, %c0_72] : memref<1x128xf32, #tpu.memory_space<vmem>>, vector<1x128xf32>
      %83 = vector.broadcast %82 : vector<1x128xf32> to vector<16x128xf32>
      %84 = arith.addf %81, %83 : vector<16x128xf32>
      %cst_73 = arith.constant 3.000000e+00 : f32
      %85 = vector.broadcast %cst_73 : f32 to vector<16x128xf32>
      %86 = arith.addf %84, %85 : vector<16x128xf32>
      %cst_74 = arith.constant 0.000000e+00 : f32
      %cst_75 = arith.constant 6.000000e+00 : f32
      %87 = vector.broadcast %cst_74 : f32 to vector<16x128xf32>
      %88 = arith.maximumf %87, %86 : vector<16x128xf32>
      %89 = vector.broadcast %cst_75 : f32 to vector<16x128xf32>
      %90 = arith.minimumf %89, %88 : vector<16x128xf32>
      %91 = arith.mulf %84, %90 : vector<16x128xf32>
      %cst_76 = arith.constant 0.166666672 : f32
      %92 = vector.broadcast %cst_76 : f32 to vector<16x128xf32>
      %93 = arith.mulf %91, %92 : vector<16x128xf32>
      %94 = vector.shape_cast %93 : vector<16x128xf32> to vector<1x16x128xf32>
      %95 = arith.truncf %94 : vector<1x16x128xf32> to vector<1x16x128xbf16>
      %cst_77 = arith.constant 0.000000e+00 : bf16
      %96 = vector.broadcast %cst_77 : bf16 to vector<1x1x128xbf16>
      %c17 = arith.constant 17 : index
      %c0_78 = arith.constant 0 : index
      %c128_79 = arith.constant 128 : index
      %97 = vector.load %arg10[%c17, %c0_78, %c128_79] : memref<18x16x384xbf16, #tpu.memory_space<vmem>>, vector<1x16x128xbf16>
      tpu.vector_store %arg10[%c17, %c0_78, %c128_79], %95 {strides = array<i32>} : memref<18x16x384xbf16, #tpu.memory_space<vmem>>, vector<1x16x128xbf16>,
      %98 = vector.extract_strided_slice %95 {offsets = [0, 0, 0], sizes = [1, 15, 128], strides = [1, 1, 1]} : vector<1x16x128xbf16> to vector<1x15x128xbf16>
      %c17_80 = arith.constant 17 : index
      %c1_81 = arith.constant 1 : index
      %c0_82 = arith.constant 0 : index
      %99 = vector.load %arg10[%c17_80, %c1_81, %c0_82] : memref<18x16x384xbf16, #tpu.memory_space<vmem>>, vector<1x15x128xbf16>
      tpu.vector_store %arg10[%c17_80, %c1_81, %c0_82], %98 {strides = array<i32>} : memref<18x16x384xbf16, #tpu.memory_space<vmem>>, vector<1x15x128xbf16>,
      %c17_83 = arith.constant 17 : index
      %c0_84 = arith.constant 0 : index
      %c0_85 = arith.constant 0 : index
      %100 = vector.load %arg10[%c17_83, %c0_84, %c0_85] : memref<18x16x384xbf16, #tpu.memory_space<vmem>>, vector<1x1x128xbf16>
      tpu.vector_store %arg10[%c17_83, %c0_84, %c0_85], %96 {strides = array<i32>} : memref<18x16x384xbf16, #tpu.memory_space<vmem>>, vector<1x1x128xbf16>,
      %101 = vector.extract_strided_slice %95 {offsets = [0, 1, 0], sizes = [1, 15, 128], strides = [1, 1, 1]} : vector<1x16x128xbf16> to vector<1x15x128xbf16>
      %c17_86 = arith.constant 17 : index
      %c0_87 = arith.constant 0 : index
      %c256_88 = arith.constant 256 : index
      %102 = vector.load %arg10[%c17_86, %c0_87, %c256_88] : memref<18x16x384xbf16, #tpu.memory_space<vmem>>, vector<1x15x128xbf16>
      tpu.vector_store %arg10[%c17_86, %c0_87, %c256_88], %101 {strides = array<i32>} : memref<18x16x384xbf16, #tpu.memory_space<vmem>>, vector<1x15x128xbf16>,
      %c17_89 = arith.constant 17 : index
      %c15_90 = arith.constant 15 : index
      %c256_91 = arith.constant 256 : index
      %103 = vector.load %arg10[%c17_89, %c15_90, %c256_91] : memref<18x16x384xbf16, #tpu.memory_space<vmem>>, vector<1x1x128xbf16>
      tpu.vector_store %arg10[%c17_89, %c15_90, %c256_91], %96 {strides = array<i32>} : memref<18x16x384xbf16, #tpu.memory_space<vmem>>, vector<1x1x128xbf16>,
    } else {
    }
    %c0_i32_28 = arith.constant 0 : i32
    %37 = arith.cmpi eq, %arg1, %c0_i32_28 : i32
    %38 = arith.extui %37 : i1 to i32
    %c0_i32_29 = arith.constant 0 : i32
    %39 = arith.cmpi ne, %38, %c0_i32_29 : i32
    scf.if %39 {
      %cst_64 = arith.constant 0.000000e+00 : bf16
      %77 = vector.broadcast %cst_64 : bf16 to vector<16x384xbf16>
      %c17 = arith.constant 17 : index
      %c0_65 = arith.constant 0 : index
      %c0_66 = arith.constant 0 : index
      %78 = vector.load %arg10[%c17, %c0_65, %c0_66] : memref<18x16x384xbf16, #tpu.memory_space<vmem>>, vector<1x16x384xbf16>
      %79 = vector.shape_cast %78 : vector<1x16x384xbf16> to vector<16x384xbf16>
      %80 = vector.shape_cast %77 : vector<16x384xbf16> to vector<1x16x384xbf16>
      tpu.vector_store %arg10[%c17, %c0_65, %c0_66], %80 {strides = array<i32>} : memref<18x16x384xbf16, #tpu.memory_space<vmem>>, vector<1x16x384xbf16>,
    } else {
    }
    %c0_30 = arith.constant 0 : index
    %c0_31 = arith.constant 0 : index
    %c0_32 = arith.constant 0 : index
    %40 = vector.load %arg10[%c0_30, %c0_31, %c0_32] : memref<18x16x384xbf16, #tpu.memory_space<vmem>>, vector<16x16x384xbf16>
    %41 = vector.shape_cast %40 : vector<16x16x384xbf16> to vector<256x384xbf16>
    %c0_33 = arith.constant 0 : index
    %c0_34 = arith.constant 0 : index
    %c0_35 = arith.constant 0 : index
    %42 = vector.load %arg7[%c0_33, %c0_34, %c0_35] : memref<3x384x128xbf16, #tpu.memory_space<vmem>>, vector<1x384x128xbf16>
    %43 = vector.shape_cast %42 : vector<1x384x128xbf16> to vector<384x128xbf16>
    %cst_36 = arith.constant dense<0.000000e+00> : vector<256x128xf32>
    %44 = tpu.matmul %41, %43, %cst_36 {dimension_numbers = #tpu.dot_dimension_numbers<[1], [0], [0], [1], [0, 0, 1, 1], [], []>} : vector<256x384xbf16>, vector<384x128xbf16>, vector<256x128xf32> -> vector<256x128xf32>
    %c1_37 = arith.constant 1 : index
    %c0_38 = arith.constant 0 : index
    %c0_39 = arith.constant 0 : index
    %45 = vector.load %arg10[%c1_37, %c0_38, %c0_39] : memref<18x16x384xbf16, #tpu.memory_space<vmem>>, vector<16x16x384xbf16>
    %46 = vector.shape_cast %45 : vector<16x16x384xbf16> to vector<256x384xbf16>
    %c1_40 = arith.constant 1 : index
    %c0_41 = arith.constant 0 : index
    %c0_42 = arith.constant 0 : index
    %47 = vector.load %arg7[%c1_40, %c0_41, %c0_42] : memref<3x384x128xbf16, #tpu.memory_space<vmem>>, vector<1x384x128xbf16>
    %48 = vector.shape_cast %47 : vector<1x384x128xbf16> to vector<384x128xbf16>
    %cst_43 = arith.constant dense<0.000000e+00> : vector<256x128xf32>
    %49 = tpu.matmul %46, %48, %cst_43 {dimension_numbers = #tpu.dot_dimension_numbers<[1], [0], [0], [1], [0, 0, 1, 1], [], []>} : vector<256x384xbf16>, vector<384x128xbf16>, vector<256x128xf32> -> vector<256x128xf32>
    %50 = arith.addf %44, %49 : vector<256x128xf32>
    %c2 = arith.constant 2 : index
    %c0_44 = arith.constant 0 : index
    %c0_45 = arith.constant 0 : index
    %51 = vector.load %arg10[%c2, %c0_44, %c0_45] : memref<18x16x384xbf16, #tpu.memory_space<vmem>>, vector<16x16x384xbf16>
    %52 = vector.shape_cast %51 : vector<16x16x384xbf16> to vector<256x384xbf16>
    %c2_46 = arith.constant 2 : index
    %c0_47 = arith.constant 0 : index
    %c0_48 = arith.constant 0 : index
    %53 = vector.load %arg7[%c2_46, %c0_47, %c0_48] : memref<3x384x128xbf16, #tpu.memory_space<vmem>>, vector<1x384x128xbf16>
    %54 = vector.shape_cast %53 : vector<1x384x128xbf16> to vector<384x128xbf16>
    %cst_49 = arith.constant dense<0.000000e+00> : vector<256x128xf32>
    %55 = tpu.matmul %52, %54, %cst_49 {dimension_numbers = #tpu.dot_dimension_numbers<[1], [0], [0], [1], [0, 0, 1, 1], [], []>} : vector<256x384xbf16>, vector<384x128xbf16>, vector<256x128xf32> -> vector<256x128xf32>
    %56 = arith.addf %50, %55 : vector<256x128xf32>
    %c0_50 = arith.constant 0 : index
    %c0_51 = arith.constant 0 : index
    %57 = vector.load %arg8[%c0_50, %c0_51] : memref<1x128xf32, #tpu.memory_space<vmem>>, vector<1x128xf32>
    %58 = vector.broadcast %57 : vector<1x128xf32> to vector<256x128xf32>
    %59 = arith.addf %56, %58 : vector<256x128xf32>
    %cst_52 = arith.constant 3.000000e+00 : f32
    %60 = vector.broadcast %cst_52 : f32 to vector<256x128xf32>
    %61 = arith.addf %59, %60 : vector<256x128xf32>
    %cst_53 = arith.constant 0.000000e+00 : f32
    %cst_54 = arith.constant 6.000000e+00 : f32
    %62 = vector.broadcast %cst_53 : f32 to vector<256x128xf32>
    %63 = arith.maximumf %62, %61 : vector<256x128xf32>
    %64 = vector.broadcast %cst_54 : f32 to vector<256x128xf32>
    %65 = arith.minimumf %64, %63 : vector<256x128xf32>
    %66 = arith.mulf %59, %65 : vector<256x128xf32>
    %cst_55 = arith.constant 0.166666672 : f32
    %67 = vector.broadcast %cst_55 : f32 to vector<256x128xf32>
    %68 = arith.mulf %66, %67 : vector<256x128xf32>
    %c0_56 = arith.constant 0 : index
    %c0_57 = arith.constant 0 : index
    %c0_58 = arith.constant 0 : index
    %c0_59 = arith.constant 0 : index
    %69 = vector.load %arg2[%c0_56, %c0_57, %c0_58, %c0_59] : memref<1x16x16x128xf32, #tpu.memory_space<vmem>>, vector<1x16x16x128xf32>
    %70 = vector.shape_cast %69 : vector<1x16x16x128xf32> to vector<16x16x128xf32>
    %71 = vector.shape_cast %70 : vector<16x16x128xf32> to vector<256x128xf32>
    %72 = arith.addf %68, %71 : vector<256x128xf32>
    %73 = vector.shape_cast %72 : vector<256x128xf32> to vector<16x16x128xf32>
    %c0_60 = arith.constant 0 : index
    %c0_61 = arith.constant 0 : index
    %c0_62 = arith.constant 0 : index
    %c0_63 = arith.constant 0 : index
    %74 = vector.load %arg9[%c0_60, %c0_61, %c0_62, %c0_63] : memref<1x16x16x128xf32, #tpu.memory_space<vmem>>, vector<1x16x16x128xf32>
    %75 = vector.shape_cast %74 : vector<1x16x16x128xf32> to vector<16x16x128xf32>
    %76 = vector.shape_cast %73 : vector<16x16x128xf32> to vector<1x16x16x128xf32>
    tpu.vector_store %arg9[%c0_60, %c0_61, %c0_62, %c0_63], %76 {strides = array<i32>} : memref<1x16x16x128xf32, #tpu.memory_space<vmem>>, vector<1x16x16x128xf32>,
    return
  }
  func.func @transform_0(%arg0: i32, %arg1: i32) -> (i32, i32, i32, i32) {
    %c0_i32 = arith.constant 0 : i32
    %c0_i32_0 = arith.constant 0 : i32
    %c0_i32_1 = arith.constant 0 : i32
    return %arg0, %arg1, %c0_i32, %c0_i32_0 : i32, i32, i32, i32
  }
  func.func @transform_1(%arg0: i32, %arg1: i32) -> (i32, i32, i32, i32) {
    %c16_i32 = arith.constant 16 : i32
    %0 = arith.muli %arg1, %c16_i32 : i32
    %c1_i32 = arith.constant 1 : i32
    %1 = arith.subi %0, %c1_i32 : i32
    %c0_i32 = arith.constant 0 : i32
    %2 = arith.maxsi %1, %c0_i32 : i32
    %c0_i32_0 = arith.constant 0 : i32
    %c0_i32_1 = arith.constant 0 : i32
    %c0_i32_2 = arith.constant 0 : i32
    return %arg0, %2, %c0_i32_0, %c0_i32_1 : i32, i32, i32, i32
  }
  func.func @transform_2(%arg0: i32, %arg1: i32) -> (i32, i32, i32, i32) {
    %c16_i32 = arith.constant 16 : i32
    %0 = arith.muli %arg1, %c16_i32 : i32
    %c16_i32_0 = arith.constant 16 : i32
    %1 = arith.addi %0, %c16_i32_0 : i32
    %c15_i32 = arith.constant 15 : i32
    %2 = arith.minsi %1, %c15_i32 : i32
    %c0_i32 = arith.constant 0 : i32
    %c0_i32_1 = arith.constant 0 : i32
    %c0_i32_2 = arith.constant 0 : i32
    return %arg0, %2, %c0_i32, %c0_i32_1 : i32, i32, i32, i32
  }
  func.func @transform_3(%arg0: i32, %arg1: i32) -> (i32, i32) {
    %c0_i32 = arith.constant 0 : i32
    %c0_i32_0 = arith.constant 0 : i32
    %c0_i32_1 = arith.constant 0 : i32
    return %c0_i32, %c0_i32_0 : i32, i32
  }
  func.func @transform_4(%arg0: i32, %arg1: i32) -> (i32, i32) {
    %c0_i32 = arith.constant 0 : i32
    %c0_i32_0 = arith.constant 0 : i32
    %c0_i32_1 = arith.constant 0 : i32
    return %c0_i32, %c0_i32_0 : i32, i32
  }
  func.func @transform_5(%arg0: i32, %arg1: i32) -> (i32, i32, i32) {
    %c0_i32 = arith.constant 0 : i32
    %c0_i32_0 = arith.constant 0 : i32
    %c0_i32_1 = arith.constant 0 : i32
    %c0_i32_2 = arith.constant 0 : i32
    return %c0_i32, %c0_i32_0, %c0_i32_1 : i32, i32, i32
  }
  func.func @transform_6(%arg0: i32, %arg1: i32) -> (i32, i32) {
    %c0_i32 = arith.constant 0 : i32
    %c0_i32_0 = arith.constant 0 : i32
    %c0_i32_1 = arith.constant 0 : i32
    return %c0_i32, %c0_i32_0 : i32, i32
  }
  func.func @transform_7(%arg0: i32, %arg1: i32) -> (i32, i32, i32, i32) {
    %c0_i32 = arith.constant 0 : i32
    %c0_i32_0 = arith.constant 0 : i32
    %c0_i32_1 = arith.constant 0 : i32
    return %arg0, %arg1, %c0_i32, %c0_i32_0 : i32, i32, i32, i32
  }
}

</mosaic_0001>

<bundles_post_ra>
// kernel: bottleneck_forward.1
= control target key start
LH: loop header
LB: loop body
LE: loop exit
PB: predicated region body
PF: predicated region fallthrough
CT: control target
= control target key end

     0   :  { %s4952_s24 = smov 0   ;;  %s4954_s1 = smov 0   ;;  %s6188_s0 = inlined_call_operand.vmem [shape: f32[2,16,16,128], index: 0, kind: input, shape index: {}, may-alias: {0,1,2}]   ;;  %s6189_s1 = inlined_call_operand.vmem [shape: f32[2,16,16,128], index: 1, kind: input, shape index: {}, may-alias: {0,1,2}]   ;;  %s6190_s2 = inlined_call_operand.vmem [shape: f32[2,16,16,128], index: 2, kind: input, shape index: {}, may-alias: {0,1,2}]   ;;  %s6191_s3 = inlined_call_operand.vmem [shape: bf16[128,128], index: 3, kind: input, shape index: {}]   ;;  %s6192_s4 = inlined_call_operand.vmem [shape: f32[1,128], index: 4, kind: input, shape index: {}]   ;;  %s6193_s5 = inlined_call_operand.vmem [shape: bf16[3,384,128], index: 5, kind: input, shape index: {}]   ;;  %s6194_s6 = inlined_call_operand.vmem [shape: f32[1,128], index: 6, kind: input, shape index: {}]   ;;  %s6195_s7 = inlined_call_operand.vmem [shape: f32[2,16,16,128], index: 7, kind: output, shape index: {}]  }
   0x1   :  { %s4956_s2 = smov 0  }
   0x2 LB: > { %s29_s25 = sadd.s32 1, %s4905_s1  ;;  %p3781_p0 = scmp.ge.s32.totalorder %s4909_s2, 1  ;;  %s4909_s2 = sphi %s4956_s2, %s17_s2   ;;  %s4905_s1 = sphi %s4954_s1, %s6205_s1   ;;  %s4901_s24 = sphi %s4952_s24, %s6204_s24  }
   0x3   : > { %p31_p1 = scmp.ge.s32.totalorder %s29_s25, 2  ;;  %p323_p2 = scmp.lt.s32.totalorder %s4909_s2, 3 }
   0x5   : > { %s6207_s25 = smov (%p31_p1, %s29_s25), 0  ;;  %p324_p3 = pnand %p3781_p0, %p323_p2 }
   0x6   : > { %v4802_v0 = vld [vmem:[%s6191_s3] sm:$0xff] (!%p324_p3)   ;;  %p392_p4 = scmp.lt.s32.totalorder (!%p324_p3), %s4901_s24, 1  ;;  %v4803_v1 = vld [vmem:[%s6191_s3 + $0x8] sm:$0xff] (!%p324_p3)   ;;  %v4804_v2 = vld [vmem:[%s6191_s3 + $0x10] sm:$0xff] (!%p324_p3)   ;;  %vm1049_vm0 = vcmask (!%p324_p3), 1047552   ;;  %vm1100_vm3 = vcmask (!%p324_p3), 1040384  }
   0x7   : > { %327 = sbr.rel (%p324_p3) target bundleno = 867 (0x363), region = 48  ;;  %4425 = vmatprep.subr.bf16.mxu1 (!%p324_p3), %v4802_v0  ;;  %v4805_v3 = vld [vmem:[%s6191_s3 + $0x18] sm:$0xff] (!%p324_p3)   ;;  %v4806_v7 = vld [vmem:[%s6191_s3 + $0x20] sm:$0xff] (!%p324_p3)   ;;  %v4807_v8 = vld [vmem:[%s6191_s3 + $0x28] sm:$0xff] (!%p324_p3)   ;;  %vm1050_vm1 = vsmask.f32 (!%p324_p3), 7938 }
   0x8   : > { %4426 = vmatpush3.bf16.msra.mxu1 (!%p324_p3), %v4802_v0  ;;  %v4808_v9 = vld [vmem:[%s6191_s3 + $0x30] sm:$0xff] (!%p324_p3)   ;;  %v4809_v10 = vld [vmem:[%s6191_s3 + $0x38] sm:$0xff] (!%p324_p3)   ;;  %v4810_v56 = vld [vmem:[%s6193_s5 + $0x100] sm:$0xff] (!%p324_p3)   ;;  %vm1199_vm2 = vsmask.f32 (!%p324_p3), 7424  ;;  %vm1249_vm5 = vcmask (!%p324_p3), 1047559  }
   0x9   : > { %4427 = vmatprep.subr.bf16.mxu1 (!%p324_p3), %v4803_v1  ;;  %v4811_v57 = vld [vmem:[%s6193_s5 + $0x140] sm:$0xff] (!%p324_p3)   ;;  %v4813_v59 = vld [vmem:[%s6193_s5 + $0x108] sm:$0xff] (!%p324_p3)   ;;  %v4816_v62 = vld [vmem:[%s6193_s5 + $0x110] sm:$0xff] (!%p324_p3)   ;;  %vm1101_vm4 = vsmask.f32 (!%p324_p3), 256 }
   0xa   : > { %v4812_v58 = vld [vmem:[%s6193_s5 + $0xc0] sm:$0xff] (!%p324_p3)   ;;  %4473 = vmatprep.subr.bf16.mxu0 (!%p324_p3), %v4811_v57  ;;  %v4814_v60 = vld [vmem:[%s6193_s5 + $0x148] sm:$0xff] (!%p324_p3)   ;;  %v4817_v63 = vld [vmem:[%s6193_s5 + $0x150] sm:$0xff] (!%p324_p3)   ;;  %vm1250_vm6 = vsmask.f32 (!%p324_p3), 7966 }
   0xb   : > { %4474 = vmatpush3.bf16.msra.mxu0 (!%p324_p3), %v4811_v57  ;;  %v4815_v61 = vld [vmem:[%s6193_s5 + $0xc8] sm:$0xff] (!%p324_p3)   ;;  %v4818_v0 = vld [vmem:[%s6193_s5 + $0xd0] sm:$0xff] (!%p324_p3)   ;;  %vm5134_vm7 = vmand (!%p324_p3), %vm1049_vm0, %vm1050_vm1 }
   0xc   : > { %4428 = vmatpush3.bf16.msra.mxu1 (!%p324_p3), %v4803_v1  ;;  %4475 = vmatprep.subr.bf16.mxu0 (!%p324_p3), %v4814_v60  ;;  %v4819_v1 = vld [vmem:[%s6193_s5 + $0x118] sm:$0xff] (!%p324_p3)   ;;  %vm5140_vm8 = vmand (!%p324_p3), %vm1049_vm0, %vm1199_vm2 }
   0xd   : > { %4429 = vmatprep.subr.bf16.mxu1 (!%p324_p3), %v4804_v2  ;;  %vm5163_vm9 = vmand (!%p324_p3), %vm1100_vm3, %vm1101_vm4 }
   0xe   : > { %s6209_s24 = smov (!%p392_p4, %s4901_s24), 1  ;;  %vm5169_vm10 = vmand %vm1249_vm5, %vm1250_vm6 }
   0xf   : > { %s3988_s9 = sshll.u32 %s6209_s24, 8  ;;  %4476 = vmatpush3.bf16.msra.mxu0 %v4814_v60 }
  0x10   : > { %s4987_s12 = scalar_lea.vmem %s6188_s0, %s3988_s9  ;;  %4430 = vmatpush3.bf16.msra.mxu1 %v4804_v2  ;;  %4477 = vmatprep.subr.bf16.mxu0 %v4817_v63  ;;  %v4820_v2 = vld [vmem:[%s6193_s5 + $0x158] sm:$0xff]   ;;  %s6066_s23 = scalar_lea.vmem %s6195_s7, %s3988_s9 }
  0x11   : > { %v448_v4 = vld [vmem:[%s4987_s12] sm:$0xff]  ;;  %v449_v5 = vld [vmem:[%s4987_s12 + $0x8] sm:$0xff]  ;;  %4431 = vmatprep.subr.bf16.mxu1 %v4805_v3  ;;  %v450_v11 = vld [vmem:[%s4987_s12 + $0x10] sm:$0xff] }
  0x12   : > { %v480_v6 = vpack.c.bf16 %v449_v5, %v448_v4  ;;  %v451_v12 = vld [vmem:[%s4987_s12 + $0x18] sm:$0xff]  ;;  %v452_v13 = vld [vmem:[%s4987_s12 + $0x20] sm:$0xff]  ;;  %v453_v14 = vld [vmem:[%s4987_s12 + $0x28] sm:$0xff] }
  0x13   : > { %v481_v15 = vpack.c.bf16 %v451_v12, %v450_v11  ;;  %v482_v16 = vpack.c.bf16 %v453_v14, %v452_v13  ;;  %v454_v17 = vld [vmem:[%s4987_s12 + $0x30] sm:$0xff]  ;;  %v455_v18 = vld [vmem:[%s4987_s12 + $0x38] sm:$0xff]  ;;  %v456_v19 = vld [vmem:[%s4987_s12 + $0x40] sm:$0xff]  ;;  %4478 = vmatpush3.bf16.msra.mxu0 %v4817_v63 }
  0x14   : > { %4441 = vmatprep.mubr.bf16.mxu1 %v480_v6  ;;  %4432 = vmatpush3.bf16.msra.mxu1 %v4805_v3  ;;  %v457_v20 = vld [vmem:[%s4987_s12 + $0x48] sm:$0xff]  ;;  %v483_v21 = vpack.c.bf16 %v455_v18, %v454_v17  ;;  %v458_v23 = vld [vmem:[%s4987_s12 + $0x50] sm:$0xff]  ;;  %v459_v24 = vld [vmem:[%s4987_s12 + $0x58] sm:$0xff]  ;;  %v4911_v18 = vmov 0  }
  0x15   : > { %4433 = vmatprep.subr.bf16.mxu1 %v4806_v7  ;;  %v484_v22 = vpack.c.bf16 %v457_v20, %v456_v19  ;;  %v460_v25 = vld [vmem:[%s4987_s12 + $0x60] sm:$0xff]  ;;  %v461_v26 = vld [vmem:[%s4987_s12 + $0x68] sm:$0xff]  ;;  %v485_v27 = vpack.c.bf16 %v459_v24, %v458_v23  ;;  %v462_v29 = vld [vmem:[%s4987_s12 + $0x70] sm:$0xff]  ;;  %4479 = vmatprep.subr.bf16.mxu0 %v4820_v2  ;;  %1459 = vst [vmem:[#allocation2 + $0x8] sm:$0xff] %v4911_v18 }
  0x16   : > { %v486_v28 = vpack.c.bf16 %v461_v26, %v460_v25  ;;  %v463_v30 = vld [vmem:[%s4987_s12 + $0x78] sm:$0xff]  ;;  %v464_v31 = vld [vmem:[%s4987_s12 + $0x80] sm:$0xff]  ;;  %v465_v32 = vld [vmem:[%s4987_s12 + $0x88] sm:$0xff] }
  0x17   : > { %v487_v33 = vpack.c.bf16 %v463_v30, %v462_v29  ;;  %v488_v34 = vpack.c.bf16 %v465_v32, %v464_v31  ;;  %v466_v35 = vld [vmem:[%s4987_s12 + $0x90] sm:$0xff]  ;;  %v467_v36 = vld [vmem:[%s4987_s12 + $0x98] sm:$0xff]  ;;  %v468_v37 = vld [vmem:[%s4987_s12 + $0xa0] sm:$0xff]  ;;  %4480 = vmatpush3.bf16.msra.mxu0 %v4820_v2 }
  0x18   : > { %4434 = vmatpush3.bf16.msra.mxu1 %v4806_v7  ;;  %v469_v38 = vld [vmem:[%s4987_s12 + $0xa8] sm:$0xff]  ;;  %v489_v39 = vpack.c.bf16 %v467_v36, %v466_v35  ;;  %v470_v41 = vld [vmem:[%s4987_s12 + $0xb0] sm:$0xff]  ;;  %v471_v42 = vld [vmem:[%s4987_s12 + $0xb8] sm:$0xff] }
  0x19   : > { %4435 = vmatprep.subr.bf16.mxu1 %v4807_v8  ;;  %v490_v40 = vpack.c.bf16 %v469_v38, %v468_v37  ;;  %v472_v43 = vld [vmem:[%s4987_s12 + $0xc0] sm:$0xff]  ;;  %v473_v44 = vld [vmem:[%s4987_s12 + $0xc8] sm:$0xff]  ;;  %v491_v45 = vpack.c.bf16 %v471_v42, %v470_v41  ;;  %v474_v47 = vld [vmem:[%s4987_s12 + $0xd0] sm:$0xff] }
  0x1a   : > { %v492_v46 = vpack.c.bf16 %v473_v44, %v472_v43  ;;  %v475_v48 = vld [vmem:[%s4987_s12 + $0xd8] sm:$0xff]  ;;  %v476_v49 = vld [vmem:[%s4987_s12 + $0xe0] sm:$0xff]  ;;  %v477_v50 = vld [vmem:[%s4987_s12 + $0xe8] sm:$0xff] }
  0x1b   : > { %v493_v51 = vpack.c.bf16 %v475_v48, %v474_v47  ;;  %v494_v52 = vpack.c.bf16 %v477_v50, %v476_v49  ;;  %v478_v53 = vld [vmem:[%s4987_s12 + $0xf0] sm:$0xff]  ;;  %v479_v54 = vld [vmem:[%s4987_s12 + $0xf8] sm:$0xff]  ;;  %v4822_v4 = vld [vmem:[%s6193_s5 + $0x120] sm:$0xff]  }
  0x1c   : > { %4436 = vmatpush3.bf16.msra.mxu1 %v4807_v8  ;;  %v495_v55 = vpack.c.bf16 %v479_v54, %v478_v53  ;;  %v4821_v3 = vld [vmem:[%s6193_s5 + $0xd8] sm:$0xff]   ;;  %v4823_v5 = vld [vmem:[%s6193_s5 + $0x160] sm:$0xff]   ;;  %v4825_v7 = vld [vmem:[%s6193_s5 + $0x128] sm:$0xff]  }
  0x1d   : > { %4437 = vmatprep.subr.bf16.mxu1 %v4808_v9  ;;  %v4824_v6 = vld [vmem:[%s6193_s5 + $0xe0] sm:$0xff]   ;;  %4481 = vmatprep.subr.bf16.mxu0 %v4823_v5  ;;  %v4826_v8 = vld [vmem:[%s6193_s5 + $0x168] sm:$0xff]   ;;  %v4829_v11 = vld [vmem:[%s6193_s5 + $0x170] sm:$0xff]  }
  0x1e   : > { %4482 = vmatpush3.bf16.msra.mxu0 %v4823_v5  ;;  %v4830_v12 = vld [vmem:[%s6193_s5 + $0xf0] sm:$0xff]   ;;  %v4831_v13 = vld [vmem:[%s6193_s5 + $0x138] sm:$0xff]   ;;  %v4850_v17 = vld [vmem:[%s6193_s5 + $0x1c0] sm:$0xff]  }
  0x1f   : > { %4483 = vmatprep.subr.bf16.mxu0 %v4826_v8  ;;  %v4832_v14 = vld [vmem:[%s6193_s5 + $0x178] sm:$0xff]   ;;  %v5117_v19 = vld [vmem:[%s6192_s4] ss:$0 sm:$0xff] }
  0x20   : > { %4438 = vmatpush3.bf16.msra.mxu1 %v4808_v9  ;;  %v4827_v9 = vld [vmem:[%s6193_s5 + $0xe8] sm:$0xff]  }
  0x21   : > { %4439 = vmatprep.subr.bf16.mxu1 %v4809_v10 }
  0x22   : > { %4484 = vmatpush3.bf16.msra.mxu0 %v4826_v8 }
  0x23   : > { %4485 = vmatprep.subr.bf16.mxu0 %v4829_v11 }
  0x24   : > { %4440 = vmatpush3.bf16.msra.mxu1 %v4809_v10  ;;  %v4828_v10 = vld [vmem:[%s6193_s5 + $0x130] sm:$0xff]  }
  0x25   : > { %4017 = vmatprep.subr.bf16.mxu1 %v4810_v56 }
  0x26   : > { %4486 = vmatpush3.bf16.msra.mxu0 %v4829_v11 }
  0x27   : > { %4442 = vmatmul.mubr.bf16.vlgmr.msra.gmra.mrb[0].mxu1 %v481_v15  ;;  %v4833_v15 = vld [vmem:[%s6193_s5 + $0xf8] sm:$0xff]   ;;  %4487 = vmatprep.subr.bf16.mxu0 %v4832_v14 }
  0x28   : > { %4445 = vmatprep.mubr.bf16.mxu1 %v482_v16  ;;  %4018 = vmatpush3.bf16.msra.mxu1 %v4812_v58  ;;  %v4834_v16 = vld [vmem:[%s6193_s5 + $0x40] sm:$0xff]  }
  0x29   : > { %4019 = vmatprep.subr.bf16.mxu1 %v4813_v59 }
  0x2a   : > { %4488 = vmatpush3.bf16.msra.mxu0 %v4832_v14 }
  0x2b   : > { %4153 = vmatprep.subr.bf16.mxu0 %v4834_v16 }
  0x2c   : > { %4020 = vmatpush3.bf16.msra.mxu1 %v4815_v61 }
  0x2d   : > { %4021 = vmatprep.subr.bf16.mxu1 %v4816_v62 }
  0x2f   : > { %4446 = vmatmul.mubr.bf16.gmra.mrb[4].mxu1 %v483_v21 }
  0x30   : > { %4449 = vmatprep.mubr.bf16.mxu1 %v484_v22  ;;  %4022 = vmatpush3.bf16.msra.mxu1 %v4818_v0 }
  0x31   : > { %4023 = vmatprep.subr.bf16.mxu1 %v4819_v1 }
  0x34   : > { %4024 = vmatpush3.bf16.msra.mxu1 %v4821_v3 }
  0x35   : > { %4025 = vmatprep.subr.bf16.mxu1 %v4822_v4 }
  0x37   : > { %4450 = vmatmul.mubr.bf16.gmra.mrb[8].mxu1 %v485_v27 }
  0x38   : > { %4453 = vmatprep.mubr.bf16.mxu1 %v486_v28  ;;  %4026 = vmatpush3.bf16.msra.mxu1 %v4824_v6 }
  0x39   : > { %4027 = vmatprep.subr.bf16.mxu1 %v4825_v7 }
  0x3c   : > { %4028 = vmatpush3.bf16.msra.mxu1 %v4827_v9 }
  0x3d   : > { %4029 = vmatprep.subr.bf16.mxu1 %v4828_v10 }
  0x3f   : > { %4454 = vmatmul.mubr.bf16.gmra.mrb[12].mxu1 %v487_v33 }
  0x40   : > { %4457 = vmatprep.mubr.bf16.mxu1 %v488_v34  ;;  %4030 = vmatpush3.bf16.msra.mxu1 %v4830_v12 }
  0x41   : > { %4031 = vmatprep.subr.bf16.mxu1 %v4831_v13 }
  0x44   : > { %4032 = vmatpush3.bf16.msra.mxu1 %v4833_v15 }
  0x45   : > { %4289 = vmatprep.subr.bf16.mxu1 %v4850_v17 }
  0x47   : > { %4458 = vmatmul.mubr.bf16.gmra.mrb[16].mxu1 %v489_v39 }
  0x48   : > { %4461 = vmatprep.mubr.bf16.mxu1 %v490_v40 }
  0x4f   : > { %4462 = vmatmul.mubr.bf16.gmra.mrb[20].mxu1 %v491_v45 }
  0x50   : > { %4465 = vmatprep.mubr.bf16.mxu1 %v492_v46 }
  0x57   : > { %4466 = vmatmul.mubr.bf16.gmra.mrb[24].mxu1 %v493_v51 }
  0x58   : > { %4469 = vmatprep.mubr.bf16.mxu1 %v494_v52 }
  0x5f   : > { %4470 = vmatmul.mubr.bf16.gmra.mrb[28].mxu1 %v495_v55 }
  0xfa   : > { %v4443_v20 = vpop.f32.mrb[0].mxu1 }
  0xfb   : > { %v610_v21 = vadd.f32 %v4443_v20, %v5117_v19  ;;  %v601_v22 = vpop.f32.mrb[1].mxu1 }
  0xfc   : > { %v602_v23 = vadd.f32 %v5117_v19, %v601_v22  ;;  %v4444_v24 = vpop.f32.mrb[2].mxu1  ;;  %v1055_v22 = vld [vmem:[#allocation2 + $0x30] sm:$0xff] }
  0xfd   : > { %v730_v25 = vadd.f32 3.0, %v610_v21  ;;  %v613_v26 = vadd.f32 %v4444_v24, %v5117_v19  ;;  %v604_v27 = vpop.f32.mrb[3].mxu1  ;;  %v1204_v24 = vld [vmem:[#allocation2 + $0x40] sm:$0xff] }
  0xfe   : > { %v728_v28 = vadd.f32 3.0, %v602_v23  ;;  %v605_v29 = vadd.f32 %v5117_v19, %v604_v27 }
  0xff   : > { %v762_v30 = vmax.f32 %v730_v25, 0.0  ;;  %v731_v31 = vadd.f32 3.0, %v613_v26 }
 0x100   : > { %v760_v32 = vmax.f32 %v728_v28, 0.0  ;;  %v729_v33 = vadd.f32 3.0, %v605_v29 }
 0x101   : > { %v794_v34 = vmin.f32 %v762_v30, 6.0  ;;  %v763_v35 = vmax.f32 %v731_v31, 0.0  ;;  %v1052_v31 = vld [vmem:[#allocation2 + $0x18] sm:$0xff] }
 0x102   : > { %v792_v36 = vmin.f32 %v760_v32, 6.0  ;;  %v761_v37 = vmax.f32 %v729_v33, 0.0  ;;  %v4447_v38 = vpop.f32.mrb[4].mxu1  ;;  %v1201_v32 = vld [vmem:[#allocation2 + $0x28] sm:$0xff] }
 0x103   : > { %v826_v39 = vmul.f32 %v794_v34, %v610_v21  ;;  %v795_v40 = vmin.f32 %v763_v35, 6.0  ;;  %v626_v41 = vadd.f32 %v4447_v38, %v5117_v19  ;;  %v617_v42 = vpop.f32.mrb[5].mxu1 }
 0x104   : > { %v824_v43 = vmul.f32 %v792_v36, %v602_v23  ;;  %v793_v44 = vmin.f32 %v761_v37, 6.0  ;;  %v618_v45 = vadd.f32 %v5117_v19, %v617_v42  ;;  %v4448_v46 = vpop.f32.mrb[6].mxu1 }
 0x105   : > { %v827_v47 = vmul.f32 %v795_v40, %v613_v26  ;;  %v734_v48 = vadd.f32 3.0, %v626_v41  ;;  %v629_v49 = vadd.f32 %v4448_v46, %v5117_v19  ;;  %v620_v50 = vpop.f32.mrb[7].mxu1  ;;  %v858_v54 = vmul.f32 0.16666667, %v826_v39 }
 0x106   : > { %v825_v51 = vmul.f32 %v793_v44, %v605_v29  ;;  %v732_v52 = vadd.f32 3.0, %v618_v45  ;;  %v621_v53 = vadd.f32 %v5117_v19, %v620_v50  ;;  %v856_v58 = vmul.f32 0.16666667, %v824_v43 }
 0x107   : > { %v859_v55 = vmul.f32 0.16666667, %v827_v47  ;;  %v766_v56 = vmax.f32 %v734_v48, 0.0  ;;  %v735_v57 = vadd.f32 3.0, %v629_v49 }
 0x108   : > { %v857_v59 = vmul.f32 0.16666667, %v825_v51  ;;  %v764_v60 = vmax.f32 %v732_v52, 0.0  ;;  %v733_v61 = vadd.f32 3.0, %v621_v53 }
 0x109   : > { %v5127_v62 = vpack.c.bf16 %v859_v55, %v858_v54  ;;  %v798_v63 = vmin.f32 %v766_v56, 6.0  ;;  %v767_v0 = vmax.f32 %v735_v57, 0.0 }
 0x10a   : > { %v888_v1 = vpack.c.bf16 %v857_v59, %v856_v58  ;;  %v796_v2 = vmin.f32 %v764_v60, 6.0  ;;  %v765_v3 = vmax.f32 %v733_v61, 0.0  ;;  %v4451_v4 = vpop.f32.mrb[8].mxu1 }
 0x10b   : > { %906 = vst [vmem:[#allocation2 + $0x38] sm:$0xff] %v5127_v62  ;;  %v929_v5 = vshrl.u32 %v5127_v62, 16  ;;  %v932_v6 = vshll.u32 %v5127_v62, 16  ;;  %v830_v7 = vmul.f32 %v798_v63, %v626_v41  ;;  %v799_v8 = vmin.f32 %v767_v0, 6.0  ;;  %v633_v9 = vpop.f32.mrb[9].mxu1 }
 0x10c   : > { %905 = vst [vmem:[#allocation2 + $0x20] sm:$0xff] %v888_v1  ;;  %v922_v10 = vshrl.u32 %v888_v1, 16  ;;  %v925_v11 = vshll.u32 %v888_v1, 16  ;;  %v828_v12 = vmul.f32 %v796_v2, %v618_v45  ;;  %v797_v13 = vmin.f32 %v765_v3, 6.0  ;;  %v4452_v14 = vpop.f32.mrb[10].mxu1  ;;  %1992 = vmatprep.mubr.bf16.mxu1 %v888_v1  ;;  %v1061_v1 = vld [vmem:[#allocation2 + $0x60] sm:$0xff] }
 0x10d   : > { %v931_v15 = vrot.slane %v929_v5, 7  ;;  %v1153_v17 = vrot.slane %v932_v6, 1  ;;  %v862_v18 = vmul.f32 0.16666667, %v830_v7  ;;  %v831_v20 = vmul.f32 %v799_v8, %v629_v49  ;;  %v636_v21 = vpop.f32.mrb[11].mxu1  ;;  %v1210_v2 = vld [vmem:[#allocation2 + $0x70] sm:$0xff] }
 0x10e   : > { %v924_v25 = vrot.slane %v922_v10, 7  ;;  %v1151_v26 = vrot.slane %v925_v11, 1  ;;  %v860_v27 = vmul.f32 0.16666667, %v828_v12  ;;  %v829_v28 = vmul.f32 %v797_v13, %v621_v53  ;;  %v5659_v7 = vld [vmem:[#allocation2 + $0x8] sm:$0xff] }
 0x10f   : > { %v934_v29 = vor.u32 %v932_v6, %v931_v15  ;;  %v1154_v30 = vor.u32 %v1153_v17, %v929_v5  ;;  %v863_v33 = vmul.f32 0.16666667, %v831_v20  ;;  %v642_v34 = vadd.f32 %v4451_v4, %v5117_v19 }
 0x110   : > { %v927_v35 = vor.u32 %v925_v11, %v924_v25  ;;  %v1152_v36 = vor.u32 %v1151_v26, %v922_v10  ;;  %v861_v37 = vmul.f32 0.16666667, %v829_v28  ;;  %v634_v38 = vadd.f32 %v5117_v19, %v633_v9  ;;  %v1058_v10 = vld [vmem:[#allocation2 + $0x48] sm:$0xff]  ;;  %v1207_v11 = vld [vmem:[#allocation2 + $0x58] sm:$0xff] }
 0x111   : > { %v1056_v39 = vsel %vm5134_vm7, %v934_v29, %v1055_v22  ;;  %v1205_v40 = vsel %vm5140_vm8, %v1154_v30, %v1204_v24  ;;  %v891_v41 = vpack.c.bf16 %v863_v33, %v862_v18  ;;  %v738_v42 = vadd.f32 3.0, %v642_v34 }
 0x112   : > { %1057 = vst [vmem:[#allocation2 + $0x30] sm:$0xff] %v1056_v39  ;;  %1206 = vst [vmem:[#allocation2 + $0x40] sm:$0xff] %v1205_v40  ;;  %v1053_v43 = vsel %vm5134_vm7, %v927_v35, %v1052_v31  ;;  %v1202_v44 = vsel %vm5140_vm8, %v1152_v36, %v1201_v32  ;;  %v5154_v45 = vpack.c.bf16 %v861_v37, %v860_v27  ;;  %v736_v46 = vadd.f32 3.0, %v634_v38  ;;  %v4455_v47 = vpop.f32.mrb[12].mxu1 }
 0x113   : > { %1054 = vst [vmem:[#allocation2 + $0x18] sm:$0xff] %v1053_v43  ;;  %1203 = vst [vmem:[#allocation2 + $0x28] sm:$0xff] %v1202_v44  ;;  %v943_v48 = vshrl.u32 %v891_v41, 16  ;;  %v946_v49 = vshll.u32 %v891_v41, 16  ;;  %v770_v50 = vmax.f32 %v738_v42, 0.0  ;;  %v645_v51 = vadd.f32 %v4452_v14, %v5117_v19  ;;  %v649_v52 = vpop.f32.mrb[13].mxu1 }
 0x114   : > { %908 = vst [vmem:[#allocation2 + $0x68] sm:$0xff] %v891_v41  ;;  %907 = vst [vmem:[#allocation2 + $0x50] sm:$0xff] %v5154_v45  ;;  %v936_v53 = vshrl.u32 %v5154_v45, 16  ;;  %v939_v54 = vshll.u32 %v5154_v45, 16  ;;  %v768_v55 = vmax.f32 %v736_v46, 0.0  ;;  %v637_v56 = vadd.f32 %v5117_v19, %v636_v21  ;;  %v4456_v57 = vpop.f32.mrb[14].mxu1 }
 0x115   : > { %v945_v58 = vrot.slane %v943_v48, 7  ;;  %v1157_v59 = vrot.slane %v946_v49, 1  ;;  %v802_v60 = vmin.f32 %v770_v50, 6.0  ;;  %v739_v61 = vadd.f32 3.0, %v645_v51  ;;  %v652_v63 = vpop.f32.mrb[15].mxu1 }
 0x116   : > { %v938_v3 = vrot.slane %v936_v53, 7  ;;  %v1155_v4 = vrot.slane %v939_v54, 1  ;;  %v800_v5 = vmin.f32 %v768_v55, 6.0  ;;  %v737_v6 = vadd.f32 3.0, %v637_v56 }
 0x117   : > { %v948_v8 = vor.u32 %v946_v49, %v945_v58  ;;  %v1158_v9 = vor.u32 %v1157_v59, %v943_v48  ;;  %v834_v12 = vmul.f32 %v802_v60, %v642_v34  ;;  %v771_v13 = vmax.f32 %v739_v61, 0.0  ;;  %v4851_v59 = vld [vmem:[%s6193_s5 + $0x180] sm:$0xff]  }
 0x118   : > { %v941_v14 = vor.u32 %v939_v54, %v938_v3  ;;  %v1156_v15 = vor.u32 %v1155_v4, %v936_v53  ;;  %v832_v17 = vmul.f32 %v800_v5, %v634_v38  ;;  %v769_v18 = vmax.f32 %v737_v6, 0.0 }
 0x119   : > { %v1106_v20 = vld [vmem:[#allocation2 + $0x30] sm:$0x1]  ;;  %v1255_v21 = vld [vmem:[#allocation2 + $0x40] sm:$0x80]  ;;  %v1062_v22 = vsel %vm5134_vm7, %v948_v8, %v1061_v1  ;;  %v1211_v24 = vsel %vm5140_vm8, %v1158_v9, %v1210_v2  ;;  %v866_v25 = vmul.f32 0.16666667, %v834_v12  ;;  %v658_v26 = vadd.f32 %v4455_v47, %v5117_v19 }
 0x11a   : > { %v1107_v27 = vsel %vm5163_vm9, 0, %v1106_v20  ;;  %v1256_v28 = vsel %vm5169_vm10, 0, %v1255_v21  ;;  %v1103_v29 = vld [vmem:[#allocation2 + $0x18] sm:$0x1]  ;;  %v1252_v30 = vld [vmem:[#allocation2 + $0x28] sm:$0x80]  ;;  %v1059_v31 = vsel %vm5134_vm7, %v941_v14, %v1058_v10  ;;  %v1208_v32 = vsel %vm5140_vm8, %v1156_v15, %v1207_v11 }
 0x11b   : > { %1063 = vst [vmem:[#allocation2 + $0x60] sm:$0xff] %v1062_v22  ;;  %1212 = vst [vmem:[#allocation2 + $0x70] sm:$0xff] %v1211_v24  ;;  %v1104_v33 = vsel %vm5163_vm9, 0, %v1103_v29  ;;  %v1253_v34 = vsel %vm5169_vm10, 0, %v1252_v30  ;;  %v864_v35 = vmul.f32 0.16666667, %v832_v17  ;;  %v5191_v40 = vadd.f32 %v5117_v19, %v649_v52 }
 0x11c   : > { %1108 = vst [vmem:[#allocation2 + $0x30] sm:$0x1] %v1107_v27  ;;  %1257 = vst [vmem:[#allocation2 + $0x40] sm:$0x80] %v1256_v28  ;;  %v803_v36 = vmin.f32 %v771_v13, 6.0  ;;  %v4459_v37 = vpop.f32.mrb[16].mxu1  ;;  %v5194_v41 = vadd.f32 %v4456_v57, %v5117_v19  ;;  %v5197_v44 = vadd.f32 %v5117_v19, %v652_v63 }
 0x11d   : > { %1060 = vst [vmem:[#allocation2 + $0x48] sm:$0xff] %v1059_v31  ;;  %1209 = vst [vmem:[#allocation2 + $0x58] sm:$0xff] %v1208_v32  ;;  %v801_v38 = vmin.f32 %v769_v18, 6.0  ;;  %v742_v39 = vadd.f32 3.0, %v658_v26  ;;  %v665_v42 = vpop.f32.mrb[17].mxu1  ;;  %v5200_v46 = vadd.f32 %v4459_v37, %v5117_v19  ;;  %v740_v52 = vadd.f32 3.0, %v5191_v40 }
 0x11e   : > { %1105 = vst [vmem:[#allocation2 + $0x18] sm:$0x1] %v1104_v33  ;;  %1254 = vst [vmem:[#allocation2 + $0x28] sm:$0x80] %v1253_v34  ;;  %v835_v43 = vmul.f32 %v803_v36, %v645_v51  ;;  %v5203_v47 = vadd.f32 %v5117_v19, %v665_v42  ;;  %v4460_v48 = vpop.f32.mrb[18].mxu1  ;;  %v743_v53 = vadd.f32 3.0, %v5194_v41 }
 0x11f   : > { %v833_v49 = vmul.f32 %v801_v38, %v637_v56  ;;  %v774_v50 = vmax.f32 %v742_v39, 0.0  ;;  %v5207_v54 = vpop.f32.mrb[19].mxu1  ;;  %v741_v51 = vadd.f32 3.0, %v5197_v44  ;;  %v746_v57 = vadd.f32 3.0, %v5200_v46  ;;  %v4853_v1 = vld [vmem:[%s6193_s5 + $0x1c8] sm:$0xff]   ;;  %v4835_v15 = vld [vmem:[%s6193_s5] sm:$0xff]  }
 0x120   : > { %v867_v55 = vmul.f32 0.16666667, %v835_v43  ;;  %v5212_v58 = vadd.f32 3.0, %v5203_v47  ;;  %v772_v61 = vmax.f32 %v740_v52, 0.0  ;;  %v775_v63 = vmax.f32 %v743_v53, 0.0  ;;  %v1067_v27 = vld [vmem:[#allocation2 + $0x90] sm:$0xff] }
 0x121   : > { %v865_v56 = vmul.f32 0.16666667, %v833_v49  ;;  %v806_v60 = vmin.f32 %v774_v50, 6.0  ;;  %v773_v5 = vmax.f32 %v741_v51, 0.0  ;;  %v778_v6 = vmax.f32 %v746_v57, 0.0  ;;  %v1216_v28 = vld [vmem:[#allocation2 + $0xa0] sm:$0xff] }
 0x122   : > { %v1112_v2 = vld [vmem:[#allocation2 + $0x60] sm:$0x1]  ;;  %v1261_v3 = vld [vmem:[#allocation2 + $0x70] sm:$0x80]  ;;  %v893_v4 = vpack.c.bf16 %v867_v55, %v866_v25  ;;  %v5221_v8 = vadd.f32 %v4460_v48, %v5117_v19  ;;  %v5236_v22 = vpop.f32.mrb[20].mxu1  ;;  %v4836_v25 = vld [vmem:[%s6193_s5 + $0x48] sm:$0xff]  }
 0x123   : > { %v1113_v9 = vsel %vm5163_vm9, 0, %v1112_v2  ;;  %v1262_v10 = vsel %vm5169_vm10, 0, %v1261_v3  ;;  %v5227_v13 = vpack.c.bf16 %v865_v56, %v864_v35  ;;  %v838_v14 = vmul.f32 %v806_v60, %v658_v26  ;;  %v4854_v26 = vld [vmem:[%s6193_s5 + $0x188] sm:$0xff]   ;;  %v681_v33 = vpop.f32.mrb[21].mxu1  ;;  %v1724_v52 = vld [vmem:[#allocation2 + $0x40] sm:$0xff]  ;;  %v4856_v53 = vld [vmem:[%s6193_s5 + $0x1d0] sm:$0xff]  }
 0x124   : > { %v1109_v11 = vld [vmem:[#allocation2 + $0x48] sm:$0x1]  ;;  %v1258_v12 = vld [vmem:[#allocation2 + $0x58] sm:$0x80]  ;;  %1114 = vst [vmem:[#allocation2 + $0x60] sm:$0x1] %v1113_v9 }
 0x125   : > { %1263 = vst [vmem:[#allocation2 + $0x70] sm:$0x80] %v1262_v10  ;;  %v1110_v17 = vsel %vm5163_vm9, 0, %v1109_v11  ;;  %v1259_v18 = vsel %vm5169_vm10, 0, %v1258_v12  ;;  %910 = vst [vmem:[#allocation2 + $0x98] sm:$0xff] %v893_v4  ;;  %v957_v20 = vshrl.u32 %v893_v4, 16 }
 0x126   : > { %v960_v21 = vshll.u32 %v893_v4, 16  ;;  %v5238_v24 = vld [vmem:[#allocation2 + $0x18] sm:$0xff]  ;;  %1111 = vst [vmem:[#allocation2 + $0x48] sm:$0x1] %v1110_v17  ;;  %1260 = vst [vmem:[#allocation2 + $0x58] sm:$0x80] %v1259_v18 }
 0x127   : > { %909 = vst [vmem:[#allocation2 + $0x80] sm:$0xff] %v5227_v13  ;;  %v950_v29 = vshrl.u32 %v5227_v13, 16  ;;  %v953_v30 = vshll.u32 %v5227_v13, 16  ;;  %v870_v31 = vmul.f32 0.16666667, %v838_v14  ;;  %v804_v32 = vmin.f32 %v772_v61, 6.0  ;;  %1993 = vmatmul.mubr.bf16.vlgmr.msra.gmra.mrb[32].mxu1 %v5238_v24 }
 0x128   : > { %v959_v34 = vrot.slane %v957_v20, 7  ;;  %v1161_v35 = vrot.slane %v960_v21, 1  ;;  %v807_v36 = vmin.f32 %v775_v63, 6.0  ;;  %v805_v37 = vmin.f32 %v773_v5, 6.0  ;;  %v4464_v38 = vpop.f32.mrb[22].mxu1  ;;  %v1721_v39 = vld [vmem:[#allocation2 + $0x28] sm:$0xff]  ;;  %2000 = vmatprep.mubr.bf16.mxu1 %v5127_v62  ;;  %4290 = vmatpush3.bf16.msra.mxu1 %v4851_v59 }
 0x129   : > { %v952_v42 = vrot.slane %v950_v29, 7  ;;  %v1159_v43 = vrot.slane %v953_v30, 1  ;;  %v836_v48 = vmul.f32 %v804_v32, %v5191_v40  ;;  %v810_v49 = vmin.f32 %v778_v6, 6.0  ;;  %4489 = vmatprep.mubr.bf16.mxu0 %v1721_v39  ;;  %v5252_v50 = vpop.f32.mrb[23].mxu1  ;;  %4291 = vmatprep.subr.bf16.mxu1 %v4853_v1  ;;  %v1064_v57 = vld [vmem:[#allocation2 + $0x78] sm:$0xff]  ;;  %v1213_v56 = vld [vmem:[#allocation2 + $0x88] sm:$0xff] }
 0x12a   : > { %v962_v55 = vor.u32 %v960_v21, %v959_v34  ;;  %v1162_v51 = vor.u32 %v1161_v35, %v957_v20  ;;  %v839_v62 = vmul.f32 %v807_v36, %v5194_v41  ;;  %v837_v59 = vmul.f32 %v805_v37, %v5197_v44  ;;  %4490 = vmatmul.mubr.bf16.vlgmr.msra.gmra.mrb[0].mxu0 %v1724_v52  ;;  %v4837_v41 = vld [vmem:[%s6193_s5 + $0x8] sm:$0xff]   ;;  %v5274_v9 = vpop.f32.mrb[24].mxu1  ;;  %v4838_v10 = vld [vmem:[%s6193_s5 + $0x50] sm:$0xff]   ;;  %v4859_v21 = vld [vmem:[%s6193_s5 + $0x1d8] sm:$0xff]  }
 0x12b   : > { %v955_v40 = vor.u32 %v953_v30, %v952_v42  ;;  %v1160_v60 = vor.u32 %v1159_v43, %v950_v29  ;;  %v868_v61 = vmul.f32 0.16666667, %v836_v48  ;;  %v842_v63 = vmul.f32 %v810_v49, %v5200_v46  ;;  %4154 = vmatpush3.bf16.msra.mxu0 %v4835_v15  ;;  %v4857_v11 = vld [vmem:[%s6193_s5 + $0x190] sm:$0xff]   ;;  %v5291_v17 = vpop.f32.mrb[25].mxu1  ;;  %v1073_v34 = vld [vmem:[#allocation2 + $0xc0] sm:$0xff]  ;;  %v4860_v43 = vld [vmem:[%s6193_s5 + $0x198] sm:$0xff]  }
 0x12c   : > { %v1068_v1 = vsel %vm5134_vm7, %v962_v55, %v1067_v27  ;;  %v1217_v2 = vsel %vm5140_vm8, %v1162_v51, %v1216_v28  ;;  %v871_v3 = vmul.f32 0.16666667, %v839_v62  ;;  %v869_v4 = vmul.f32 0.16666667, %v837_v59  ;;  %4155 = vmatprep.subr.bf16.mxu0 %v4836_v25  ;;  %4292 = vmatpush3.bf16.msra.mxu1 %v4854_v26  ;;  %v5293_v18 = vld [vmem:[#allocation2 + $0x30] sm:$0xff]  ;;  %v5308_v28 = vpop.f32.mrb[26].mxu1 }
 0x12d   : > { %1069 = vst [vmem:[#allocation2 + $0x90] sm:$0xff] %v1068_v1  ;;  %1218 = vst [vmem:[#allocation2 + $0xa0] sm:$0xff] %v1217_v2  ;;  %v1065_v44 = vsel %vm5134_vm7, %v955_v40, %v1064_v57  ;;  %v1214_v46 = vsel %vm5140_vm8, %v1160_v60, %v1213_v56  ;;  %v5271_v5 = vmul.f32 0.16666667, %v842_v63  ;;  %v776_v6 = vmax.f32 %v5212_v58, 0.0  ;;  %4293 = vmatprep.subr.bf16.mxu1 %v4856_v53  ;;  %v1727_v20 = vld [vmem:[#allocation2 + $0x58] sm:$0xff] }
 0x12e   : > { %1066 = vst [vmem:[#allocation2 + $0x78] sm:$0xff] %v1065_v44  ;;  %1215 = vst [vmem:[#allocation2 + $0x88] sm:$0xff] %v1214_v46  ;;  %v5282_v12 = vpack.c.bf16 %v871_v3, %v870_v31  ;;  %v5284_v14 = vpack.c.bf16 %v869_v4, %v868_v61  ;;  %v747_v15 = vadd.f32 3.0, %v5221_v8  ;;  %v5289_v58 = vadd.f32 %v5117_v19, %v5207_v54  ;;  %v5317_v32 = vpop.f32.mrb[27].mxu1  ;;  %v1222_v35 = vld [vmem:[#allocation2 + $0xd0] sm:$0xff]  ;;  %v1219_v55 = vld [vmem:[#allocation2 + $0xb8] sm:$0xff] }
 0x12f   : > { %v808_v25 = vmin.f32 %v776_v6, 6.0  ;;  %v5300_v26 = vadd.f32 %v5236_v22, %v5117_v19  ;;  %v5303_v27 = vadd.f32 %v5117_v19, %v681_v33  ;;  %v5306_v54 = vadd.f32 %v4464_v38, %v5117_v19  ;;  %2001 = vmatmul.mubr.bf16.gmra.mrb[36].mxu1 %v5293_v18  ;;  %4493 = vmatprep.mubr.bf16.mxu0 %v1727_v20  ;;  %v4839_v33 = vld [vmem:[%s6193_s5 + $0x10] sm:$0xff]   ;;  %v4862_v51 = vld [vmem:[%s6193_s5 + $0x1e0] sm:$0xff]   ;;  %v4841_v40 = vld [vmem:[%s6193_s5 + $0x18] sm:$0xff]  }
 0x130   : > { %912 = vst [vmem:[#allocation2 + $0xc8] sm:$0xff] %v5282_v12  ;;  %v971_v29 = vshrl.u32 %v5282_v12, 16  ;;  %v974_v30 = vshll.u32 %v5282_v12, 16  ;;  %911 = vst [vmem:[#allocation2 + $0xb0] sm:$0xff] %v5284_v14  ;;  %v964_v22 = vshrl.u32 %v5284_v14, 16  ;;  %v967_v31 = vshll.u32 %v5284_v14, 16  ;;  %2008 = vmatprep.mubr.bf16.mxu1 %v5154_v45  ;;  %4156 = vmatpush3.bf16.msra.mxu0 %v4837_v41 }
 0x131   : > { %v840_v36 = vmul.f32 %v808_v25, %v5203_v47  ;;  %v779_v37 = vmax.f32 %v747_v15, 0.0  ;;  %v745_v38 = vadd.f32 3.0, %v5289_v58  ;;  %v750_v39 = vadd.f32 3.0, %v5300_v26  ;;  %v1730_v42 = vld [vmem:[#allocation2 + $0x70] sm:$0xff]  ;;  %4157 = vmatprep.subr.bf16.mxu0 %v4838_v10  ;;  %v4840_v45 = vld [vmem:[%s6193_s5 + $0x58] sm:$0xff]   ;;  %4294 = vmatpush3.bf16.msra.mxu1 %v4857_v11  ;;  %v1070_v47 = vld [vmem:[#allocation2 + $0xa8] sm:$0xff] }
 0x132   : > { %v973_v48 = vrot.slane %v971_v29, 7  ;;  %v1165_v49 = vrot.slane %v974_v30, 1  ;;  %v966_v52 = vrot.slane %v964_v22, 7  ;;  %v1163_v53 = vrot.slane %v967_v31, 1  ;;  %4494 = vmatmul.mubr.bf16.gmra.mrb[4].mxu0 %v1730_v42  ;;  %4295 = vmatprep.subr.bf16.mxu1 %v4859_v21  ;;  %v4842_v4 = vld [vmem:[%s6193_s5 + $0x60] sm:$0xff]   ;;  %v5360_v25 = vpop.f32.mrb[28].mxu1 }
 0x133   : > { %v5335_v57 = vmul.f32 0.16666667, %v840_v36  ;;  %v811_v56 = vmin.f32 %v779_v37, 6.0  ;;  %v777_v62 = vmax.f32 %v745_v38, 0.0  ;;  %v782_v59 = vmax.f32 %v750_v39, 0.0  ;;  %v4864_v36 = vld [vmem:[%s6193_s5 + $0x1e8] sm:$0xff]  }
 0x134   : > { %v1118_v60 = vld [vmem:[#allocation2 + $0x90] sm:$0x1]  ;;  %v1267_v61 = vld [vmem:[#allocation2 + $0xa0] sm:$0x80]  ;;  %v976_v63 = vor.u32 %v974_v30, %v973_v48  ;;  %v1166_v1 = vor.u32 %v1165_v49, %v971_v29  ;;  %v969_v2 = vor.u32 %v967_v31, %v966_v52  ;;  %v1164_v3 = vor.u32 %v1163_v53, %v964_v22  ;;  %4158 = vmatpush3.bf16.msra.mxu0 %v4839_v33 }
 0x135   : > { %v1119_v41 = vsel %vm5163_vm9, 0, %v1118_v60  ;;  %v1268_v44 = vsel %vm5169_vm10, 0, %v1267_v61  ;;  %v1115_v46 = vld [vmem:[#allocation2 + $0x78] sm:$0x1]  ;;  %v1264_v6 = vld [vmem:[#allocation2 + $0x88] sm:$0x80]  ;;  %v843_v10 = vmul.f32 %v811_v56, %v5221_v8  ;;  %v5350_v11 = vadd.f32 %v5117_v19, %v5252_v50  ;;  %4159 = vmatprep.subr.bf16.mxu0 %v4840_v45  ;;  %4296 = vmatpush3.bf16.msra.mxu1 %v4860_v43 }
 0x136   : > { %1120 = vst [vmem:[#allocation2 + $0x90] sm:$0x1] %v1119_v41  ;;  %1269 = vst [vmem:[#allocation2 + $0xa0] sm:$0x80] %v1268_v44  ;;  %v1116_v15 = vsel %vm5163_vm9, 0, %v1115_v46  ;;  %v1265_v20 = vsel %vm5169_vm10, 0, %v1264_v6  ;;  %v1074_v21 = vsel %vm5134_vm7, %v976_v63, %v1073_v34  ;;  %v1223_v8 = vsel %vm5140_vm8, %v1166_v1, %v1222_v35  ;;  %4297 = vmatprep.subr.bf16.mxu1 %v4862_v51 }
 0x137   : > { %v5362_v50 = vld [vmem:[#allocation2 + $0x48] sm:$0xff]  ;;  %v4863_v29 = vld [vmem:[%s6193_s5 + $0x1a0] sm:$0xff]   ;;  %1117 = vst [vmem:[#allocation2 + $0x78] sm:$0x1] %v1116_v15  ;;  %1266 = vst [vmem:[#allocation2 + $0x88] sm:$0x80] %v1265_v20  ;;  %v1071_v30 = vsel %vm5134_vm7, %v969_v2, %v1070_v47  ;;  %v1220_v22 = vsel %vm5140_vm8, %v1164_v3, %v1219_v55  ;;  %v5394_v52 = vadd.f32 %v5274_v9, %v5117_v19 }
 0x138   : > { %1075 = vst [vmem:[#allocation2 + $0xc0] sm:$0xff] %v1074_v21  ;;  %1224 = vst [vmem:[#allocation2 + $0xd0] sm:$0xff] %v1223_v8  ;;  %v875_v31 = vmul.f32 0.16666667, %v843_v10  ;;  %v809_v33 = vmin.f32 %v777_v62, 6.0  ;;  %v5371_v34 = vpop.f32.mrb[29].mxu1  ;;  %2009 = vmatmul.mubr.bf16.gmra.mrb[40].mxu1 %v5362_v50  ;;  %4160 = vmatpush3.bf16.msra.mxu0 %v4841_v40  ;;  %v5398_v47 = vadd.f32 %v5117_v19, %v5291_v17 }
 0x139   : > { %v5374_v35 = vld [vmem:[#allocation2 + $0x68] sm:$0xff]  ;;  %1072 = vst [vmem:[#allocation2 + $0xa8] sm:$0xff] %v1071_v30  ;;  %1221 = vst [vmem:[#allocation2 + $0xb8] sm:$0xff] %v1220_v22  ;;  %v814_v37 = vmin.f32 %v782_v59, 6.0  ;;  %v748_v38 = vadd.f32 3.0, %v5303_v27  ;;  %v751_v39 = vadd.f32 3.0, %v5306_v54  ;;  %4161 = vmatprep.subr.bf16.mxu0 %v4842_v4  ;;  %4298 = vmatpush3.bf16.msra.mxu1 %v4863_v29 }
 0x13a   : > { %v749_v42 = vadd.f32 3.0, %v5350_v11  ;;  %v5382_v45 = vpop.f32.mrb[30].mxu1  ;;  %2016 = vmatprep.mubr.bf16.mxu1 %v5374_v35  ;;  %v4843_v43 = vld [vmem:[%s6193_s5 + $0x20] sm:$0xff]   ;;  %v5389_v48 = vpack.c.bf16 %v875_v31, %v5271_v5  ;;  %v841_v49 = vmul.f32 %v809_v33, %v5289_v58  ;;  %v4844_v55 = vld [vmem:[%s6193_s5 + $0x68] sm:$0xff]   ;;  %v754_v40 = vadd.f32 3.0, %v5394_v52  ;;  %4299 = vmatprep.subr.bf16.mxu1 %v4864_v36  ;;  %v1079_v60 = vld [vmem:[#allocation2 + $0xf0] sm:$0xff] }
 0x13b   : > { %v5400_v53 = vpop.f32.mrb[31].mxu1  ;;  %v846_v5 = vmul.f32 %v814_v37, %v5300_v26  ;;  %v780_v51 = vmax.f32 %v748_v38, 0.0  ;;  %v783_v56 = vmax.f32 %v751_v39, 0.0  ;;  %v4865_v9 = vld [vmem:[%s6193_s5 + $0x1a8] sm:$0xff]   ;;  %v1228_v61 = vld [vmem:[#allocation2 + $0x100] sm:$0xff]  ;;  %v4846_v41 = vld [vmem:[%s6193_s5 + $0x70] sm:$0xff]  }
 0x13c   : > { %v781_v58 = vmax.f32 %v749_v42, 0.0  ;;  %914 = vst [vmem:[#allocation2 + $0xf8] sm:$0xff] %v5389_v48  ;;  %v985_v17 = vshrl.u32 %v5389_v48, 16  ;;  %v988_v62 = vshll.u32 %v5389_v48, 16  ;;  %v873_v59 = vmul.f32 0.16666667, %v841_v49  ;;  %4162 = vmatpush3.bf16.msra.mxu0 %v4843_v43 }
 0x13d   : > { %v4845_v26 = vld [vmem:[%s6193_s5 + $0x28] sm:$0xff]   ;;  %v878_v63 = vmul.f32 0.16666667, %v846_v5  ;;  %v812_v1 = vmin.f32 %v780_v51, 6.0  ;;  %v815_v2 = vmin.f32 %v783_v56, 6.0  ;;  %v5416_v4 = vld [vmem:[#allocation2 + $0x60] sm:$0xff]  ;;  %4163 = vmatprep.subr.bf16.mxu0 %v4844_v55  ;;  %4300 = vmatpush3.bf16.msra.mxu1 %v4865_v9 }
 0x13e   : > { %v813_v3 = vmin.f32 %v781_v58, 6.0  ;;  %v4866_v44 = vld [vmem:[%s6193_s5 + $0x1f0] sm:$0xff]   ;;  %v987_v46 = vrot.slane %v985_v17, 7  ;;  %v1169_v6 = vrot.slane %v988_v62, 1  ;;  %v5425_v10 = vpack.c.bf16 %v873_v59, %v5335_v57  ;;  %v5427_v20 = vld [vmem:[#allocation2 + $0xa0] sm:$0xff]  ;;  %v4868_v8 = vld [vmem:[%s6193_s5 + $0x1f8] sm:$0xff]  }
 0x13f   : > { %v786_v15 = vmax.f32 %v754_v40, 0.0  ;;  %v4867_v21 = vld [vmem:[%s6193_s5 + $0x1b0] sm:$0xff]   ;;  %v1124_v29 = vld [vmem:[#allocation2 + $0xc0] sm:$0x1]  ;;  %v844_v22 = vmul.f32 %v812_v1, %v5303_v27  ;;  %v847_v31 = vmul.f32 %v815_v2, %v5306_v54  ;;  %v752_v33 = vadd.f32 3.0, %v5398_v47  ;;  %v5439_v36 = vld [vmem:[#allocation2 + $0x88] sm:$0xff]  ;;  %4301 = vmatprep.subr.bf16.mxu1 %v4866_v44 }
 0x140   : > { %v1273_v30 = vld [vmem:[#allocation2 + $0xd0] sm:$0x80]  ;;  %v845_v57 = vmul.f32 %v813_v3, %v5350_v11  ;;  %v1125_v37 = vsel %vm5163_vm9, 0, %v1124_v29  ;;  %v1121_v39 = vld [vmem:[#allocation2 + $0xa8] sm:$0x1]  ;;  %v990_v43 = vor.u32 %v988_v62, %v987_v46  ;;  %v1170_v49 = vor.u32 %v1169_v6, %v985_v17  ;;  %913 = vst [vmem:[#allocation2 + $0xe0] sm:$0xff] %v5425_v10  ;;  %4497 = vmatprep.mubr.bf16.mxu0 %v5439_v36 }
 0x141   : > { %v1274_v38 = vsel %vm5169_vm10, 0, %v1273_v30  ;;  %v1270_v42 = vld [vmem:[#allocation2 + $0xb8] sm:$0x80]  ;;  %2017 = vmatmul.mubr.bf16.gmra.mrb[44].mxu1 %v5416_v4  ;;  %1126 = vst [vmem:[#allocation2 + $0xc0] sm:$0x1] %v1125_v37  ;;  %v1122_v27 = vsel %vm5163_vm9, 0, %v1121_v39  ;;  %4498 = vmatmul.mubr.bf16.gmra.mrb[8].mxu0 %v5427_v20  ;;  %v5473_v3 = vadd.f32 %v5308_v28, %v5117_v19  ;;  %v5477_v44 = vadd.f32 %v5117_v19, %v5317_v32 }
 0x142   : > { %1275 = vst [vmem:[#allocation2 + $0xd0] sm:$0x80] %v1274_v38  ;;  %v1271_v54 = vsel %vm5169_vm10, 0, %v1270_v42  ;;  %v978_v11 = vshrl.u32 %v5425_v10, 16  ;;  %v981_v55 = vshll.u32 %v5425_v10, 16  ;;  %2024 = vmatprep.mubr.bf16.mxu1 %v5227_v13  ;;  %v1080_v5 = vsel %vm5134_vm7, %v990_v43, %v1079_v60  ;;  %4164 = vmatpush3.bf16.msra.mxu0 %v4845_v26  ;;  %v4847_v9 = vld [vmem:[%s6193_s5 + $0x30] sm:$0xff]  }
 0x143   : > { %1123 = vst [vmem:[#allocation2 + $0xa8] sm:$0x1] %v1122_v27  ;;  %1272 = vst [vmem:[#allocation2 + $0xb8] sm:$0x80] %v1271_v54  ;;  %v1229_v51 = vsel %vm5140_vm8, %v1170_v49, %v1228_v61  ;;  %v876_v56 = vmul.f32 0.16666667, %v844_v22  ;;  %4165 = vmatprep.subr.bf16.mxu0 %v4846_v41  ;;  %4302 = vmatpush3.bf16.msra.mxu1 %v4867_v21 }
 0x144   : > { %v879_v58 = vmul.f32 0.16666667, %v847_v31  ;;  %v4848_v17 = vld [vmem:[%s6193_s5 + $0x78] sm:$0xff]   ;;  %1081 = vst [vmem:[#allocation2 + $0xf0] sm:$0xff] %v1080_v5  ;;  %1230 = vst [vmem:[#allocation2 + $0x100] sm:$0xff] %v1229_v51  ;;  %v980_v13 = vrot.slane %v978_v11, 7  ;;  %4303 = vmatprep.subr.bf16.mxu1 %v4868_v8 }
 0x145   : > { %v1167_v62 = vrot.slane %v981_v55, 1  ;;  %v877_v59 = vmul.f32 0.16666667, %v845_v57  ;;  %v818_v40 = vmin.f32 %v786_v15, 6.0  ;;  %v4869_v26 = vld [vmem:[%s6193_s5 + $0x1b8] sm:$0xff]   ;;  %v1225_v61 = vld [vmem:[#allocation2 + $0xe8] sm:$0xff] }
 0x146   : > { %v1076_v60 = vld [vmem:[#allocation2 + $0xd8] sm:$0xff]  ;;  %v5469_v1 = vpack.c.bf16 %v879_v58, %v878_v63  ;;  %v784_v2 = vmax.f32 %v752_v33, 0.0  ;;  %v983_v41 = vor.u32 %v981_v55, %v980_v13  ;;  %v755_v28 = vadd.f32 3.0, %v5473_v3  ;;  %4166 = vmatpush3.bf16.msra.mxu0 %v4847_v9  ;;  %v1085_v30 = vld [vmem:[#allocation2 + $0x120] sm:$0xff]  ;;  %v1234_v22 = vld [vmem:[#allocation2 + $0x130] sm:$0xff] }
 0x147   : > { %v1168_v46 = vor.u32 %v1167_v62, %v978_v11  ;;  %v5479_v6 = vpack.c.bf16 %v877_v59, %v876_v56  ;;  %v850_v15 = vmul.f32 %v818_v40, %v5394_v52  ;;  %v4849_v32 = vld [vmem:[%s6193_s5 + $0x38] sm:$0xff]   ;;  %4167 = vmatprep.subr.bf16.mxu0 %v4848_v17  ;;  %v5501_v37 = vld [vmem:[%s6193_s5 + $0x80] sm:$0xff]   ;;  %4304 = vmatpush3.bf16.msra.mxu1 %v4869_v26  ;;  %v1082_v42 = vld [vmem:[#allocation2 + $0x108] sm:$0xff]  ;;  %v753_v51 = vadd.f32 3.0, %v5477_v44 }
 0x148   : > { %916 = vst [vmem:[#allocation2 + $0x128] sm:$0xff] %v5469_v1  ;;  %v999_v63 = vshrl.u32 %v5469_v1, 16  ;;  %v1002_v21 = vshll.u32 %v5469_v1, 16  ;;  %v816_v29 = vmin.f32 %v784_v2, 6.0  ;;  %v1077_v8 = vsel %vm5134_vm7, %v983_v41, %v1076_v60  ;;  %v5496_v33 = vld [vmem:[#allocation2 + $0x78] sm:$0xff] }
 0x149   : > { %v1226_v52 = vsel %vm5140_vm8, %v1168_v46, %v1225_v61  ;;  %915 = vst [vmem:[#allocation2 + $0x110] sm:$0xff] %v5479_v6  ;;  %v992_v31 = vshrl.u32 %v5479_v6, 16  ;;  %v995_v57 = vshll.u32 %v5479_v6, 16  ;;  %1078 = vst [vmem:[#allocation2 + $0xd8] sm:$0xff] %v1077_v8  ;;  %v882_v43 = vmul.f32 0.16666667, %v850_v15  ;;  %2025 = vmatmul.mubr.bf16.gmra.mrb[48].mxu1 %v5496_v33 }
 0x14a   : > { %1227 = vst [vmem:[#allocation2 + $0xe8] sm:$0xff] %v1226_v52  ;;  %v1001_v38 = vrot.slane %v999_v63, 7  ;;  %v1173_v39 = vrot.slane %v1002_v21, 1  ;;  %v848_v49 = vmul.f32 %v816_v29, %v5398_v47  ;;  %v5505_v27 = vld [vmem:[#allocation2 + $0x98] sm:$0xff]  ;;  %v787_v5 = vmax.f32 %v755_v28, 0.0  ;;  %v5516_v62 = vld [vmem:[#allocation2 + $0xd0] sm:$0xff]  ;;  %4168 = vmatpush3.bf16.msra.mxu0 %v4849_v32 }
 0x14b   : > { %v994_v54 = vrot.slane %v992_v31, 7  ;;  %v1171_v11 = vrot.slane %v995_v57, 1  ;;  %v1231_v55 = vld [vmem:[#allocation2 + $0x118] sm:$0xff]  ;;  %2032 = vmatprep.mubr.bf16.mxu1 %v5505_v27  ;;  %v1130_v58 = vld [vmem:[#allocation2 + $0xf0] sm:$0x1]  ;;  %v5513_v47 = vadd.f32 %v5360_v25, %v5117_v19  ;;  %4521 = vmatprep.subr.bf16.mxu0 %v5501_v37  ;;  %v785_v2 = vmax.f32 %v753_v51, 0.0 }
 0x14c   : > { %v5508_v56 = vld [vmem:[#allocation2 + $0xb8] sm:$0xff]  ;;  %v1279_v9 = vld [vmem:[#allocation2 + $0x100] sm:$0x80]  ;;  %v1004_v17 = vor.u32 %v1002_v21, %v1001_v38  ;;  %v1174_v13 = vor.u32 %v1173_v39, %v999_v63  ;;  %v1131_v59 = vsel %vm5163_vm9, 0, %v1130_v58  ;;  %v819_v61 = vmin.f32 %v787_v5, 6.0  ;;  %v5544_v52 = vld [vmem:[#allocation2 + $0x90] sm:$0xff] }
 0x14d   : > { %4501 = vmatprep.mubr.bf16.mxu0 %v5508_v56  ;;  %v1280_v40 = vsel %vm5169_vm10, 0, %v1279_v9  ;;  %v997_v26 = vor.u32 %v995_v57, %v994_v54  ;;  %v1172_v60 = vor.u32 %v1171_v11, %v992_v31  ;;  %1132 = vst [vmem:[#allocation2 + $0xf0] sm:$0x1] %v1131_v59  ;;  %v758_v15 = vadd.f32 3.0, %v5513_v47  ;;  %v4882_v63 = vld [vmem:[%s6192_s4] ss:$0 sm:$0xff] }
 0x14e   : > { %4502 = vmatmul.mubr.bf16.gmra.mrb[12].mxu0 %v5516_v62  ;;  %1281 = vst [vmem:[#allocation2 + $0x100] sm:$0x80] %v1280_v40  ;;  %v1086_v19 = vsel %vm5134_vm7, %v1004_v17, %v1085_v30  ;;  %v1235_v25 = vsel %vm5140_vm8, %v1174_v13, %v1234_v22  ;;  %v714_v21 = vadd.f32 %v4882_v63, %v5371_v34  ;;  %v817_v28 = vmin.f32 %v785_v2, 6.0  ;;  %v1091_v2 = vld [vmem:[#allocation2 + $0x150] sm:$0xff] }
 0x14f   : > { %1087 = vst [vmem:[#allocation2 + $0x120] sm:$0xff] %v1086_v19  ;;  %1236 = vst [vmem:[#allocation2 + $0x130] sm:$0xff] %v1235_v25  ;;  %v1083_v41 = vsel %vm5134_vm7, %v997_v26, %v1082_v42  ;;  %v1232_v46 = vsel %vm5140_vm8, %v1172_v60, %v1231_v55  ;;  %v851_v29 = vmul.f32 %v819_v61, %v5473_v3  ;;  %v790_v31 = vmax.f32 %v758_v15, 0.0 }
 0x150   : > { %1084 = vst [vmem:[#allocation2 + $0x108] sm:$0xff] %v1083_v41  ;;  %1233 = vst [vmem:[#allocation2 + $0x118] sm:$0xff] %v1232_v46  ;;  %v5539_v32 = vadd.f32 %v4882_v63, %v5382_v45  ;;  %v5542_v8 = vadd.f32 %v4882_v63, %v5400_v53  ;;  %v1127_v30 = vld [vmem:[#allocation2 + $0xd8] sm:$0x1]  ;;  %v756_v57 = vadd.f32 3.0, %v714_v21  ;;  %v849_v39 = vmul.f32 %v817_v28, %v5477_v44  ;;  %v1240_v41 = vld [vmem:[#allocation2 + $0x160] sm:$0xff] }
 0x151   : > { %v1276_v22 = vld [vmem:[#allocation2 + $0xe8] sm:$0x80]  ;;  %v1128_v34 = vsel %vm5163_vm9, 0, %v1127_v30  ;;  %v883_v3 = vmul.f32 0.16666667, %v851_v29  ;;  %2033 = vmatmul.mubr.bf16.gmra.mrb[52].mxu1 %v5544_v52  ;;  %v822_v5 = vmin.f32 %v790_v31, 6.0 }
 0x152   : > { %v1277_v38 = vsel %vm5169_vm10, 0, %v1276_v22  ;;  %1129 = vst [vmem:[#allocation2 + $0xd8] sm:$0x1] %v1128_v34  ;;  %v788_v45 = vmax.f32 %v756_v57, 0.0  ;;  %v759_v53 = vadd.f32 3.0, %v5539_v32  ;;  %v757_v42 = vadd.f32 3.0, %v5542_v8  ;;  %2040 = vmatprep.mubr.bf16.mxu1 %v5284_v14 }
 0x153   : > { %1278 = vst [vmem:[#allocation2 + $0xe8] sm:$0x80] %v1277_v38  ;;  %v880_v54 = vmul.f32 0.16666667, %v848_v49  ;;  %v5555_v11 = vpack.c.bf16 %v883_v3, %v882_v43  ;;  %v881_v55 = vmul.f32 0.16666667, %v849_v39  ;;  %v854_v63 = vmul.f32 %v822_v5, %v5513_v47 }
 0x154   : > { %v820_v51 = vmin.f32 %v788_v45, 6.0  ;;  %v791_v58 = vmax.f32 %v759_v53, 0.0  ;;  %v789_v9 = vmax.f32 %v757_v42, 0.0  ;;  %v5573_v28 = vld [vmem:[#allocation2 + $0xa8] sm:$0xff]  ;;  %v1088_v45 = vld [vmem:[#allocation2 + $0x138] sm:$0xff] }
 0x155   : > { %918 = vst [vmem:[#allocation2 + $0x158] sm:$0xff] %v5555_v11  ;;  %v1013_v13 = vshrl.u32 %v5555_v11, 16  ;;  %v1016_v59 = vshll.u32 %v5555_v11, 16  ;;  %v5560_v40 = vpack.c.bf16 %v881_v55, %v880_v54  ;;  %v5579_v39 = vld [vmem:[#allocation2 + $0x100] sm:$0xff]  ;;  %v1237_v53 = vld [vmem:[#allocation2 + $0x148] sm:$0xff] }
 0x156   : > { %v1136_v44 = vld [vmem:[#allocation2 + $0x120] sm:$0x1]  ;;  %v1285_v17 = vld [vmem:[#allocation2 + $0x130] sm:$0x80]  ;;  %v852_v29 = vmul.f32 %v820_v51, %v714_v21  ;;  %v823_v31 = vmin.f32 %v791_v58, 6.0  ;;  %v821_v57 = vmin.f32 %v789_v9, 6.0 }
 0x157   : > { %v1137_v14 = vsel %vm5163_vm9, 0, %v1136_v44  ;;  %v1286_v43 = vsel %vm5169_vm10, 0, %v1285_v17  ;;  %v1133_v49 = vld [vmem:[#allocation2 + $0x108] sm:$0x1]  ;;  %v1282_v26 = vld [vmem:[#allocation2 + $0x118] sm:$0x80] }
 0x158   : > { %1138 = vst [vmem:[#allocation2 + $0x120] sm:$0x1] %v1137_v14  ;;  %1287 = vst [vmem:[#allocation2 + $0x130] sm:$0x80] %v1286_v43  ;;  %v1134_v60 = vsel %vm5163_vm9, 0, %v1133_v49  ;;  %v1283_v19 = vsel %vm5169_vm10, 0, %v1282_v26  ;;  %v855_v42 = vmul.f32 %v823_v31, %v5539_v32  ;;  %v853_v54 = vmul.f32 %v821_v57, %v5542_v8 }
 0x159   : > { %v1015_v25 = vrot.slane %v1013_v13, 7  ;;  %v1177_v61 = vrot.slane %v1016_v59, 1  ;;  %1135 = vst [vmem:[#allocation2 + $0x108] sm:$0x1] %v1134_v60  ;;  %1284 = vst [vmem:[#allocation2 + $0x118] sm:$0x80] %v1283_v19  ;;  %2041 = vmatmul.mubr.bf16.gmra.mrb[56].mxu1 %v5573_v28 }
 0x15a   : > { %v1006_v46 = vshrl.u32 %v5560_v40, 16  ;;  %v1009_v15 = vshll.u32 %v5560_v40, 16  ;;  %v5575_v34 = vld [vmem:[#allocation2 + $0xe8] sm:$0xff]  ;;  %2048 = vmatprep.mubr.bf16.mxu1 %v5282_v12  ;;  %v886_v51 = vmul.f32 0.16666667, %v854_v63  ;;  %v1246_v63 = vld [vmem:[#allocation2 + $0x190] sm:$0xff] }
 0x15b   : > { %v1018_v30 = vor.u32 %v1016_v59, %v1015_v25  ;;  %v1178_v22 = vor.u32 %v1177_v61, %v1013_v13  ;;  %4505 = vmatprep.mubr.bf16.mxu0 %v5575_v34  ;;  %v884_v12 = vmul.f32 0.16666667, %v852_v29  ;;  %v887_v58 = vmul.f32 0.16666667, %v855_v42  ;;  %v5600_v59 = vld [vmem:[#allocation2 + $0xc0] sm:$0xff]  ;;  %v1094_v31 = vld [vmem:[#allocation2 + $0x168] sm:$0xff] }
 0x15c   : > { %v1008_v38 = vrot.slane %v1006_v46, 7  ;;  %v1175_v3 = vrot.slane %v1009_v15, 1  ;;  %4506 = vmatmul.mubr.bf16.gmra.mrb[16].mxu0 %v5579_v39  ;;  %v885_v9 = vmul.f32 0.16666667, %v853_v54  ;;  %v1243_v57 = vld [vmem:[#allocation2 + $0x178] sm:$0xff] }
 0x15d   : > { %v1092_v47 = vsel %vm5134_vm7, %v1018_v30, %v1091_v2  ;;  %v1241_v21 = vsel %vm5140_vm8, %v1178_v22, %v1240_v41  ;;  %v5593_v32 = vpack.c.bf16 %v887_v58, %v886_v51  ;;  %v5627_v51 = vld [vmem:[#allocation2 + $0xd8] sm:$0xff]  ;;  %v5633_v58 = vld [vmem:[#allocation2 + $0xf0] sm:$0xff] }
 0x15e   : > { %1093 = vst [vmem:[#allocation2 + $0x150] sm:$0xff] %v1092_v47  ;;  %1242 = vst [vmem:[#allocation2 + $0x160] sm:$0xff] %v1241_v21  ;;  %v1011_v55 = vor.u32 %v1009_v15, %v1008_v38  ;;  %v1176_v5 = vor.u32 %v1175_v3, %v1006_v46  ;;  %v5595_v8 = vpack.c.bf16 %v885_v9, %v884_v12  ;;  %v1097_v15 = vld [vmem:[#allocation2 + $0x180] sm:$0xff] }
 0x15f   : > { %v1027_v14 = vshrl.u32 %v5593_v32, 16  ;;  %v1030_v43 = vshll.u32 %v5593_v32, 16  ;;  %v5607_v60 = vld [vmem:[#allocation2 + $0x130] sm:$0xff] }
 0x160   : > { %v1089_v44 = vsel %vm5134_vm7, %v1011_v55, %v1088_v45  ;;  %v1238_v17 = vsel %vm5140_vm8, %v1176_v5, %v1237_v53  ;;  %v5597_v13 = vld [vmem:[#allocation2 + $0x118] sm:$0xff]  ;;  %v1020_v49 = vshrl.u32 %v5595_v8, 16  ;;  %v1023_v26 = vshll.u32 %v5595_v8, 16 }
 0x161   : > { %1090 = vst [vmem:[#allocation2 + $0x138] sm:$0xff] %v1089_v44  ;;  %1239 = vst [vmem:[#allocation2 + $0x148] sm:$0xff] %v1238_v17  ;;  %4509 = vmatprep.mubr.bf16.mxu0 %v5597_v13  ;;  %2049 = vmatmul.mubr.bf16.gmra.mrb[60].mxu1 %v5600_v59  ;;  %v1029_v61 = vrot.slane %v1027_v14, 7  ;;  %v1181_v2 = vrot.slane %v1030_v43, 1 }
 0x162   : > { %2056 = vmatprep.mubr.bf16.mxu1 %v5425_v10  ;;  %v1022_v29 = vrot.slane %v1020_v49, 7  ;;  %v1179_v30 = vrot.slane %v1023_v26, 1 }
 0x163   : > { %v1032_v22 = vor.u32 %v1030_v43, %v1029_v61  ;;  %v1182_v10 = vor.u32 %v1181_v2, %v1027_v14  ;;  %v4855_v61 = vld [vmem:[%s6193_s5 + $0x88] sm:$0xff]   ;;  %v1627_v2 = vld [vmem:[#allocation2 + $0x20] sm:$0xff] }
 0x164   : > { %4510 = vmatmul.mubr.bf16.gmra.mrb[20].mxu0 %v5607_v60  ;;  %v1025_v47 = vor.u32 %v1023_v26, %v1022_v29  ;;  %v1180_v21 = vor.u32 %v1179_v30, %v1020_v49  ;;  %v5649_v26 = vld [vmem:[#allocation2 + $0x108] sm:$0xff] }
 0x165   : > { %v1142_v19 = vld [vmem:[#allocation2 + $0x150] sm:$0x1]  ;;  %v1291_v25 = vld [vmem:[#allocation2 + $0x160] sm:$0x80]  ;;  %v1098_v42 = vsel %vm5134_vm7, %v1032_v22, %v1097_v15  ;;  %v1247_v54 = vsel %vm5140_vm8, %v1182_v10, %v1246_v63  ;;  %v4861_v15 = vld [vmem:[%s6193_s5 + $0x98] sm:$0xff]  }
 0x166   : > { %v1143_v41 = vsel %vm5163_vm9, 0, %v1142_v19  ;;  %v1292_v46 = vsel %vm5169_vm10, 0, %v1291_v25  ;;  %1099 = vst [vmem:[#allocation2 + $0x180] sm:$0xff] %v1098_v42  ;;  %1248 = vst [vmem:[#allocation2 + $0x190] sm:$0xff] %v1247_v54  ;;  %v1095_v55 = vsel %vm5134_vm7, %v1025_v47, %v1094_v31  ;;  %v1244_v5 = vsel %vm5140_vm8, %v1180_v21, %v1243_v57  ;;  %v5662_v25 = vld [vmem:[#allocation2 + $0x120] sm:$0xff]  ;;  %v4871_v30 = vld [vmem:[%s6193_s5 + $0xa8] sm:$0xff]  }
 0x167   : > { %1144 = vst [vmem:[#allocation2 + $0x150] sm:$0x1] %v1143_v41  ;;  %1293 = vst [vmem:[#allocation2 + $0x160] sm:$0x80] %v1292_v46  ;;  %v4858_v41 = vld [vmem:[%s6193_s5 + $0x90] sm:$0xff]   ;;  %v4870_v63 = vld [vmem:[%s6193_s5 + $0xa0] sm:$0xff]  }
 0x168   : > { %v1139_v38 = vld [vmem:[#allocation2 + $0x138] sm:$0x1]  ;;  %v1288_v3 = vld [vmem:[#allocation2 + $0x148] sm:$0x80]  ;;  %1096 = vst [vmem:[#allocation2 + $0x168] sm:$0xff] %v1095_v55  ;;  %1245 = vst [vmem:[#allocation2 + $0x178] sm:$0xff] %v1244_v5 }
 0x169   : > { %v1140_v45 = vsel %vm5163_vm9, 0, %v1139_v38  ;;  %v1289_v53 = vsel %vm5169_vm10, 0, %v1288_v3  ;;  %2057 = vmatmul.mubr.bf16.gmra.mrb[64].mxu1 %v5627_v51  ;;  %v4872_v22 = vld [vmem:[%s6193_s5 + $0xb0] sm:$0xff]   ;;  %v4873_v31 = vld [vmem:[%s6193_s5 + $0xb8] sm:$0xff]   ;;  %v5708_v57 = vld [vmem:[%s6193_s5 + $0x200] sm:$0xff]  }
 0x16a   : > { %1141 = vst [vmem:[#allocation2 + $0x138] sm:$0x1] %v1140_v45  ;;  %1290 = vst [vmem:[#allocation2 + $0x148] sm:$0x80] %v1289_v53  ;;  %2064 = vmatprep.mubr.bf16.mxu1 %v5389_v48  ;;  %v1639_v3 = vld [vmem:[#allocation2 + $0x80] sm:$0xff]  ;;  %v1645_v47 = vld [vmem:[#allocation2 + $0xb0] sm:$0xff] }
 0x16b   : > { %v1648_v21 = vld [vmem:[#allocation2 + $0xc8] sm:$0xff]  ;;  %v4884_v45 = vld [vmem:[#allocation2 + $0x40] sm:$0xff]  ;;  %v4876_v42 = vld [vmem:[%s6193_s5 + $0x210] sm:$0xff]  }
 0x16d   : > { %v1148_v9 = vld [vmem:[#allocation2 + $0x180] sm:$0x1]  ;;  %v1297_v44 = vld [vmem:[#allocation2 + $0x190] sm:$0x80] }
 0x16e   : > { %v5631_v12 = vld [vmem:[#allocation2 + $0x160] sm:$0xff]  ;;  %v1149_v16 = vsel %vm5163_vm9, 0, %v1148_v9  ;;  %v1298_v23 = vsel %vm5169_vm10, 0, %v1297_v44  ;;  %v5685_v29 = vld [vmem:[#allocation2 + $0x150] sm:$0xff]  ;;  %v4877_v9 = vld [vmem:[%s6193_s5 + $0x218] sm:$0xff]  }
 0x16f   : > { %v1145_v14 = vld [vmem:[#allocation2 + $0x168] sm:$0x1]  ;;  %v1294_v43 = vld [vmem:[#allocation2 + $0x178] sm:$0x80]  ;;  %1150 = vst [vmem:[#allocation2 + $0x180] sm:$0x1] %v1149_v16 }
 0x170   : > { %1299 = vst [vmem:[#allocation2 + $0x190] sm:$0x80] %v1298_v23  ;;  %v1146_v48 = vsel %vm5163_vm9, 0, %v1145_v14  ;;  %v1295_v49 = vsel %vm5169_vm10, 0, %v1294_v43  ;;  %v4885_v44 = vld [vmem:[#allocation2 + $0x58] sm:$0xff]  ;;  %v4886_v16 = vld [vmem:[#allocation2 + $0x70] sm:$0xff] }
 0x171   : > { %v5635_v17 = vld [vmem:[#allocation2 + $0x148] sm:$0xff]  ;;  %2065 = vmatmul.mubr.bf16.gmra.mrb[68].mxu1 %v5633_v58  ;;  %1147 = vst [vmem:[#allocation2 + $0x168] sm:$0x1] %v1146_v48  ;;  %1296 = vst [vmem:[#allocation2 + $0x178] sm:$0x80] %v1295_v49  ;;  %v5674_v46 = vld [vmem:[#allocation2 + $0x138] sm:$0xff] }
 0x172   : > { %4513 = vmatprep.mubr.bf16.mxu0 %v5635_v17  ;;  %2072 = vmatprep.mubr.bf16.mxu1 %v5479_v6  ;;  %v4878_v14 = vld [vmem:[%s6193_s5 + $0x220] sm:$0xff]  }
 0x173   : > { %4514 = vmatmul.mubr.bf16.gmra.mrb[24].mxu0 %v5631_v12 }
 0x176   : > { %v5710_v38 = vld [vmem:[#allocation2 + $0x180] sm:$0xff] }
 0x177   : > { %v5655_v0 = vld [vmem:[#allocation2 + $0x190] sm:$0xff] }
 0x178   : > { %v5651_v19 = vld [vmem:[#allocation2 + $0x178] sm:$0xff]  ;;  %v5696_v10 = vld [vmem:[#allocation2 + $0x168] sm:$0xff] }
 0x179   : > { %2073 = vmatmul.mubr.bf16.gmra.mrb[72].mxu1 %v5649_v26  ;;  %4517 = vmatprep.mubr.bf16.mxu0 %v5651_v19 }
 0x17a   : > { %2080 = vmatprep.mubr.bf16.mxu1 %v5469_v1 }
 0x17b   : > { %4518 = vmatmul.mubr.bf16.gmra.mrb[28].mxu0 %v5655_v0 }
 0x17c   : > { %2458 = vmatprep.mubr.bf16.mxu0 %v5659_v7 }
 0x181   : > { %2081 = vmatmul.mubr.bf16.gmra.mrb[76].mxu1 %v5662_v25 }
 0x182   : > { %2088 = vmatprep.mubr.bf16.mxu1 %v5560_v40 }
 0x183   : > { %2459 = vmatmul.mubr.bf16.vlgmr.msra.gmra.mrb[32].mxu0 %v5659_v7 }
 0x184   : > { %4522 = vmatpush3.bf16.msra.mxu0 %v5501_v37  ;;  %2466 = vmatprep.mubr.bf16.mxu0 %v1627_v2  ;;  %v1630_v37 = vld [vmem:[#allocation2 + $0x38] sm:$0xff] }
 0x185   : > { %4523 = vmatprep.subr.bf16.mxu0 %v4855_v61 }
 0x188   : > { %4524 = vmatpush3.bf16.msra.mxu0 %v4855_v61 }
 0x189   : > { %2089 = vmatmul.mubr.bf16.gmra.mrb[80].mxu1 %v5674_v46  ;;  %4525 = vmatprep.subr.bf16.mxu0 %v4858_v41 }
 0x18a   : > { %2096 = vmatprep.mubr.bf16.mxu1 %v5555_v11 }
 0x18b   : > { %2467 = vmatmul.mubr.bf16.gmra.mrb[36].mxu0 %v5238_v24  ;;  %v1633_v24 = vld [vmem:[#allocation2 + $0x50] sm:$0xff] }
 0x18c   : > { %2474 = vmatprep.mubr.bf16.mxu0 %v1630_v37  ;;  %4526 = vmatpush3.bf16.msra.mxu0 %v4858_v41  ;;  %v4880_v41 = vld [vmem:[%s6193_s5 + $0x230] sm:$0xff]  }
 0x18d   : > { %4527 = vmatprep.subr.bf16.mxu0 %v4861_v15 }
 0x190   : > { %4528 = vmatpush3.bf16.msra.mxu0 %v4861_v15 }
 0x191   : > { %2097 = vmatmul.mubr.bf16.gmra.mrb[84].mxu1 %v5685_v29  ;;  %4529 = vmatprep.subr.bf16.mxu0 %v4870_v63 }
 0x192   : > { %2104 = vmatprep.mubr.bf16.mxu1 %v5595_v8 }
 0x193   : > { %2475 = vmatmul.mubr.bf16.gmra.mrb[40].mxu0 %v5293_v18 }
 0x194   : > { %2482 = vmatprep.mubr.bf16.mxu0 %v1633_v24  ;;  %4530 = vmatpush3.bf16.msra.mxu0 %v4870_v63 }
 0x195   : > { %4531 = vmatprep.subr.bf16.mxu0 %v4871_v30 }
 0x198   : > { %4532 = vmatpush3.bf16.msra.mxu0 %v4871_v30 }
 0x199   : > { %2105 = vmatmul.mubr.bf16.gmra.mrb[88].mxu1 %v5696_v10  ;;  %4533 = vmatprep.subr.bf16.mxu0 %v4872_v22 }
 0x19a   : > { %2112 = vmatprep.mubr.bf16.mxu1 %v5593_v32 }
 0x19b   : > { %2483 = vmatmul.mubr.bf16.gmra.mrb[44].mxu0 %v5362_v50 }
 0x19c   : > { %2490 = vmatprep.mubr.bf16.mxu0 %v5374_v35  ;;  %4534 = vmatpush3.bf16.msra.mxu0 %v4872_v22 }
 0x19d   : > { %4535 = vmatprep.subr.bf16.mxu0 %v4873_v31 }
 0x1a0   : > { %4536 = vmatpush3.bf16.msra.mxu0 %v4873_v31 }
 0x1a1   : > { %2113 = vmatmul.mubr.bf16.gmra.mrb[92].mxu1 %v5710_v38  ;;  %4569 = vmatprep.subr.bf16.mxu0 %v5708_v57 }
 0x1a2   : > { %3022 = vmatprep.mubr.bf16.mxu1 %v1630_v37 }
 0x1a3   : > { %2491 = vmatmul.mubr.bf16.gmra.mrb[48].mxu0 %v5416_v4 }
 0x1a4   : > { %2498 = vmatprep.mubr.bf16.mxu0 %v1639_v3 }
 0x1a9   : > { %3023 = vmatmul.mubr.bf16.vlgmr.msra.gmra.mrb[96].mxu1 %v5293_v18  ;;  %v1651_v18 = vld [vmem:[#allocation2 + $0xe0] sm:$0xff] }
 0x1aa   : > { %3030 = vmatprep.mubr.bf16.mxu1 %v1633_v24 }
 0x1ab   : > { %2499 = vmatmul.mubr.bf16.gmra.mrb[52].mxu0 %v5496_v33 }
 0x1ac   : > { %2506 = vmatprep.mubr.bf16.mxu0 %v5505_v27 }
 0x1b1   : > { %3031 = vmatmul.mubr.bf16.gmra.mrb[100].mxu1 %v5362_v50  ;;  %v1654_v50 = vld [vmem:[#allocation2 + $0xf8] sm:$0xff] }
 0x1b2   : > { %3038 = vmatprep.mubr.bf16.mxu1 %v5374_v35  ;;  %v2777_v35 = vld [vmem:[#allocation2 + $0x110] sm:$0xff] }
 0x1b3   : > { %2507 = vmatmul.mubr.bf16.gmra.mrb[56].mxu0 %v5544_v52 }
 0x1b4   : > { %2514 = vmatprep.mubr.bf16.mxu0 %v1645_v47 }
 0x1b9   : > { %3039 = vmatmul.mubr.bf16.gmra.mrb[104].mxu1 %v5416_v4  ;;  %v2780_v4 = vld [vmem:[#allocation2 + $0x128] sm:$0xff] }
 0x1ba   : > { %3046 = vmatprep.mubr.bf16.mxu1 %v1639_v3 }
 0x1bb   : > { %2515 = vmatmul.mubr.bf16.gmra.mrb[60].mxu0 %v5573_v28 }
 0x1bc   : > { %2522 = vmatprep.mubr.bf16.mxu0 %v1648_v21 }
 0x1c1   : > { %3047 = vmatmul.mubr.bf16.gmra.mrb[108].mxu1 %v5496_v33 }
 0x1c2   : > { %3054 = vmatprep.mubr.bf16.mxu1 %v5505_v27 }
 0x1c3   : > { %2523 = vmatmul.mubr.bf16.gmra.mrb[64].mxu0 %v5600_v59 }
 0x1c4   : > { %2530 = vmatprep.mubr.bf16.mxu0 %v1651_v18 }
 0x1c9   : > { %3055 = vmatmul.mubr.bf16.gmra.mrb[112].mxu1 %v5544_v52 }
 0x1ca   : > { %3062 = vmatprep.mubr.bf16.mxu1 %v1645_v47 }
 0x1cb   : > { %2531 = vmatmul.mubr.bf16.gmra.mrb[68].mxu0 %v5627_v51 }
 0x1cc   : > { %2538 = vmatprep.mubr.bf16.mxu0 %v1654_v50 }
 0x1d1   : > { %3063 = vmatmul.mubr.bf16.gmra.mrb[116].mxu1 %v5573_v28  ;;  %v4875_v28 = vld [vmem:[%s6193_s5 + $0x208] sm:$0xff]  }
 0x1d2   : > { %3070 = vmatprep.mubr.bf16.mxu1 %v1648_v21 }
 0x1d3   : > { %2539 = vmatmul.mubr.bf16.gmra.mrb[72].mxu0 %v5633_v58 }
 0x1d4   : > { %2546 = vmatprep.mubr.bf16.mxu0 %v5479_v6 }
 0x1d9   : > { %3071 = vmatmul.mubr.bf16.gmra.mrb[120].mxu1 %v5600_v59  ;;  %v2786_v59 = vld [vmem:[#allocation2 + $0x158] sm:$0xff] }
 0x1da   : > { %3078 = vmatprep.mubr.bf16.mxu1 %v1651_v18 }
 0x1db   : > { %2547 = vmatmul.mubr.bf16.gmra.mrb[76].mxu0 %v5649_v26 }
 0x1dc   : > { %2554 = vmatprep.mubr.bf16.mxu0 %v5469_v1 }
 0x1e1   : > { %3079 = vmatmul.mubr.bf16.gmra.mrb[124].mxu1 %v5627_v51 }
 0x1e2   : > { %3086 = vmatprep.mubr.bf16.mxu1 %v1654_v50 }
 0x1e3   : > { %2555 = vmatmul.mubr.bf16.gmra.mrb[80].mxu0 %v5662_v25 }
 0x1e4   : > { %2562 = vmatprep.mubr.bf16.mxu0 %v5560_v40 }
 0x1e9   : > { %3087 = vmatmul.mubr.bf16.gmra.mrb[128].mxu1 %v5633_v58 }
 0x1ea   : > { %3094 = vmatprep.mubr.bf16.mxu1 %v2777_v35 }
 0x1eb   : > { %2563 = vmatmul.mubr.bf16.gmra.mrb[84].mxu0 %v5674_v46 }
 0x1ec   : > { %2570 = vmatprep.mubr.bf16.mxu0 %v5555_v11 }
 0x1f1   : > { %3095 = vmatmul.mubr.bf16.gmra.mrb[132].mxu1 %v5649_v26 }
 0x1f2   : > { %3102 = vmatprep.mubr.bf16.mxu1 %v2780_v4 }
 0x1f3   : > { %2571 = vmatmul.mubr.bf16.gmra.mrb[88].mxu0 %v5685_v29 }
 0x1f4   : > { %2578 = vmatprep.mubr.bf16.mxu0 %v5595_v8 }
 0x1f9   : > { %3103 = vmatmul.mubr.bf16.gmra.mrb[136].mxu1 %v5662_v25 }
 0x1fa   : > { %3110 = vmatprep.mubr.bf16.mxu1 %v5560_v40  ;;  %v4033_v1 = vpop.f32.mrb[32].mxu1  ;;  %v1628_v40 = vld [vmem:[#allocation2 + $0x28] sm:$0xff] }
 0x1fb   : > { %2579 = vmatmul.mubr.bf16.gmra.mrb[92].mxu0 %v5696_v10  ;;  %v4034_v6 = vpop.f32.mrb[33].mxu1 }
 0x1fc   : > { %4537 = vmatprep.mubr.bf16.mxu0 %v5659_v7  ;;  %v5747_v33 = vadd.f32 %v4034_v6, %v4033_v1  ;;  %v4036_v27 = vpop.f32.mrb[34].mxu1 }
 0x1fd   : > { %v4037_v52 = vpop.f32.mrb[35].mxu1 }
 0x1fe   : > { %v5749_v11 = vadd.f32 %v4037_v52, %v4036_v27 }
 0x201   : > { %3111 = vmatmul.mubr.bf16.gmra.mrb[140].mxu1 %v5674_v46 }
 0x202   : > { %3118 = vmatprep.mubr.bf16.mxu1 %v2786_v59  ;;  %v4039_v53 = vpop.f32.mrb[36].mxu1 }
 0x203   : > { %4538 = vmatmul.mubr.bf16.vlgmr.msra.gmra.mrb[0].mxu0 %v1628_v40  ;;  %v4040_v54 = vpop.f32.mrb[37].mxu1 }
 0x204   : > { %4570 = vmatpush3.bf16.msra.mxu0 %v5708_v57  ;;  %4541 = vmatprep.mubr.bf16.mxu0 %v4884_v45  ;;  %v5759_v55 = vadd.f32 %v4040_v54, %v4039_v53  ;;  %v4042_v5 = vpop.f32.mrb[38].mxu1 }
 0x205   : > { %4571 = vmatprep.subr.bf16.mxu0 %v4875_v28  ;;  %v4043_v51 = vpop.f32.mrb[39].mxu1 }
 0x206   : > { %v5761_v58 = vadd.f32 %v4043_v51, %v4042_v5 }
 0x208   : > { %4572 = vmatpush3.bf16.msra.mxu0 %v4875_v28 }
 0x209   : > { %4573 = vmatprep.subr.bf16.mxu0 %v4876_v42  ;;  %3119 = vmatmul.mubr.bf16.gmra.mrb[144].mxu1 %v5685_v29 }
 0x20a   : > { %3126 = vmatprep.mubr.bf16.mxu1 %v5595_v8  ;;  %v4879_v8 = vld [vmem:[%s6193_s5 + $0x228] sm:$0xff]  }
 0x20b   : > { %4542 = vmatmul.mubr.bf16.gmra.mrb[4].mxu0 %v4885_v44  ;;  %v4045_v23 = vpop.f32.mrb[40].mxu1 }
 0x20c   : > { %4545 = vmatprep.mubr.bf16.mxu0 %v4886_v16  ;;  %4574 = vmatpush3.bf16.msra.mxu0 %v4876_v42  ;;  %v4046_v43 = vpop.f32.mrb[41].mxu1  ;;  %v2751_v42 = vld [vmem:[#allocation2 + $0x40] sm:$0xff] }
 0x20d   : > { %4575 = vmatprep.subr.bf16.mxu0 %v4877_v9  ;;  %v5771_v48 = vadd.f32 %v4046_v43, %v4045_v23  ;;  %v4048_v49 = vpop.f32.mrb[42].mxu1  ;;  %v2754_v23 = vld [vmem:[#allocation2 + $0x58] sm:$0xff] }
 0x20e   : > { %v4049_v26 = vpop.f32.mrb[43].mxu1 }
 0x20f   : > { %v5773_v25 = vadd.f32 %v4049_v26, %v4048_v49 }
 0x210   : > { %4576 = vmatpush3.bf16.msra.mxu0 %v4877_v9 }
 0x211   : > { %4577 = vmatprep.subr.bf16.mxu0 %v4878_v14  ;;  %3127 = vmatmul.mubr.bf16.gmra.mrb[148].mxu1 %v5696_v10 }
 0x212   : > { %3134 = vmatprep.mubr.bf16.mxu1 %v5593_v32  ;;  %v4881_v32 = vld [vmem:[%s6193_s5 + $0x238] sm:$0xff]  }
 0x213   : > { %4546 = vmatmul.mubr.bf16.gmra.mrb[8].mxu0 %v5439_v36 }
 0x214   : > { %4549 = vmatprep.mubr.bf16.mxu0 %v5427_v20  ;;  %4578 = vmatpush3.bf16.msra.mxu0 %v4878_v14  ;;  %v4051_v61 = vpop.f32.mrb[44].mxu1  ;;  %v2757_v14 = vld [vmem:[#allocation2 + $0x70] sm:$0xff] }
 0x215   : > { %4579 = vmatprep.subr.bf16.mxu0 %v4879_v8  ;;  %v4052_v2 = vpop.f32.mrb[45].mxu1 }
 0x216   : > { %v5785_v46 = vadd.f32 %v4052_v2, %v4051_v61  ;;  %v4054_v15 = vpop.f32.mrb[46].mxu1 }
 0x217   : > { %v4055_v37 = vpop.f32.mrb[47].mxu1 }
 0x218   : > { %4580 = vmatpush3.bf16.msra.mxu0 %v4879_v8  ;;  %v5787_v63 = vadd.f32 %v4055_v37, %v4054_v15 }
 0x219   : > { %3135 = vmatmul.mubr.bf16.gmra.mrb[152].mxu1 %v5710_v38  ;;  %4581 = vmatprep.subr.bf16.mxu0 %v4880_v41 }
 0x21a   : > { %3142 = vmatprep.mubr.bf16.mxu1 %v5659_v7 }
 0x21b   : > { %4550 = vmatmul.mubr.bf16.gmra.mrb[12].mxu0 %v5508_v56 }
 0x21c   : > { %4553 = vmatprep.mubr.bf16.mxu0 %v5516_v62  ;;  %4582 = vmatpush3.bf16.msra.mxu0 %v4880_v41  ;;  %v4057_v29 = vpop.f32.mrb[48].mxu1 }
 0x21d   : > { %v4058_v30 = vpop.f32.mrb[49].mxu1  ;;  %4583 = vmatprep.subr.bf16.mxu0 %v4881_v32 }
 0x21e   : > { %v5796_v24 = vadd.f32 %v4058_v30, %v4057_v29  ;;  %v4060_v22 = vpop.f32.mrb[50].mxu1 }
 0x21f   : > { %v4061_v10 = vpop.f32.mrb[51].mxu1 }
 0x220   : > { %v5798_v31 = vadd.f32 %v4061_v10, %v4060_v22  ;;  %4584 = vmatpush3.bf16.msra.mxu0 %v4881_v32 }
 0x221   : > { %3143 = vmatmul.mubr.bf16.gmra.mrb[156].mxu1 %v5659_v7 }
 0x223   : > { %4554 = vmatmul.mubr.bf16.gmra.mrb[16].mxu0 %v5575_v34 }
 0x224   : > { %4557 = vmatprep.mubr.bf16.mxu0 %v5579_v39  ;;  %v4063_v57 = vpop.f32.mrb[52].mxu1 }
 0x225   : > { %v4064_v38 = vpop.f32.mrb[53].mxu1 }
 0x226   : > { %v5803_v3 = vadd.f32 %v4064_v38, %v4063_v57  ;;  %v4066_v47 = vpop.f32.mrb[54].mxu1 }
 0x227   : > { %v4067_v21 = vpop.f32.mrb[55].mxu1 }
 0x228   : > { %v5805_v18 = vadd.f32 %v4067_v21, %v4066_v47 }
 0x22b   : > { %4558 = vmatmul.mubr.bf16.gmra.mrb[20].mxu0 %v5597_v13 }
 0x22c   : > { %4561 = vmatprep.mubr.bf16.mxu0 %v5607_v60  ;;  %v4069_v50 = vpop.f32.mrb[56].mxu1 }
 0x22d   : > { %v4070_v35 = vpop.f32.mrb[57].mxu1 }
 0x22e   : > { %v5809_v4 = vadd.f32 %v4070_v35, %v4069_v50  ;;  %v4072_v1 = vpop.f32.mrb[58].mxu1 }
 0x22f   : > { %v4073_v6 = vpop.f32.mrb[59].mxu1 }
 0x230   : > { %v5811_v27 = vadd.f32 %v4073_v6, %v4072_v1 }
 0x233   : > { %4562 = vmatmul.mubr.bf16.gmra.mrb[24].mxu0 %v5635_v17 }
 0x234   : > { %4565 = vmatprep.mubr.bf16.mxu0 %v5631_v12  ;;  %v4075_v52 = vpop.f32.mrb[60].mxu1 }
 0x235   : > { %v4076_v28 = vpop.f32.mrb[61].mxu1 }
 0x236   : > { %v5815_v59 = vadd.f32 %v4076_v28, %v4075_v52  ;;  %v4078_v40 = vpop.f32.mrb[62].mxu1 }
 0x237   : > { %v4079_v45 = vpop.f32.mrb[63].mxu1 }
 0x238   : > { %v5817_v53 = vadd.f32 %v4079_v45, %v4078_v40 }
 0x23b   : > { %4566 = vmatmul.mubr.bf16.gmra.mrb[28].mxu0 %v5651_v19 }
 0x23c   : > { %4585 = vmatprep.mubr.bf16.mxu0 %v2751_v42  ;;  %v4081_v54 = vpop.f32.mrb[64].mxu1 }
 0x23d   : > { %v4082_v5 = vpop.f32.mrb[65].mxu1 }
 0x23e   : > { %v5820_v51 = vadd.f32 %v4082_v5, %v4081_v54  ;;  %v4084_v9 = vpop.f32.mrb[66].mxu1 }
 0x23f   : > { %v4085_v44 = vpop.f32.mrb[67].mxu1 }
 0x240   : > { %v5822_v16 = vadd.f32 %v4085_v44, %v4084_v9 }
 0x243   : > { %4586 = vmatmul.mubr.bf16.vlgmr.msra.gmra.mrb[0].mxu0 %v2754_v23 }
 0x244   : > { %4589 = vmatprep.mubr.bf16.mxu0 %v2757_v14  ;;  %v4087_v43 = vpop.f32.mrb[68].mxu1 }
 0x245   : > { %v4088_v49 = vpop.f32.mrb[69].mxu1 }
 0x246   : > { %v5824_v26 = vadd.f32 %v4088_v49, %v4087_v43  ;;  %v4090_v8 = vpop.f32.mrb[70].mxu1 }
 0x247   : > { %v4091_v61 = vpop.f32.mrb[71].mxu1 }
 0x248   : > { %v5826_v2 = vadd.f32 %v4091_v61, %v4090_v8 }
 0x24b   : > { %4590 = vmatmul.mubr.bf16.gmra.mrb[4].mxu0 %v5439_v36 }
 0x24c   : > { %4593 = vmatprep.mubr.bf16.mxu0 %v5427_v20  ;;  %v4093_v41 = vpop.f32.mrb[72].mxu1 }
 0x24d   : > { %v4094_v15 = vpop.f32.mrb[73].mxu1 }
 0x24e   : > { %v5830_v37 = vadd.f32 %v4094_v15, %v4093_v41  ;;  %v4096_v32 = vpop.f32.mrb[74].mxu1 }
 0x24f   : > { %v4097_v29 = vpop.f32.mrb[75].mxu1 }
 0x250   : > { %v5832_v30 = vadd.f32 %v4097_v29, %v4096_v32 }
 0x253   : > { %4594 = vmatmul.mubr.bf16.gmra.mrb[8].mxu0 %v5508_v56 }
 0x254   : > { %4597 = vmatprep.mubr.bf16.mxu0 %v5516_v62  ;;  %v4099_v22 = vpop.f32.mrb[76].mxu1 }
 0x255   : > { %v4100_v10 = vpop.f32.mrb[77].mxu1 }
 0x256   : > { %v4169_v57 = vpop.f32.mrb[32].mxu0  ;;  %v5836_v38 = vadd.f32 %v4100_v10, %v4099_v22  ;;  %v4102_v36 = vpop.f32.mrb[78].mxu1 }
 0x257   : > { %v4170_v47 = vpop.f32.mrb[33].mxu0  ;;  %v4103_v20 = vpop.f32.mrb[79].mxu1 }
 0x258   : > { %v4171_v21 = vadd.f32 %v4170_v47, %v4169_v57  ;;  %v4172_v50 = vpop.f32.mrb[34].mxu0  ;;  %v5838_v35 = vadd.f32 %v4103_v20, %v4102_v36 }
 0x259   : > { %v4173_v1 = vpop.f32.mrb[35].mxu0 }
 0x25a   : > { %v5841_v6 = vadd.f32 %v4171_v21, %v5747_v33  ;;  %v4174_v52 = vadd.f32 %v4173_v1, %v4172_v50 }
 0x25b   : > { %4598 = vmatmul.mubr.bf16.gmra.mrb[12].mxu0 %v5575_v34 }
 0x25c   : > { %v5845_v56 = vadd.f32 %v4174_v52, %v5749_v11  ;;  %4601 = vmatprep.mubr.bf16.mxu0 %v5579_v39  ;;  %v4105_v62 = vpop.f32.mrb[80].mxu1 }
 0x25d   : > { %v4106_v28 = vpop.f32.mrb[81].mxu1 }
 0x25e   : > { %v4175_v40 = vpop.f32.mrb[36].mxu0  ;;  %v5848_v45 = vadd.f32 %v4106_v28, %v4105_v62  ;;  %v4108_v42 = vpop.f32.mrb[82].mxu1 }
 0x25f   : > { %v4176_v54 = vpop.f32.mrb[37].mxu0  ;;  %v4109_v5 = vpop.f32.mrb[83].mxu1 }
 0x260   : > { %v4177_v9 = vadd.f32 %v4176_v54, %v4175_v40  ;;  %v4178_v44 = vpop.f32.mrb[38].mxu0  ;;  %v5850_v33 = vadd.f32 %v4109_v5, %v4108_v42 }
 0x261   : > { %v4179_v23 = vpop.f32.mrb[39].mxu0 }
 0x262   : > { %v5853_v34 = vadd.f32 %v4177_v9, %v5759_v55  ;;  %v4180_v11 = vadd.f32 %v4179_v23, %v4178_v44 }
 0x263   : > { %4602 = vmatmul.mubr.bf16.gmra.mrb[16].mxu0 %v5597_v13 }
 0x264   : > { %v5857_v39 = vadd.f32 %v4180_v11, %v5761_v58  ;;  %4605 = vmatprep.mubr.bf16.mxu0 %v5607_v60  ;;  %v4111_v14 = vpop.f32.mrb[84].mxu1 }
 0x265   : > { %v4112_v43 = vpop.f32.mrb[85].mxu1 }
 0x266   : > { %v4181_v49 = vpop.f32.mrb[40].mxu0  ;;  %v5860_v8 = vadd.f32 %v4112_v43, %v4111_v14  ;;  %v4114_v61 = vpop.f32.mrb[86].mxu1 }
 0x267   : > { %v4182_v41 = vpop.f32.mrb[41].mxu0  ;;  %v4115_v15 = vpop.f32.mrb[87].mxu1 }
 0x268   : > { %v4183_v32 = vadd.f32 %v4182_v41, %v4181_v49  ;;  %v4184_v29 = vpop.f32.mrb[42].mxu0  ;;  %v5862_v55 = vadd.f32 %v4115_v15, %v4114_v61 }
 0x269   : > { %v4185_v22 = vpop.f32.mrb[43].mxu0 }
 0x26a   : > { %v5865_v13 = vadd.f32 %v4183_v32, %v5771_v48  ;;  %v4186_v58 = vadd.f32 %v4185_v22, %v4184_v29 }
 0x26b   : > { %4606 = vmatmul.mubr.bf16.gmra.mrb[20].mxu0 %v5635_v17 }
 0x26c   : > { %v5869_v60 = vadd.f32 %v4186_v58, %v5773_v25  ;;  %4609 = vmatprep.mubr.bf16.mxu0 %v5631_v12  ;;  %v4117_v10 = vpop.f32.mrb[88].mxu1 }
 0x26d   : > { %v4118_v57 = vpop.f32.mrb[89].mxu1 }
 0x26e   : > { %v4187_v36 = vpop.f32.mrb[44].mxu0  ;;  %v5872_v47 = vadd.f32 %v4118_v57, %v4117_v10  ;;  %v4120_v20 = vpop.f32.mrb[90].mxu1 }
 0x26f   : > { %v4188_v21 = vpop.f32.mrb[45].mxu0  ;;  %v4121_v50 = vpop.f32.mrb[91].mxu1 }
 0x270   : > { %v4189_v1 = vadd.f32 %v4188_v21, %v4187_v36  ;;  %v4190_v52 = vpop.f32.mrb[46].mxu0  ;;  %v5874_v48 = vadd.f32 %v4121_v50, %v4120_v20 }
 0x271   : > { %v4191_v62 = vpop.f32.mrb[47].mxu0 }
 0x272   : > { %v5877_v17 = vadd.f32 %v4189_v1, %v5785_v46  ;;  %v4192_v25 = vadd.f32 %v4191_v62, %v4190_v52 }
 0x273   : > { %4610 = vmatmul.mubr.bf16.gmra.mrb[24].mxu0 %v5651_v19 }
 0x274   : > { %v5881_v12 = vadd.f32 %v4192_v25, %v5787_v63  ;;  %4613 = vmatprep.mubr.bf16.mxu0 %v5655_v0  ;;  %v4123_v28 = vpop.f32.mrb[92].mxu1 }
 0x275   : > { %v4124_v40 = vpop.f32.mrb[93].mxu1 }
 0x276   : > { %v4193_v42 = vpop.f32.mrb[48].mxu0  ;;  %v5884_v54 = vadd.f32 %v4124_v40, %v4123_v28  ;;  %v4126_v5 = vpop.f32.mrb[94].mxu1 }
 0x277   : > { %v4194_v9 = vpop.f32.mrb[49].mxu0  ;;  %v4127_v44 = vpop.f32.mrb[95].mxu1 }
 0x278   : > { %v4195_v23 = vadd.f32 %v4194_v9, %v4193_v42  ;;  %v4196_v11 = vpop.f32.mrb[50].mxu0  ;;  %v5886_v46 = vadd.f32 %v4127_v44, %v4126_v5 }
 0x279   : > { %v4197_v14 = vpop.f32.mrb[51].mxu0 }
 0x27a   : > { %v5889_v19 = vadd.f32 %v4195_v23, %v5796_v24  ;;  %v4198_v63 = vadd.f32 %v4197_v14, %v4196_v11 }
 0x27b   : > { %4614 = vmatmul.mubr.bf16.gmra.mrb[28].mxu0 %v5659_v7 }
 0x27c   : > { %v5893_v0 = vadd.f32 %v4198_v63, %v5798_v31  ;;  %v4305_v43 = vpop.f32.mrb[96].mxu1 }
 0x27d   : > { %v4306_v49 = vpop.f32.mrb[97].mxu1 }
 0x27e   : > { %v4199_v61 = vpop.f32.mrb[52].mxu0  ;;  %v4307_v41 = vadd.f32 %v4306_v49, %v4305_v43  ;;  %v4308_v15 = vpop.f32.mrb[98].mxu1 }
 0x27f   : > { %v4200_v32 = vpop.f32.mrb[53].mxu0  ;;  %v4309_v29 = vpop.f32.mrb[99].mxu1 }
 0x280   : > { %v4201_v22 = vadd.f32 %v4200_v32, %v4199_v61  ;;  %v4202_v58 = vpop.f32.mrb[54].mxu0  ;;  %v4310_v10 = vadd.f32 %v4309_v29, %v4308_v15  ;;  %v5896_v57 = vadd.f32 %v5841_v6, %v4307_v41 }
 0x281   : > { %v4203_v24 = vpop.f32.mrb[55].mxu0 }
 0x282   : > { %v5899_v36 = vadd.f32 %v4201_v22, %v5803_v3  ;;  %v4204_v7 = vadd.f32 %v4203_v24, %v4202_v58  ;;  %v5902_v31 = vadd.f32 %v5845_v56, %v4310_v10 }
 0x284   : > { %v5905_v20 = vadd.f32 %v4204_v7, %v5805_v18  ;;  %v4311_v21 = vpop.f32.mrb[100].mxu1 }
 0x285   : > { %v4312_v50 = vpop.f32.mrb[101].mxu1 }
 0x286   : > { %v4205_v1 = vpop.f32.mrb[56].mxu0  ;;  %v4313_v52 = vadd.f32 %v4312_v50, %v4311_v21  ;;  %v4314_v62 = vpop.f32.mrb[102].mxu1 }
 0x287   : > { %v4206_v25 = vpop.f32.mrb[57].mxu0  ;;  %v4315_v28 = vpop.f32.mrb[103].mxu1 }
 0x288   : > { %v4207_v6 = vadd.f32 %v4206_v25, %v4205_v1  ;;  %v4208_v40 = vpop.f32.mrb[58].mxu0  ;;  %v4316_v42 = vadd.f32 %v4315_v28, %v4314_v62  ;;  %v5908_v3 = vadd.f32 %v5853_v34, %v4313_v52 }
 0x289   : > { %v4209_v5 = vpop.f32.mrb[59].mxu0 }
 0x28a   : > { %v5911_v56 = vadd.f32 %v4207_v6, %v5809_v4  ;;  %v4210_v9 = vadd.f32 %v4209_v5, %v4208_v40  ;;  %v5914_v18 = vadd.f32 %v5857_v39, %v4316_v42 }
 0x28c   : > { %v5917_v44 = vadd.f32 %v4210_v9, %v5811_v27  ;;  %v4317_v23 = vpop.f32.mrb[104].mxu1 }
 0x28d   : > { %v4318_v11 = vpop.f32.mrb[105].mxu1 }
 0x28e   : > { %v4211_v14 = vpop.f32.mrb[60].mxu0  ;;  %v4319_v63 = vadd.f32 %v4318_v11, %v4317_v23  ;;  %v4320_v43 = vpop.f32.mrb[106].mxu1 }
 0x28f   : > { %v4212_v49 = vpop.f32.mrb[61].mxu0  ;;  %v4321_v61 = vpop.f32.mrb[107].mxu1 }
 0x290   : > { %v4213_v34 = vadd.f32 %v4212_v49, %v4211_v14  ;;  %v4214_v41 = vpop.f32.mrb[62].mxu0  ;;  %v4322_v15 = vadd.f32 %v4321_v61, %v4320_v43  ;;  %v5920_v4 = vadd.f32 %v5865_v13, %v4319_v63 }
 0x291   : > { %v4215_v32 = vpop.f32.mrb[63].mxu0 }
 0x292   : > { %v5923_v39 = vadd.f32 %v4213_v34, %v5815_v59  ;;  %v4216_v29 = vadd.f32 %v4215_v32, %v4214_v41  ;;  %v5926_v27 = vadd.f32 %v5869_v60, %v4322_v15 }
 0x294   : > { %v5929_v22 = vadd.f32 %v4216_v29, %v5817_v53  ;;  %v4323_v58 = vpop.f32.mrb[108].mxu1 }
 0x295   : > { %v4324_v10 = vpop.f32.mrb[109].mxu1 }
 0x296   : > { %v4217_v24 = vpop.f32.mrb[64].mxu0  ;;  %v4325_v7 = vadd.f32 %v4324_v10, %v4323_v58  ;;  %v4326_v21 = vpop.f32.mrb[110].mxu1 }
 0x297   : > { %v4218_v50 = vpop.f32.mrb[65].mxu0  ;;  %v4327_v1 = vpop.f32.mrb[111].mxu1 }
 0x298   : > { %v4219_v13 = vadd.f32 %v4218_v50, %v4217_v24  ;;  %v4220_v52 = vpop.f32.mrb[66].mxu0  ;;  %v4328_v62 = vadd.f32 %v4327_v1, %v4326_v21  ;;  %v5932_v59 = vadd.f32 %v5877_v17, %v4325_v7 }
 0x299   : > { %v4221_v25 = vpop.f32.mrb[67].mxu0 }
 0x29a   : > { %v5935_v60 = vadd.f32 %v4219_v13, %v5820_v51  ;;  %v4222_v28 = vadd.f32 %v4221_v25, %v4220_v52  ;;  %v5938_v53 = vadd.f32 %v5881_v12, %v4328_v62 }
 0x29c   : > { %v5941_v6 = vadd.f32 %v4222_v28, %v5822_v16  ;;  %v4329_v40 = vpop.f32.mrb[112].mxu1 }
 0x29d   : > { %v4330_v42 = vpop.f32.mrb[113].mxu1 }
 0x29e   : > { %v4223_v5 = vpop.f32.mrb[68].mxu0  ;;  %v4331_v9 = vadd.f32 %v4330_v42, %v4329_v40  ;;  %v4332_v23 = vpop.f32.mrb[114].mxu1 }
 0x29f   : > { %v4224_v11 = vpop.f32.mrb[69].mxu0  ;;  %v4333_v14 = vpop.f32.mrb[115].mxu1 }
 0x2a0   : > { %v4225_v17 = vadd.f32 %v4224_v11, %v4223_v5  ;;  %v4226_v63 = vpop.f32.mrb[70].mxu0  ;;  %v4334_v43 = vadd.f32 %v4333_v14, %v4332_v23  ;;  %v5944_v51 = vadd.f32 %v5889_v19, %v4331_v9 }
 0x2a1   : > { %v4227_v49 = vpop.f32.mrb[71].mxu0 }
 0x2a2   : > { %v5947_v12 = vadd.f32 %v4225_v17, %v5824_v26  ;;  %v4228_v61 = vadd.f32 %v4227_v49, %v4226_v63  ;;  %v5950_v16 = vadd.f32 %v5893_v0, %v4334_v43 }
 0x2a4   : > { %v5953_v34 = vadd.f32 %v4228_v61, %v5826_v2  ;;  %v4335_v41 = vpop.f32.mrb[116].mxu1 }
 0x2a5   : > { %v4336_v15 = vpop.f32.mrb[117].mxu1 }
 0x2a6   : > { %v4229_v32 = vpop.f32.mrb[72].mxu0  ;;  %v4337_v29 = vadd.f32 %v4336_v15, %v4335_v41  ;;  %v4338_v58 = vpop.f32.mrb[118].mxu1 }
 0x2a7   : > { %v4230_v10 = vpop.f32.mrb[73].mxu0  ;;  %v4339_v24 = vpop.f32.mrb[119].mxu1 }
 0x2a8   : > { %v4231_v19 = vadd.f32 %v4230_v10, %v4229_v32  ;;  %v4232_v7 = vpop.f32.mrb[74].mxu0  ;;  %v4340_v21 = vadd.f32 %v4339_v24, %v4338_v58  ;;  %v5956_v26 = vadd.f32 %v5899_v36, %v4337_v29 }
 0x2a9   : > { %v4233_v50 = vpop.f32.mrb[75].mxu0 }
 0x2aa   : > { %v5959_v0 = vadd.f32 %v4231_v19, %v5830_v37  ;;  %v4234_v1 = vadd.f32 %v4233_v50, %v4232_v7  ;;  %v5962_v2 = vadd.f32 %v5905_v20, %v4340_v21 }
 0x2ac   : > { %v5965_v13 = vadd.f32 %v4234_v1, %v5832_v30  ;;  %v4341_v52 = vpop.f32.mrb[120].mxu1 }
 0x2ad   : > { %v4342_v62 = vpop.f32.mrb[121].mxu1 }
 0x2ae   : > { %v4235_v25 = vpop.f32.mrb[76].mxu0  ;;  %v4343_v28 = vadd.f32 %v4342_v62, %v4341_v52  ;;  %v4344_v40 = vpop.f32.mrb[122].mxu1 }
 0x2af   : > { %v4236_v42 = vpop.f32.mrb[77].mxu0  ;;  %v4345_v5 = vpop.f32.mrb[123].mxu1 }
 0x2b0   : > { %v4237_v36 = vadd.f32 %v4236_v42, %v4235_v25  ;;  %v4238_v9 = vpop.f32.mrb[78].mxu0  ;;  %v4346_v23 = vadd.f32 %v4345_v5, %v4344_v40  ;;  %v5968_v37 = vadd.f32 %v5911_v56, %v4343_v28 }
 0x2b1   : > { %v4239_v11 = vpop.f32.mrb[79].mxu0 }
 0x2b2   : > { %v5971_v20 = vadd.f32 %v4237_v36, %v5836_v38  ;;  %v4240_v14 = vadd.f32 %v4239_v11, %v4238_v9  ;;  %v5974_v30 = vadd.f32 %v5917_v44, %v4346_v23 }
 0x2b4   : > { %v5977_v17 = vadd.f32 %v4240_v14, %v5838_v35  ;;  %v4347_v63 = vpop.f32.mrb[124].mxu1 }
 0x2b5   : > { %v4348_v43 = vpop.f32.mrb[125].mxu1 }
 0x2b6   : > { %v4241_v49 = vpop.f32.mrb[80].mxu0  ;;  %v4349_v61 = vadd.f32 %v4348_v43, %v4347_v63  ;;  %v4350_v41 = vpop.f32.mrb[126].mxu1 }
 0x2b7   : > { %v4242_v15 = vpop.f32.mrb[81].mxu0  ;;  %v4351_v32 = vpop.f32.mrb[127].mxu1 }
 0x2b8   : > { %v4243_v56 = vadd.f32 %v4242_v15, %v4241_v49  ;;  %v4244_v29 = vpop.f32.mrb[82].mxu0  ;;  %v4352_v58 = vadd.f32 %v4351_v32, %v4350_v41  ;;  %v5980_v38 = vadd.f32 %v5923_v39, %v4349_v61 }
 0x2b9   : > { %v4245_v10 = vpop.f32.mrb[83].mxu0 }
 0x2ba   : > { %v5983_v44 = vadd.f32 %v4243_v56, %v5848_v45  ;;  %v4246_v24 = vadd.f32 %v4245_v10, %v4244_v29  ;;  %v5986_v35 = vadd.f32 %v5929_v22, %v4352_v58 }
 0x2bc   : > { %v5989_v19 = vadd.f32 %v4246_v24, %v5850_v33  ;;  %v4353_v7 = vpop.f32.mrb[128].mxu1 }
 0x2bd   : > { %v4354_v21 = vpop.f32.mrb[129].mxu1 }
 0x2be   : > { %v4247_v50 = vpop.f32.mrb[84].mxu0  ;;  %v4355_v1 = vadd.f32 %v4354_v21, %v4353_v7  ;;  %v4356_v52 = vpop.f32.mrb[130].mxu1 }
 0x2bf   : > { %v4248_v62 = vpop.f32.mrb[85].mxu0  ;;  %v4357_v25 = vpop.f32.mrb[131].mxu1 }
 0x2c0   : > { %v4249_v39 = vadd.f32 %v4248_v62, %v4247_v50  ;;  %v4250_v28 = vpop.f32.mrb[86].mxu0  ;;  %v4358_v40 = vadd.f32 %v4357_v25, %v4356_v52  ;;  %v5992_v45 = vadd.f32 %v5935_v60, %v4355_v1 }
 0x2c1   : > { %v4251_v42 = vpop.f32.mrb[87].mxu0 }
 0x2c2   : > { %v4689_v22 = vadd.f32 %v4249_v39, %v5860_v8  ;;  %v4252_v5 = vadd.f32 %v4251_v42, %v4250_v28  ;;  %v5996_v33 = vadd.f32 %v5941_v6, %v4358_v40 }
 0x2c4   : > { %v4695_v36 = vadd.f32 %v4252_v5, %v5862_v55  ;;  %v4359_v9 = vpop.f32.mrb[132].mxu1 }
 0x2c5   : > { %v4360_v23 = vpop.f32.mrb[133].mxu1 }
 0x2c6   : > { %v4253_v11 = vpop.f32.mrb[88].mxu0  ;;  %v4361_v14 = vadd.f32 %v4360_v23, %v4359_v9  ;;  %v4362_v63 = vpop.f32.mrb[134].mxu1 }
 0x2c7   : > { %v4254_v43 = vpop.f32.mrb[89].mxu0  ;;  %v4363_v49 = vpop.f32.mrb[135].mxu1 }
 0x2c8   : > { %v4255_v61 = vadd.f32 %v4254_v43, %v4253_v11  ;;  %v4256_v41 = vpop.f32.mrb[90].mxu0  ;;  %v4364_v60 = vadd.f32 %v4363_v49, %v4362_v63  ;;  %v6000_v15 = vadd.f32 %v5947_v12, %v4361_v14 }
 0x2c9   : > { %v4257_v8 = vpop.f32.mrb[91].mxu0 }
 0x2ca   : > { %v4704_v32 = vadd.f32 %v4255_v61, %v5872_v47  ;;  %v4258_v6 = vadd.f32 %v4257_v8, %v4256_v41  ;;  %v6004_v56 = vadd.f32 %v5953_v34, %v4364_v60 }
 0x2cc   : > { %v4710_v55 = vadd.f32 %v4258_v6, %v5874_v48  ;;  %v4365_v29 = vpop.f32.mrb[136].mxu1 }
 0x2cd   : > { %v4366_v58 = vpop.f32.mrb[137].mxu1 }
 0x2ce   : > { %v4259_v10 = vpop.f32.mrb[92].mxu0  ;;  %v4367_v24 = vadd.f32 %v4366_v58, %v4365_v29  ;;  %v4368_v7 = vpop.f32.mrb[138].mxu1 }
 0x2cf   : > { %v4260_v21 = vpop.f32.mrb[93].mxu0  ;;  %v4369_v50 = vpop.f32.mrb[139].mxu1 }
 0x2d0   : > { %v4261_v1 = vadd.f32 %v4260_v21, %v4259_v10  ;;  %v4262_v52 = vpop.f32.mrb[94].mxu0  ;;  %v4370_v12 = vadd.f32 %v4369_v50, %v4368_v7  ;;  %v6008_v62 = vadd.f32 %v5959_v0, %v4367_v24 }
 0x2d1   : > { %v4263_v47 = vpop.f32.mrb[95].mxu0 }
 0x2d2   : > { %v4701_v25 = vadd.f32 %v4261_v1, %v5884_v54  ;;  %v4264_v34 = vadd.f32 %v4263_v47, %v4262_v52  ;;  %v6012_v39 = vadd.f32 %v5965_v13, %v4370_v12 }
 0x2d4   : > { %v4707_v48 = vadd.f32 %v4264_v34, %v5886_v46  ;;  %v4371_v28 = vpop.f32.mrb[140].mxu1 }
 0x2d5   : > { %v4372_v40 = vpop.f32.mrb[141].mxu1 }
 0x2d6   : > { %v4373_v42 = vadd.f32 %v4372_v40, %v4371_v28  ;;  %v4374_v5 = vpop.f32.mrb[142].mxu1 }
 0x2d7   : > { %v4375_v9 = vpop.f32.mrb[143].mxu1 }
 0x2d8   : > { %v4376_v23 = vadd.f32 %v4375_v9, %v4374_v5  ;;  %v6016_v11 = vadd.f32 %v5971_v20, %v4373_v42  ;;  %v6042_v5 = vld [vmem:[%s6194_s6] ss:$0 sm:$0xff] }
 0x2da   : > { %v6019_v0 = vadd.f32 %v5977_v17, %v4376_v23 }
 0x2dc   : > { %v4377_v14 = vpop.f32.mrb[144].mxu1 }
 0x2dd   : > { %v4378_v54 = vpop.f32.mrb[145].mxu1 }
 0x2de   : > { %v4379_v63 = vadd.f32 %v4378_v54, %v4377_v14  ;;  %v4380_v43 = vpop.f32.mrb[146].mxu1 }
 0x2df   : > { %v4381_v13 = vpop.f32.mrb[147].mxu1 }
 0x2e0   : > { %v4382_v49 = vadd.f32 %v4381_v13, %v4380_v43  ;;  %v6022_v46 = vadd.f32 %v5983_v44, %v4379_v63 }
 0x2e2   : > { %v6025_v61 = vadd.f32 %v5989_v19, %v4382_v49 }
 0x2e4   : > { %v4383_v41 = vpop.f32.mrb[148].mxu1 }
 0x2e5   : > { %v4384_v60 = vpop.f32.mrb[149].mxu1 }
 0x2e6   : > { %v4385_v8 = vadd.f32 %v4384_v60, %v4383_v41  ;;  %v4386_v20 = vpop.f32.mrb[150].mxu1 }
 0x2e7   : > { %v4387_v6 = vpop.f32.mrb[151].mxu1 }
 0x2e8   : > { %v4388_v29 = vadd.f32 %v4387_v6, %v4386_v20  ;;  %v6027_v17 = vadd.f32 %v4689_v22, %v4385_v8 }
 0x2ea   : > { %v6029_v58 = vadd.f32 %v4695_v36, %v4388_v29 }
 0x2ec   : > { %v4389_v10 = vpop.f32.mrb[152].mxu1 }
 0x2ed   : > { %v4390_v24 = vpop.f32.mrb[153].mxu1 }
 0x2ee   : > { %v4391_v7 = vadd.f32 %v4390_v24, %v4389_v10  ;;  %v4392_v21 = vpop.f32.mrb[154].mxu1 }
 0x2ef   : > { %v4393_v50 = vpop.f32.mrb[155].mxu1 }
 0x2f0   : > { %v4394_v44 = vadd.f32 %v4393_v50, %v4392_v21  ;;  %v6031_v1 = vadd.f32 %v4704_v32, %v4391_v7 }
 0x2f2   : > { %v6033_v19 = vadd.f32 %v4710_v55, %v4394_v44 }
 0x2f4   : > { %v4395_v52 = vpop.f32.mrb[156].mxu1 }
 0x2f5   : > { %v4396_v12 = vpop.f32.mrb[157].mxu1 }
 0x2f6   : > { %v4397_v47 = vadd.f32 %v4396_v12, %v4395_v52  ;;  %v4398_v34 = vpop.f32.mrb[158].mxu1 }
 0x2f7   : > { %v4399_v28 = vpop.f32.mrb[159].mxu1 }
 0x2f8   : > { %v4400_v40 = vadd.f32 %v4399_v28, %v4398_v34  ;;  %v6035_v22 = vadd.f32 %v4701_v25, %v4397_v47  ;;  %v3545_v34 = vld [vmem:[%s4987_s12 + $0x10] sm:$0xff] }
 0x2fa   : > { %v6037_v36 = vadd.f32 %v4707_v48, %v4400_v40 }
 0x316   : > { %v4587_v42 = vpop.f32.mrb[0].mxu0 }
 0x317   : > { %v4619_v32 = vadd.f32 %v5908_v3, %v4587_v42  ;;  %v3185_v55 = vpop.f32.mrb[1].mxu0 }
 0x318   : > { %v4622_v9 = vadd.f32 %v5896_v57, %v3185_v55  ;;  %v4588_v23 = vpop.f32.mrb[2].mxu0 }
 0x319   : > { %v3353_v14 = vadd.f32 %v4619_v32, %v6042_v5  ;;  %v4625_v54 = vadd.f32 %v5914_v18, %v4588_v23  ;;  %v3188_v25 = vpop.f32.mrb[3].mxu0 }
 0x31a   : > { %v3351_v48 = vadd.f32 %v4622_v9, %v6042_v5  ;;  %v4628_v63 = vadd.f32 %v5902_v31, %v3188_v25 }
 0x31b   : > { %v3385_v43 = vadd.f32 3.0, %v3353_v14  ;;  %v3354_v13 = vadd.f32 %v4625_v54, %v6042_v5 }
 0x31c   : > { %v3383_v49 = vadd.f32 3.0, %v3351_v48  ;;  %v3352_v41 = vadd.f32 %v4628_v63, %v6042_v5 }
 0x31d   : > { %v3417_v3 = vmax.f32 %v3385_v43, 0.0  ;;  %v3386_v60 = vadd.f32 3.0, %v3354_v13  ;;  %v3544_v43 = vld [vmem:[%s4987_s12 + $0x8] sm:$0xff] }
 0x31e   : > { %v3415_v8 = vmax.f32 %v3383_v49, 0.0  ;;  %v3384_v57 = vadd.f32 3.0, %v3352_v41  ;;  %v4591_v20 = vpop.f32.mrb[4].mxu0 }
 0x31f   : > { %v3449_v6 = vmin.f32 %v3417_v3, 6.0  ;;  %v3418_v29 = vmax.f32 %v3386_v60, 0.0  ;;  %v4631_v18 = vadd.f32 %v5932_v59, %v4591_v20  ;;  %v3201_v10 = vpop.f32.mrb[5].mxu0 }
 0x320   : > { %v3447_v24 = vmin.f32 %v3415_v8, 6.0  ;;  %v3416_v31 = vmax.f32 %v3384_v57, 0.0  ;;  %v4634_v7 = vadd.f32 %v5920_v4, %v3201_v10  ;;  %v4592_v21 = vpop.f32.mrb[6].mxu0  ;;  %v3543_v4 = vld [vmem:[%s4987_s12] sm:$0xff] }
 0x321   : > { %v3481_v50 = vmul.f32 %v3449_v6, %v3353_v14  ;;  %v3450_v44 = vmin.f32 %v3418_v29, 6.0  ;;  %v3357_v52 = vadd.f32 %v4631_v18, %v6042_v5  ;;  %v4637_v12 = vadd.f32 %v5938_v53, %v4592_v21  ;;  %v3204_v47 = vpop.f32.mrb[7].mxu0  ;;  %v3546_v14 = vld [vmem:[%s4987_s12 + $0x18] sm:$0xff] }
 0x322   : > { %v3479_v28 = vmul.f32 %v3447_v24, %v3351_v48  ;;  %v3448_v40 = vmin.f32 %v3416_v31, 6.0  ;;  %v3355_v59 = vadd.f32 %v4634_v7, %v6042_v5  ;;  %v4640_v42 = vadd.f32 %v5926_v27, %v3204_v47 }
 0x323   : > { %v3513_v32 = vmul.f32 0.16666667, %v3481_v50  ;;  %v3482_v55 = vmul.f32 %v3450_v44, %v3354_v13  ;;  %v3389_v9 = vadd.f32 3.0, %v3357_v52  ;;  %v3358_v23 = vadd.f32 %v4637_v12, %v6042_v5 }
 0x324   : > { %v3511_v53 = vmul.f32 0.16666667, %v3479_v28  ;;  %v3480_v54 = vmul.f32 %v3448_v40, %v3352_v41  ;;  %v3387_v25 = vadd.f32 3.0, %v3355_v59  ;;  %v3356_v48 = vadd.f32 %v4640_v42, %v6042_v5 }
 0x325   : > { %v3577_v27 = vadd.f32 %v3545_v34, %v3513_v32  ;;  %v3514_v63 = vmul.f32 0.16666667, %v3482_v55  ;;  %v3421_v13 = vmax.f32 %v3389_v9, 0.0  ;;  %v3390_v49 = vadd.f32 3.0, %v3358_v23  ;;  %v3547_v55 = vld [vmem:[%s4987_s12 + $0x20] sm:$0xff] }
 0x326   : > { %v3575_v3 = vadd.f32 %v3543_v4, %v3511_v53  ;;  %v3512_v60 = vmul.f32 0.16666667, %v3480_v54  ;;  %v3419_v8 = vmax.f32 %v3387_v25, 0.0  ;;  %v3388_v57 = vadd.f32 3.0, %v3356_v48  ;;  %v4595_v20 = vpop.f32.mrb[8].mxu0  ;;  %v3550_v54 = vld [vmem:[%s4987_s12 + $0x38] sm:$0xff] }
 0x327   : > { %3609 = vst [vmem:[%s6066_s23 + $0x10] sm:$0xff] %v3577_v27  ;;  %v3578_v6 = vadd.f32 %v3546_v14, %v3514_v63  ;;  %v3453_v29 = vmin.f32 %v3421_v13, 6.0  ;;  %v3422_v41 = vmax.f32 %v3390_v49, 0.0  ;;  %v4643_v18 = vadd.f32 %v5956_v26, %v4595_v20  ;;  %v3217_v10 = vpop.f32.mrb[9].mxu0  ;;  %v3549_v26 = vld [vmem:[%s4987_s12 + $0x30] sm:$0xff] }
 0x328   : > { %3607 = vst [vmem:[%s6066_s23] sm:$0xff] %v3575_v3  ;;  %v3576_v24 = vadd.f32 %v3544_v43, %v3512_v60  ;;  %v3451_v31 = vmin.f32 %v3419_v8, 6.0  ;;  %v3420_v7 = vmax.f32 %v3388_v57, 0.0  ;;  %v4646_v21 = vadd.f32 %v5944_v51, %v3217_v10  ;;  %v4596_v50 = vpop.f32.mrb[10].mxu0  ;;  %v3548_v43 = vld [vmem:[%s4987_s12 + $0x28] sm:$0xff] }
 0x329   : > { %3610 = vst [vmem:[%s6066_s23 + $0x18] sm:$0xff] %v3578_v6  ;;  %v3485_v44 = vmul.f32 %v3453_v29, %v3357_v52  ;;  %v3454_v12 = vmin.f32 %v3422_v41, 6.0  ;;  %v3361_v47 = vadd.f32 %v4643_v18, %v6042_v5  ;;  %v4649_v34 = vadd.f32 %v5962_v2, %v4596_v50  ;;  %v3220_v28 = vpop.f32.mrb[11].mxu0 }
 0x32a   : > { %3608 = vst [vmem:[%s6066_s23 + $0x8] sm:$0xff] %v3576_v24  ;;  %v3483_v40 = vmul.f32 %v3451_v31, %v3355_v59  ;;  %v3452_v42 = vmin.f32 %v3420_v7, 6.0  ;;  %v3359_v32 = vadd.f32 %v4646_v21, %v6042_v5  ;;  %v4652_v4 = vadd.f32 %v5950_v16, %v3220_v28 }
 0x32b   : > { %v3517_v51 = vmul.f32 0.16666667, %v3485_v44  ;;  %v3486_v9 = vmul.f32 %v3454_v12, %v3358_v23  ;;  %v3393_v52 = vadd.f32 3.0, %v3361_v47  ;;  %v3362_v53 = vadd.f32 %v4649_v34, %v6042_v5 }
 0x32c   : > { %v3515_v14 = vmul.f32 0.16666667, %v3483_v40  ;;  %v3484_v2 = vmul.f32 %v3452_v42, %v3356_v48  ;;  %v3391_v25 = vadd.f32 3.0, %v3359_v32  ;;  %v3360_v27 = vadd.f32 %v4652_v4, %v6042_v5  ;;  %v3551_v42 = vld [vmem:[%s4987_s12 + $0x40] sm:$0xff] }
 0x32d   : > { %v3581_v59 = vadd.f32 %v3549_v26, %v3517_v51  ;;  %v3518_v63 = vmul.f32 0.16666667, %v3486_v9  ;;  %v3425_v13 = vmax.f32 %v3393_v52, 0.0  ;;  %v3394_v49 = vadd.f32 3.0, %v3362_v53  ;;  %v3554_v9 = vld [vmem:[%s4987_s12 + $0x58] sm:$0xff] }
 0x32e   : > { %v3579_v16 = vadd.f32 %v3547_v55, %v3515_v14  ;;  %v3516_v3 = vmul.f32 0.16666667, %v3484_v2  ;;  %v3423_v23 = vmax.f32 %v3391_v25, 0.0  ;;  %v3392_v60 = vadd.f32 3.0, %v3360_v27  ;;  %v4599_v8 = vpop.f32.mrb[12].mxu0  ;;  %v3552_v2 = vld [vmem:[%s4987_s12 + $0x48] sm:$0xff] }
 0x32f   : > { %3613 = vst [vmem:[%s6066_s23 + $0x30] sm:$0xff] %v3581_v59  ;;  %v3582_v57 = vadd.f32 %v3550_v54, %v3518_v63  ;;  %v3457_v20 = vmin.f32 %v3425_v13, 6.0  ;;  %v3426_v48 = vmax.f32 %v3394_v49, 0.0  ;;  %v4655_v6 = vadd.f32 %v5980_v38, %v4599_v8  ;;  %v3233_v29 = vpop.f32.mrb[13].mxu0  ;;  %v3553_v38 = vld [vmem:[%s4987_s12 + $0x50] sm:$0xff] }
 0x330   : > { %3611 = vst [vmem:[%s6066_s23 + $0x20] sm:$0xff] %v3579_v16  ;;  %v3580_v41 = vadd.f32 %v3548_v43, %v3516_v3  ;;  %v3455_v18 = vmin.f32 %v3423_v23, 6.0  ;;  %v3424_v10 = vmax.f32 %v3392_v60, 0.0  ;;  %v4658_v24 = vadd.f32 %v5968_v37, %v3233_v29  ;;  %v4600_v31 = vpop.f32.mrb[14].mxu0 }
 0x331   : > { %3614 = vst [vmem:[%s6066_s23 + $0x38] sm:$0xff] %v3582_v57  ;;  %v3489_v7 = vmul.f32 %v3457_v20, %v3361_v47  ;;  %v3458_v21 = vmin.f32 %v3426_v48, 6.0  ;;  %v3365_v50 = vadd.f32 %v4655_v6, %v6042_v5  ;;  %v4661_v44 = vadd.f32 %v5986_v35, %v4600_v31  ;;  %v3236_v12 = vpop.f32.mrb[15].mxu0 }
 0x332   : > { %3612 = vst [vmem:[%s6066_s23 + $0x28] sm:$0xff] %v3580_v41  ;;  %v3487_v34 = vmul.f32 %v3455_v18, %v3359_v32  ;;  %v3456_v28 = vmin.f32 %v3424_v10, 6.0  ;;  %v3363_v26 = vadd.f32 %v4658_v24, %v6042_v5  ;;  %v4664_v40 = vadd.f32 %v5974_v30, %v3236_v12 }
 0x333   : > { %v3521_v37 = vmul.f32 0.16666667, %v3489_v7  ;;  %v3490_v4 = vmul.f32 %v3458_v21, %v3362_v53  ;;  %v3397_v47 = vadd.f32 3.0, %v3365_v50  ;;  %v3366_v51 = vadd.f32 %v4661_v44, %v6042_v5  ;;  %v3555_v44 = vld [vmem:[%s4987_s12 + $0x60] sm:$0xff] }
 0x334   : > { %v3519_v55 = vmul.f32 0.16666667, %v3487_v34  ;;  %v3488_v35 = vmul.f32 %v3456_v28, %v3360_v27  ;;  %v3395_v52 = vadd.f32 3.0, %v3363_v26  ;;  %v3364_v14 = vadd.f32 %v4664_v40, %v6042_v5  ;;  %v3558_v28 = vld [vmem:[%s4987_s12 + $0x78] sm:$0xff] }
 0x335   : > { %v3585_v32 = vadd.f32 %v3553_v38, %v3521_v37  ;;  %v3522_v54 = vmul.f32 0.16666667, %v3490_v4  ;;  %v3429_v25 = vmax.f32 %v3397_v47, 0.0  ;;  %v3398_v59 = vadd.f32 3.0, %v3366_v51  ;;  %v3556_v4 = vld [vmem:[%s4987_s12 + $0x68] sm:$0xff] }
 0x336   : > { %v3583_v30 = vadd.f32 %v3551_v42, %v3519_v55  ;;  %v3520_v63 = vmul.f32 0.16666667, %v3488_v35  ;;  %v3427_v53 = vmax.f32 %v3395_v52, 0.0  ;;  %v3396_v43 = vadd.f32 3.0, %v3364_v14  ;;  %v4603_v13 = vpop.f32.mrb[16].mxu0 }
 0x337   : > { %3617 = vst [vmem:[%s6066_s23 + $0x50] sm:$0xff] %v3585_v32  ;;  %v3586_v49 = vadd.f32 %v3554_v9, %v3522_v54  ;;  %v3461_v16 = vmin.f32 %v3429_v25, 6.0  ;;  %v3430_v27 = vmax.f32 %v3398_v59, 0.0  ;;  %v4667_v3 = vadd.f32 %v6000_v15, %v4603_v13  ;;  %v3249_v23 = vpop.f32.mrb[17].mxu0  ;;  %v3557_v15 = vld [vmem:[%s4987_s12 + $0x70] sm:$0xff] }
 0x338   : > { %3615 = vst [vmem:[%s6066_s23 + $0x40] sm:$0xff] %v3583_v30  ;;  %v3584_v60 = vadd.f32 %v3552_v2, %v3520_v63  ;;  %v3459_v8 = vmin.f32 %v3427_v53, 6.0  ;;  %v3428_v57 = vmax.f32 %v3396_v43, 0.0  ;;  %v4670_v20 = vadd.f32 %v5992_v45, %v3249_v23  ;;  %v4604_v48 = vpop.f32.mrb[18].mxu0 }
 0x339   : > { %3618 = vst [vmem:[%s6066_s23 + $0x58] sm:$0xff] %v3586_v49  ;;  %v3493_v6 = vmul.f32 %v3461_v16, %v3365_v50  ;;  %v3462_v29 = vmin.f32 %v3430_v27, 6.0  ;;  %v3369_v41 = vadd.f32 %v4667_v3, %v6042_v5  ;;  %v4673_v18 = vadd.f32 %v6004_v56, %v4604_v48  ;;  %v3252_v10 = vpop.f32.mrb[19].mxu0 }
 0x33a   : > { %3616 = vst [vmem:[%s6066_s23 + $0x48] sm:$0xff] %v3584_v60  ;;  %v3491_v24 = vmul.f32 %v3459_v8, %v3363_v26  ;;  %v3460_v31 = vmin.f32 %v3428_v57, 6.0  ;;  %v3367_v7 = vadd.f32 %v4670_v20, %v6042_v5  ;;  %v4676_v21 = vadd.f32 %v5996_v33, %v3252_v10  ;;  %v3559_v20 = vld [vmem:[%s4987_s12 + $0x80] sm:$0xff] }
 0x33b   : > { %v3525_v45 = vmul.f32 0.16666667, %v3493_v6  ;;  %v3494_v12 = vmul.f32 %v3462_v29, %v3366_v51  ;;  %v3401_v50 = vadd.f32 3.0, %v3369_v41  ;;  %v3370_v38 = vadd.f32 %v4673_v18, %v6042_v5  ;;  %v3562_v18 = vld [vmem:[%s4987_s12 + $0x98] sm:$0xff] }
 0x33c   : > { %v3523_v34 = vmul.f32 0.16666667, %v3491_v24  ;;  %v3492_v56 = vmul.f32 %v3460_v31, %v3364_v14  ;;  %v3399_v40 = vadd.f32 3.0, %v3367_v7  ;;  %v3368_v37 = vadd.f32 %v4676_v21, %v6042_v5 }
 0x33d   : > { %v3589_v26 = vadd.f32 %v3557_v15, %v3525_v45  ;;  %v3526_v42 = vmul.f32 0.16666667, %v3494_v12  ;;  %v3433_v47 = vmax.f32 %v3401_v50, 0.0  ;;  %v3402_v55 = vadd.f32 3.0, %v3370_v38 }
 0x33e   : > { %v3587_v33 = vadd.f32 %v3555_v44, %v3523_v34  ;;  %v3524_v9 = vmul.f32 0.16666667, %v3492_v56  ;;  %v3431_v51 = vmax.f32 %v3399_v40, 0.0  ;;  %v3400_v35 = vadd.f32 3.0, %v3368_v37  ;;  %v4607_v52 = vpop.f32.mrb[20].mxu0 }
 0x33f   : > { %3621 = vst [vmem:[%s6066_s23 + $0x70] sm:$0xff] %v3589_v26  ;;  %v3590_v32 = vadd.f32 %v3558_v28, %v3526_v42  ;;  %v3465_v54 = vmin.f32 %v3433_v47, 6.0  ;;  %v3434_v14 = vmax.f32 %v3402_v55, 0.0  ;;  %v4679_v2 = vadd.f32 %v6016_v11, %v4607_v52  ;;  %v3265_v25 = vpop.f32.mrb[21].mxu0  ;;  %v3561_v11 = vld [vmem:[%s4987_s12 + $0x90] sm:$0xff] }
 0x340   : > { %3619 = vst [vmem:[%s6066_s23 + $0x60] sm:$0xff] %v3587_v33  ;;  %v3588_v59 = vadd.f32 %v3556_v4, %v3524_v9  ;;  %v3463_v30 = vmin.f32 %v3431_v51, 6.0  ;;  %v3432_v63 = vmax.f32 %v3400_v35, 0.0  ;;  %v4682_v53 = vadd.f32 %v6008_v62, %v3265_v25  ;;  %v4608_v43 = vpop.f32.mrb[22].mxu0  ;;  %v3563_v25 = vld [vmem:[%s4987_s12 + $0xa0] sm:$0xff] }
 0x341   : > { %3622 = vst [vmem:[%s6066_s23 + $0x78] sm:$0xff] %v3590_v32  ;;  %v3497_v13 = vmul.f32 %v3465_v54, %v3369_v41  ;;  %v3466_v49 = vmin.f32 %v3434_v14, 6.0  ;;  %v3373_v16 = vadd.f32 %v4679_v2, %v6042_v5  ;;  %v4685_v27 = vadd.f32 %v6019_v0, %v4608_v43  ;;  %v3268_v3 = vpop.f32.mrb[23].mxu0  ;;  %v3566_v43 = vld [vmem:[%s4987_s12 + $0xb8] sm:$0xff] }
 0x342   : > { %3620 = vst [vmem:[%s6066_s23 + $0x68] sm:$0xff] %v3588_v59  ;;  %v3495_v23 = vmul.f32 %v3463_v30, %v3367_v7  ;;  %v3464_v60 = vmin.f32 %v3432_v63, 6.0  ;;  %v3371_v8 = vadd.f32 %v4682_v53, %v6042_v5  ;;  %v4688_v57 = vadd.f32 %v6012_v39, %v3268_v3  ;;  %v3560_v7 = vld [vmem:[%s4987_s12 + $0x88] sm:$0xff] }
 0x343   : > { %v3529_v62 = vmul.f32 0.16666667, %v3497_v13  ;;  %v3498_v48 = vmul.f32 %v3466_v49, %v3370_v38  ;;  %v3405_v6 = vadd.f32 3.0, %v3373_v16  ;;  %v3374_v29 = vadd.f32 %v4685_v27, %v6042_v5  ;;  %v3564_v3 = vld [vmem:[%s4987_s12 + $0xa8] sm:$0xff] }
 0x344   : > { %v3527_v41 = vmul.f32 0.16666667, %v3495_v23  ;;  %v3496_v0 = vmul.f32 %v3464_v60, %v3368_v37  ;;  %v3403_v10 = vadd.f32 3.0, %v3371_v8  ;;  %v3372_v15 = vadd.f32 %v4688_v57, %v6042_v5 }
 0x345   : > { %v3593_v24 = vadd.f32 %v3561_v11, %v3529_v62  ;;  %v3530_v31 = vmul.f32 0.16666667, %v3498_v48  ;;  %v3437_v21 = vmax.f32 %v3405_v6, 0.0  ;;  %v3406_v45 = vadd.f32 3.0, %v3374_v29 }
 0x346   : > { %v3591_v39 = vadd.f32 %v3559_v20, %v3527_v41  ;;  %v3528_v44 = vmul.f32 0.16666667, %v3496_v0  ;;  %v3435_v12 = vmax.f32 %v3403_v10, 0.0  ;;  %v3404_v50 = vadd.f32 3.0, %v3372_v15  ;;  %v4611_v38 = vpop.f32.mrb[24].mxu0 }
 0x347   : > { %3625 = vst [vmem:[%s6066_s23 + $0x90] sm:$0xff] %v3593_v24  ;;  %v3594_v34 = vadd.f32 %v3562_v18, %v3530_v31  ;;  %v3469_v28 = vmin.f32 %v3437_v21, 6.0  ;;  %v3438_v56 = vmax.f32 %v3406_v45, 0.0  ;;  %v4691_v40 = vadd.f32 %v6027_v17, %v4611_v38  ;;  %v3281_v37 = vpop.f32.mrb[25].mxu0  ;;  %v3565_v17 = vld [vmem:[%s4987_s12 + $0xb0] sm:$0xff] }
 0x348   : > { %3623 = vst [vmem:[%s6066_s23 + $0x80] sm:$0xff] %v3591_v39  ;;  %v3592_v26 = vadd.f32 %v3560_v7, %v3528_v44  ;;  %v3467_v42 = vmin.f32 %v3435_v12, 6.0  ;;  %v3436_v4 = vmax.f32 %v3404_v50, 0.0  ;;  %v4694_v47 = vadd.f32 %v6022_v46, %v3281_v37  ;;  %v4612_v55 = vpop.f32.mrb[26].mxu0 }
 0x349   : > { %3626 = vst [vmem:[%s6066_s23 + $0x98] sm:$0xff] %v3594_v34  ;;  %v3501_v33 = vmul.f32 %v3469_v28, %v3373_v16  ;;  %v3470_v9 = vmin.f32 %v3438_v56, 6.0  ;;  %v3377_v51 = vadd.f32 %v4691_v40, %v6042_v5  ;;  %v4697_v35 = vadd.f32 %v6029_v58, %v4612_v55  ;;  %v3284_v52 = vpop.f32.mrb[27].mxu0  ;;  %v3567_v34 = vld [vmem:[%s4987_s12 + $0xc0] sm:$0xff] }
 0x34a   : > { %3624 = vst [vmem:[%s6066_s23 + $0x88] sm:$0xff] %v3592_v26  ;;  %v3499_v32 = vmul.f32 %v3467_v42, %v3371_v8  ;;  %v3468_v54 = vmin.f32 %v3436_v4, 6.0  ;;  %v3375_v14 = vadd.f32 %v4694_v47, %v6042_v5  ;;  %v4700_v2 = vadd.f32 %v6025_v61, %v3284_v52  ;;  %v3570_v26 = vld [vmem:[%s4987_s12 + $0xd8] sm:$0xff] }
 0x34b   : > { %v3533_v46 = vmul.f32 0.16666667, %v3501_v33  ;;  %v3502_v59 = vmul.f32 %v3470_v9, %v3374_v29  ;;  %v3409_v30 = vadd.f32 3.0, %v3377_v51  ;;  %v3378_v63 = vadd.f32 %v4697_v35, %v6042_v5  ;;  %v3568_v33 = vld [vmem:[%s4987_s12 + $0xc8] sm:$0xff] }
 0x34c   : > { %v3531_v53 = vmul.f32 0.16666667, %v3499_v32  ;;  %v3500_v58 = vmul.f32 %v3468_v54, %v3372_v15  ;;  %v3407_v13 = vadd.f32 3.0, %v3375_v14  ;;  %v3376_v49 = vadd.f32 %v4700_v2, %v6042_v5 }
 0x34d   : > { %v3597_v16 = vadd.f32 %v3565_v17, %v3533_v46  ;;  %v3534_v27 = vmul.f32 0.16666667, %v3502_v59  ;;  %v3441_v11 = vmax.f32 %v3409_v30, 0.0  ;;  %v3410_v23 = vadd.f32 3.0, %v3378_v63  ;;  %v3573_v30 = vld [vmem:[%s4987_s12 + $0xf0] sm:$0xff] }
 0x34e   : > { %v3595_v61 = vadd.f32 %v3563_v25, %v3531_v53  ;;  %v3532_v60 = vmul.f32 0.16666667, %v3500_v58  ;;  %v3439_v8 = vmax.f32 %v3407_v13, 0.0  ;;  %v3408_v57 = vadd.f32 3.0, %v3376_v49  ;;  %v4615_v62 = vpop.f32.mrb[28].mxu0  ;;  %v3571_v58 = vld [vmem:[%s4987_s12 + $0xe0] sm:$0xff] }
 0x34f   : > { %3629 = vst [vmem:[%s6066_s23 + $0xb0] sm:$0xff] %v3597_v16  ;;  %v3598_v20 = vadd.f32 %v3566_v43, %v3534_v27  ;;  %v3473_v48 = vmin.f32 %v3441_v11, 6.0  ;;  %v3442_v6 = vmax.f32 %v3410_v23, 0.0  ;;  %v4703_v29 = vadd.f32 %v6035_v22, %v4615_v62  ;;  %v3297_v41 = vpop.f32.mrb[29].mxu0  ;;  %v3569_v22 = vld [vmem:[%s4987_s12 + $0xd0] sm:$0xff]  ;;  %v3574_v16 = vld [vmem:[%s4987_s12 + $0xf8] sm:$0xff] }
 0x350   : > { %3627 = vst [vmem:[%s6066_s23 + $0xa0] sm:$0xff] %v3595_v61  ;;  %v3596_v18 = vadd.f32 %v3564_v3, %v3532_v60  ;;  %v3471_v0 = vmin.f32 %v3439_v8, 6.0  ;;  %v3440_v10 = vmax.f32 %v3408_v57, 0.0  ;;  %v4706_v15 = vadd.f32 %v6031_v1, %v3297_v41  ;;  %v4616_v24 = vpop.f32.mrb[30].mxu0  ;;  %v3572_v23 = vld [vmem:[%s4987_s12 + $0xe8] sm:$0xff] }
 0x351   : > { %3630 = vst [vmem:[%s6066_s23 + $0xb8] sm:$0xff] %v3598_v20  ;;  %v3505_v31 = vmul.f32 %v3473_v48, %v3377_v51  ;;  %v3474_v7 = vmin.f32 %v3442_v6, 6.0  ;;  %v3381_v21 = vadd.f32 %v4703_v29, %v6042_v5  ;;  %v4709_v45 = vadd.f32 %v6037_v36, %v4616_v24  ;;  %v3300_v39 = vpop.f32.mrb[31].mxu0 }
 0x352   : > { %3628 = vst [vmem:[%s6066_s23 + $0xa8] sm:$0xff] %v3596_v18  ;;  %v3503_v44 = vmul.f32 %v3471_v0, %v3375_v14  ;;  %v3472_v12 = vmin.f32 %v3440_v10, 6.0  ;;  %v3379_v50 = vadd.f32 %v4706_v15, %v6042_v5  ;;  %v4712_v38 = vadd.f32 %v6033_v19, %v3300_v39 }
 0x353   : > { %v3537_v1 = vmul.f32 0.16666667, %v3505_v31  ;;  %v3506_v28 = vmul.f32 %v3474_v7, %v3378_v63  ;;  %v3413_v56 = vadd.f32 3.0, %v3381_v21  ;;  %v3382_v40 = vadd.f32 %v4709_v45, %v6042_v5 }
 0x354   : > { %v3535_v37 = vmul.f32 0.16666667, %v3503_v44  ;;  %v3504_v36 = vmul.f32 %v3472_v12, %v3376_v49  ;;  %v3411_v42 = vadd.f32 3.0, %v3379_v50  ;;  %v3380_v4 = vadd.f32 %v4712_v38, %v6042_v5 }
 0x355   : > { %v3601_v47 = vadd.f32 %v3569_v22, %v3537_v1  ;;  %v3538_v55 = vmul.f32 0.16666667, %v3506_v28  ;;  %v3445_v9 = vmax.f32 %v3413_v56, 0.0  ;;  %v3414_v19 = vadd.f32 3.0, %v3382_v40 }
 0x356   : > { %v3599_v51 = vadd.f32 %v3567_v34, %v3535_v37  ;;  %v3536_v35 = vmul.f32 0.16666667, %v3504_v36  ;;  %v3443_v52 = vmax.f32 %v3411_v42, 0.0  ;;  %v3412_v17 = vadd.f32 3.0, %v3380_v4 }
 0x357   : > { %3633 = vst [vmem:[%s6066_s23 + $0xd0] sm:$0xff] %v3601_v47  ;;  %v3602_v32 = vadd.f32 %v3570_v26, %v3538_v55  ;;  %v3477_v54 = vmin.f32 %v3445_v9, 6.0  ;;  %v3446_v14 = vmax.f32 %v3414_v19, 0.0 }
 0x358   : > { %3631 = vst [vmem:[%s6066_s23 + $0xc0] sm:$0xff] %v3599_v51  ;;  %v3600_v5 = vadd.f32 %v3568_v33, %v3536_v35  ;;  %v3475_v2 = vmin.f32 %v3443_v52, 6.0  ;;  %v3444_v46 = vmax.f32 %v3412_v17, 0.0 }
 0x359   : > { %3634 = vst [vmem:[%s6066_s23 + $0xd8] sm:$0xff] %v3602_v32  ;;  %v3509_v25 = vmul.f32 %v3477_v54, %v3381_v21  ;;  %v3478_v59 = vmin.f32 %v3446_v14, 6.0 }
 0x35a   : > { %3632 = vst [vmem:[%s6066_s23 + $0xc8] sm:$0xff] %v3600_v5  ;;  %v3507_v63 = vmul.f32 %v3475_v2, %v3379_v50  ;;  %v3476_v53 = vmin.f32 %v3444_v46, 6.0 }
 0x35b   : > { %v3541_v43 = vmul.f32 0.16666667, %v3509_v25  ;;  %v3510_v13 = vmul.f32 %v3478_v59, %v3382_v40 }
 0x35c   : > { %v3539_v49 = vmul.f32 0.16666667, %v3507_v63  ;;  %v3508_v27 = vmul.f32 %v3476_v53, %v3380_v4 }
 0x35d   : > { %v3605_v3 = vadd.f32 %v3573_v30, %v3541_v43  ;;  %v3542_v11 = vmul.f32 0.16666667, %v3510_v13 }
 0x35e   : > { %v3603_v61 = vadd.f32 %v3571_v58, %v3539_v49  ;;  %v3540_v60 = vmul.f32 0.16666667, %v3508_v27 }
 0x35f   : > { %3637 = vst [vmem:[%s6066_s23 + $0xf0] sm:$0xff] %v3605_v3  ;;  %v3606_v8 = vadd.f32 %v3574_v16, %v3542_v11 }
 0x360   : > { %3635 = vst [vmem:[%s6066_s23 + $0xe0] sm:$0xff] %v3603_v61  ;;  %v3604_v57 = vadd.f32 %v3572_v23, %v3540_v60 }
 0x361   : > { %3638 = vst [vmem:[%s6066_s23 + $0xf8] sm:$0xff] %v3606_v8 }
 0x362   : > { %3636 = vst [vmem:[%s6066_s23 + $0xe8] sm:$0xff] %v3604_v57 }
 0x363 PF: > { %s17_s2 = sadd.s32 1, %s4909_s2   ;;  %s6204_s24 = smov %s4905_s1 }
 0x364   : > { %p14_p5 = scmp.ge.s32.totalorder %s17_s2, 4   ;;  %s6205_s1 = smov %s6207_s25 }
 0x366   :  { %16 = sbr.rel (!%p14_p5) target bundleno = 2 (0x2), region = 106 }

</bundles_post_ra>
